<compile_context>
chip_gen: v5e
topology: v5e:2x2
jax: 0.10.0
libtpu: 0.0.40
codegen_flags: <defaults>
</compile_context>

<pallas_src>
import functools

import jax
import jax.numpy as jnp
from jax.experimental import pallas as pl
from jax.experimental.pallas import tpu as pltpu

_LN_EPS = 1e-5
_WEIGHT_RESIDENT_BYTES = 8 * 1024 * 1024     # keep the whole weight resident below this
_VMEM_SOFT_CAP = 40 * 1024 * 1024            # headroom on v7x's 64 MiB physical VMEM


def _round_up(x, m):
    return (x + m - 1) // m * m


def _vmem_limit_bytes(need):
    want = int(need * 1.4) + (2 << 20)
    return int(max(8 << 20, min(want, max(_VMEM_SOFT_CAP, need + (2 << 20)))))


_GELU_BF16 = None


def _gelu_bf16_ok():
    """bf16 GELU only where the VPU/EUP have bf16 paths (v6e / v7x); f32 elsewhere."""
    global _GELU_BF16
    if _GELU_BF16 is None:
        try:
            kind = jax.devices()[0].device_kind.lower()
            _GELU_BF16 = not any(t in kind for t in ("v2", "v3", "v4", "v5"))
        except Exception:
            _GELU_BF16 = False
    return _GELU_BF16


def _plan_matmul(M, Din, Dout, x_itemsize):
    """Tile sizes, grid order and HBM re-stream bytes for an (M,Din)@(Din,Dout) matmul."""
    # MXU-shaped row tiles (callers pad M to a multiple of 128); prefer >=2 row tiles
    # so both v7x TensorCores get work.
    if M % 256 == 0 and M > 256:
        TM = 256
    elif M % 128 == 0:
        TM = 128
    else:
        TM = M
    if Din * Dout * 2 <= _WEIGHT_RESIDENT_BYTES:
        TN = Dout                          # whole weight resident in VMEM, streamed once
    else:
        TN = None
        for c in (512, 256, 128):
            if Dout % c == 0 and Din * c * 2 <= _WEIGHT_RESIDENT_BYTES:
                TN = c
                break
        if TN is None:
            # TODO(synk): K (contraction) tiling for very large Din; fall back for now.
            TN = 128 if Dout % 128 == 0 else Dout
    n_i, n_j = M // TM, Dout // TN
    # Grid order: re-stream whichever operand costs fewer HBM bytes.
    w_restream = n_i * Din * Dout * 2
    x_restream = n_j * M * Din * x_itemsize
    row_outer = (n_j == 1) or (w_restream <= x_restream)
    if row_outer:
        grid = (n_i, n_j)
        row = lambda a, b: a
        col = lambda a, b: b
        x_bytes, w_bytes = M * Din * x_itemsize, w_restream
    else:
        grid = (n_j, n_i)
        row = lambda a, b: b
        col = lambda a, b: a
        x_bytes, w_bytes = x_restream, Din * Dout * 2
    return TM, TN, grid, row, col, x_bytes, w_bytes


# --------------------------------------------------------------------------
# Kernel 1: fused LayerNorm + matmul (+ bias) (+ GELU)
# --------------------------------------------------------------------------
def _ln_matmul_kernel(x_ref, g_ref, bt_ref, w_ref, *rest, apply_gelu, has_bias, gelu_bf16):
    if has_bias:
        bias_ref, o_ref = rest
    else:
        (o_ref,) = rest
    x = x_ref[...].astype(jnp.float32)                        # (TM, D)
    mu = jnp.mean(x, axis=-1, keepdims=True)
    xc = x - mu
    var = jnp.mean(xc * xc, axis=-1, keepdims=True)
    xn = xc * jax.lax.rsqrt(var + _LN_EPS)
    xn = xn * g_ref[...] + bt_ref[...]                        # affine LN in f32
    y = jnp.dot(xn.astype(jnp.bfloat16), w_ref[...],          # MXU: bf16 x bf16 -> f32
                preferred_element_type=jnp.float32)
    if has_bias:
        y = y + bias_ref[...]                                 # f32 bias
    if apply_gelu:
        if gelu_bf16:
            y = jax.nn.gelu(y.astype(jnp.bfloat16), approximate=True)
        else:
            y = jax.nn.gelu(y, approximate=True)
    o_ref[...] = y.astype(o_ref.dtype)


def ln_matmul(x2d, gamma, beta, w_bf16, bias, *, apply_gelu, out_dtype):
    M, D = x2d.shape
    Dout = w_bf16.shape[1]
    has_bias = bias is not None
    xb = x2d.dtype.itemsize
    ob = jnp.dtype(out_dtype).itemsize
    TM, TN, grid, row, col, x_bytes, w_bytes = _plan_matmul(M, D, Dout, xb)

    in_specs = [
        pl.BlockSpec((TM, D), lambda a, b: (row(a, b), 0)),    # activation row tile
        pl.BlockSpec((1, D), lambda a, b: (0, 0)),             # LN gamma (resident)
        pl.BlockSpec((1, D), lambda a, b: (0, 0)),             # LN beta  (resident)
        pl.BlockSpec((D, TN), lambda a, b: (0, col(a, b))),    # weight column slab
    ]
    args = [x2d, gamma, beta, w_bf16]
    if has_bias:
        in_specs.append(pl.BlockSpec((1, TN), lambda a, b: (0, col(a, b))))
        args.append(bias)

    need = (2 * TM * D * xb + 2 * D * TN * 2 + 2 * TM * TN * ob
            + 4 * D * 4 + (2 * TN * 4 if has_bias else 0)
            + TM * D * 4 + TM * TN * 4)                        # in-kernel f32 temps
    flops = 2 * M * D * Dout + 10 * M * D
    trans = M + (M * Dout if apply_gelu else 0)
    bytes_accessed = (x_bytes + w_bytes + 2 * D * 4 + M * Dout * ob
                      + (Dout * 4 if has_bias else 0))

    kernel = functools.partial(_ln_matmul_kernel, apply_gelu=apply_gelu,
                               has_bias=has_bias, gelu_bf16=_gelu_bf16_ok())
    return pl.pallas_call(
        kernel,
        out_shape=jax.ShapeDtypeStruct((M, Dout), out_dtype),
        grid=grid,
        in_specs=in_specs,
        out_specs=pl.BlockSpec((TM, TN), lambda a, b: (row(a, b), col(a, b))),
        compiler_params=pltpu.CompilerParams(
            dimension_semantics=("parallel", "parallel"),
            vmem_limit_bytes=_vmem_limit_bytes(need)),
        cost_estimate=pl.CostEstimate(flops=int(flops), transcendentals=int(trans),
                                      bytes_accessed=int(bytes_accessed)),
    )(*args)


# --------------------------------------------------------------------------
# Kernel 2: fused-head flash attention; heads split via in-kernel lane slices
# --------------------------------------------------------------------------
def _attention_kernel(qkv_ref, o_ref, *, heads, dim_head, inner, scale, tk, n_chunks):
    n = qkv_ref.shape[0]
    for h in range(heads):
        # Head split happens here -- no XLA reshape/transpose/split between kernels.
        q = (qkv_ref[:, h * dim_head:(h + 1) * dim_head].astype(jnp.float32)
             * scale).astype(jnp.bfloat16)                     # (n, Dh)
        k0 = inner + h * dim_head
        v0 = 2 * inner + h * dim_head

        def kv_step(j, carry, k0=k0, v0=v0, q=q):
            m, l, acc = carry
            start = j * tk
            if n_chunks > 1:
                start = pl.multiple_of(start, 128)
            ks = qkv_ref[pl.ds(start, tk), k0:k0 + dim_head]   # (tk, Dh) bf16
            vs = qkv_ref[pl.ds(start, tk), v0:v0 + dim_head]   # (tk, Dh) bf16
            s = jax.lax.dot_general(q, ks, (((1,), (1,)), ((), ())),
                                    preferred_element_type=jnp.float32)   # (n, tk)
            m_new = jnp.maximum(m, jnp.max(s, axis=-1, keepdims=True))
            alpha = jnp.exp(m - m_new)
            p = jnp.exp(s - m_new)
            l_new = alpha * l + jnp.sum(p, axis=-1, keepdims=True)
            acc_new = alpha * acc + jnp.dot(p.astype(jnp.bfloat16), vs,
                                            preferred_element_type=jnp.float32)
            return m_new, l_new, acc_new

        m0 = jnp.full((n, 1), -jnp.inf, dtype=jnp.float32)
        l0 = jnp.zeros((n, 1), dtype=jnp.float32)
        a0 = jnp.zeros((n, dim_head), dtype=jnp.float32)
        if n_chunks == 1:
            _, l_f, acc = kv_step(0, (m0, l0, a0))
        else:
            _, l_f, acc = jax.lax.fori_loop(0, n_chunks, kv_step, (m0, l0, a0))
        # Normalize after p@v: EUP reciprocal + (n, Dh) multiply instead of (n, n).
        out_h = acc * pl.reciprocal(l_f, approx=True)
        o_ref[:, h * dim_head:(h + 1) * dim_head] = out_h.astype(o_ref.dtype)


def attention_core(qkv, *, heads, dim_head, seq_len, batch, scale):
    m_rows, width = qkv.shape
    inner = heads * dim_head
    assert width == 3 * inner
    if seq_len % 8 != 0 and seq_len != m_rows:
        # TODO(synk): ragged sequence lengths (need sublane-padded blocks).
        raise NotImplementedError("attention_core requires seq_len % 8 == 0")
    # When the padded token count is a whole number of sequences, also run the padding
    # rows (finite garbage, sliced off at the very end) so every output block is written.
    n_blocks = m_rows // seq_len if m_rows % seq_len == 0 else batch

    tk = seq_len
    for c in (512, 256, 128):
        if seq_len % c == 0:
            tk = c
            break
    n_chunks = seq_len // tk

    need = (2 * seq_len * 3 * inner * 2 + 2 * seq_len * inner * 2
            + seq_len * tk * 4 + seq_len * inner * 4
            + seq_len * dim_head * 8 + 8 * seq_len * 4)
    flops = n_blocks * heads * (4 * seq_len * seq_len * dim_head + 6 * seq_len * seq_len)
    trans = n_blocks * heads * seq_len * seq_len
    bytes_accessed = n_blocks * seq_len * 4 * inner * 2

    kernel = functools.partial(_attention_kernel, heads=heads, dim_head=dim_head,
                               inner=inner, scale=scale, tk=tk, n_chunks=n_chunks)
    return pl.pallas_call(
        kernel,
        out_shape=jax.ShapeDtypeStruct((m_rows, inner), jnp.bfloat16),
        grid=(n_blocks,),
        in_specs=[pl.BlockSpec((seq_len, 3 * inner), lambda b: (b, 0))],
        out_specs=pl.BlockSpec((seq_len, inner), lambda b: (b, 0)),
        compiler_params=pltpu.CompilerParams(
            dimension_semantics=("parallel",),
            vmem_limit_bytes=_vmem_limit_bytes(need)),
        cost_estimate=pl.CostEstimate(flops=int(flops), transcendentals=int(trans),
                                      bytes_accessed=int(bytes_accessed)),
    )(qkv)


# --------------------------------------------------------------------------
# Kernel 3: matmul + bias + residual add (fused Residual tail)
# --------------------------------------------------------------------------
def _matmul_bias_residual_kernel(x_ref, w_ref, bias_ref, r_ref, o_ref):
    y = jnp.dot(x_ref[...].astype(jnp.bfloat16), w_ref[...],
                preferred_element_type=jnp.float32)
    y = y + bias_ref[...]                                      # f32 bias
    y = y + r_ref[...].astype(jnp.float32)                     # f32 residual (exact skip)
    o_ref[...] = y.astype(o_ref.dtype)


def matmul_bias_residual(x2d, w_bf16, bias, residual2d):
    M, Din = x2d.shape
    Dout = w_bf16.shape[1]
    xb = x2d.dtype.itemsize
    rb = residual2d.dtype.itemsize
    TM, TN, grid, row, col, x_bytes, w_bytes = _plan_matmul(M, Din, Dout, xb)

    need = (2 * TM * Din * xb + 2 * Din * TN * 2 + 2 * TN * 4
            + 2 * TM * TN * rb + 2 * TM * TN * rb + TM * TN * 4)
    flops = 2 * M * Din * Dout + 3 * M * Dout
    bytes_accessed = x_bytes + w_bytes + Dout * 4 + 2 * M * Dout * rb

    return pl.pallas_call(
        _matmul_bias_residual_kernel,
        out_shape=jax.ShapeDtypeStruct((M, Dout), residual2d.dtype),
        grid=grid,
        in_specs=[
            pl.BlockSpec((TM, Din), lambda a, b: (row(a, b), 0)),   # activation tile
            pl.BlockSpec((Din, TN), lambda a, b: (0, col(a, b))),   # weight column slab
            pl.BlockSpec((1, TN), lambda a, b: (0, col(a, b))),     # bias
            pl.BlockSpec((TM, TN), lambda a, b: (row(a, b), col(a, b))),  # residual tile
        ],
        out_specs=pl.BlockSpec((TM, TN), lambda a, b: (row(a, b), col(a, b))),
        compiler_params=pltpu.CompilerParams(
            dimension_semantics=("parallel", "parallel"),
            vmem_limit_bytes=_vmem_limit_bytes(need)),
        cost_estimate=pl.CostEstimate(flops=int(flops), transcendentals=0,
                                      bytes_accessed=int(bytes_accessed)),
    )(x2d, w_bf16, bias, residual2d)


# --------------------------------------------------------------------------
# Full Transformer forward (Pallas) + pure-JAX reference
# --------------------------------------------------------------------------
def transformer_forward_pallas(x, kparams, heads, dim_head):
    B, N, D = x.shape
    M = B * N
    M_pad = _round_up(M, 128)                  # MXU-shaped, lane/sublane-aligned row tiles
    scale = float(dim_head) ** -0.5

    h = x.reshape(M, D).astype(jnp.float32)    # residual carry stays f32 for accuracy
    if M_pad != M:
        h = jnp.pad(h, ((0, M_pad - M), (0, 0)))

    for layer in kparams:
        # --- Residual(PreNorm(Attention)) ---
        qkv = ln_matmul(h, layer["ln1_g"], layer["ln1_b"], layer["w_qkv"], None,
                        apply_gelu=False, out_dtype=jnp.bfloat16)   # (M_pad, 3*inner) bf16
        attn = attention_core(qkv, heads=heads, dim_head=dim_head,
                              seq_len=N, batch=B, scale=scale)      # (M_pad, inner) bf16
        h = matmul_bias_residual(attn, layer["w_out"], layer["b_out"], h)

        # --- Residual(PreNorm(FeedForward)) ---
        ff1 = ln_matmul(h, layer["ln2_g"], layer["ln2_b"], layer["w_ff1"], layer["b_ff1"],
                        apply_gelu=True, out_dtype=jnp.bfloat16)    # (M_pad, mlp) bf16
        h = matmul_bias_residual(ff1, layer["w_ff2"], layer["b_ff2"], h)

    return h[:M].reshape(B, N, D)


transformer_forward = jax.jit(transformer_forward_pallas,
                              static_argnames=("heads", "dim_head"))


def _layernorm_ref(x, g, b):
    mu = jnp.mean(x, axis=-1, keepdims=True)
    var = jnp.mean((x - mu) ** 2, axis=-1, keepdims=True)
    return (x - mu) * jax.lax.rsqrt(var + _LN_EPS) * g + b


def transformer_forward_ref(x, fparams, heads, dim_head):
    B, N, D = x.shape
    inner = heads * dim_head
    scale = float(dim_head) ** -0.5
    h = x.astype(jnp.float32)
    for layer in fparams:
        ln = _layernorm_ref(h, layer["ln1_g"], layer["ln1_b"])
        qkv = ln @ layer["w_qkv"]
        q, k, v = jnp.split(qkv, 3, axis=-1)

        def heads_(t):
            return t.reshape(B, N, heads, dim_head).transpose(0, 2, 1, 3)

        qh, kh, vh = heads_(q), heads_(k), heads_(v)
        dots = jnp.einsum("bhid,bhjd->bhij", qh, kh) * scale
        attn = jax.nn.softmax(dots, axis=-1)
        o = jnp.einsum("bhij,bhjd->bhid", attn, vh)
        o = o.transpose(0, 2, 1, 3).reshape(B, N, inner)
        h = o @ layer["w_out"] + layer["b_out"] + h

        ln2 = _layernorm_ref(h, layer["ln2_g"], layer["ln2_b"])
        ff = jax.nn.gelu(ln2 @ layer["w_ff1"] + layer["b_ff1"], approximate=True)
        h = ff @ layer["w_ff2"] + layer["b_ff2"] + h
    return h


def build_params(key, depth, dim, heads, dim_head, mlp_dim):
    inner = heads * dim_head
    fparams, kparams = [], []
    for _ in range(depth):
        key, *ks = jax.random.split(key, 12)
        ln1_g = 1.0 + 0.1 * jax.random.normal(ks[0], (dim,), jnp.float32)
        ln1_b = 0.1 * jax.random.normal(ks[1], (dim,), jnp.float32)
        w_qkv = 0.05 * jax.random.normal(ks[2], (dim, 3 * inner), jnp.float32)
        w_out = 0.05 * jax.random.normal(ks[3], (inner, dim), jnp.float32)
        b_out = 0.05 * jax.random.normal(ks[4], (dim,), jnp.float32)
        ln2_g = 1.0 + 0.1 * jax.random.normal(ks[5], (dim,), jnp.float32)
        ln2_b = 0.1 * jax.random.normal(ks[6], (dim,), jnp.float32)
        w_ff1 = 0.05 * jax.random.normal(ks[7], (dim, mlp_dim), jnp.float32)
        b_ff1 = 0.05 * jax.random.normal(ks[8], (mlp_dim,), jnp.float32)
        w_ff2 = 0.05 * jax.random.normal(ks[9], (mlp_dim, dim), jnp.float32)
        b_ff2 = 0.05 * jax.random.normal(ks[10], (dim,), jnp.float32)

        fparams.append(dict(ln1_g=ln1_g, ln1_b=ln1_b, w_qkv=w_qkv,
                            w_out=w_out, b_out=b_out, ln2_g=ln2_g, ln2_b=ln2_b,
                            w_ff1=w_ff1, b_ff1=b_ff1, w_ff2=w_ff2, b_ff2=b_ff2))
        kparams.append(dict(
            ln1_g=ln1_g.reshape(1, dim), ln1_b=ln1_b.reshape(1, dim),
            w_qkv=w_qkv.astype(jnp.bfloat16),                 # to_qkv has bias=False
            w_out=w_out.astype(jnp.bfloat16), b_out=b_out.reshape(1, dim),
            ln2_g=ln2_g.reshape(1, dim), ln2_b=ln2_b.reshape(1, dim),
            w_ff1=w_ff1.astype(jnp.bfloat16), b_ff1=b_ff1.reshape(1, mlp_dim),
            w_ff2=w_ff2.astype(jnp.bfloat16), b_ff2=b_ff2.reshape(1, dim),
        ))
    return fparams, kparams


if __name__ == "__main__":
    key = jax.random.PRNGKey(0)
    kx, kp = jax.random.split(key)

    # Small shapes consistent with the module's forward.
    B, N, D = 2, 8, 32                  # batch, seq, hidden(dim)
    depth, heads, dim_head, mlp_dim = 2, 4, 8, 64

    x = jax.random.normal(kx, (B, N, D), dtype=jnp.float32)
    fparams, kparams = build_params(kp, depth, D, heads, dim_head, mlp_dim)

    out = transformer_forward(x, kparams, heads=heads, dim_head=dim_head)
    out = jax.block_until_ready(out)

    ref = transformer_forward_ref(x, fparams, heads, dim_head)
    assert out.shape == (B, N, D)
    err = float(jnp.max(jnp.abs(out - ref)))
    assert jnp.allclose(out, ref, atol=3e-2, rtol=3e-2), f"max abs err = {err}"

    print("KERNEL_OK")
</pallas_src>

<mosaic_0001>
module attributes {stable_mosaic.version = 11 : i64} {
  func.func @_matmul_bias_residual_kernel(%arg0: i32, %arg1: i32, %arg2: memref<128x32xbf16, #tpu.memory_space<vmem>>, %arg3: memref<32x32xbf16, #tpu.memory_space<vmem>>, %arg4: memref<1x32xf32, #tpu.memory_space<vmem>>, %arg5: memref<128x32xf32, #tpu.memory_space<vmem>>, %arg6: memref<128x32xf32, #tpu.memory_space<vmem>>) attributes {dimension_semantics = [#tpu.dimension_semantics<parallel>, #tpu.dimension_semantics<parallel>], iteration_bounds = array<i64: 1, 1>, scalar_prefetch = 0 : i64, scratch_operands = 0 : i64, tpu.core_type = #tpu.core_type<tc>, window_params = [{transform_indices = @transform_0, window_bounds = array<i64: 128, 32>}, {transform_indices = @transform_1, window_bounds = array<i64: 32, 32>}, {transform_indices = @transform_2, window_bounds = array<i64: 1, 32>}, {transform_indices = @transform_3, window_bounds = array<i64: 128, 32>}, {transform_indices = @transform_4, window_bounds = array<i64: 128, 32>}]} {
    %c0 = arith.constant 0 : index
    %c0_0 = arith.constant 0 : index
    %0 = vector.load %arg2[%c0, %c0_0] : memref<128x32xbf16, #tpu.memory_space<vmem>>, vector<128x32xbf16>
    %c0_1 = arith.constant 0 : index
    %c0_2 = arith.constant 0 : index
    %1 = vector.load %arg3[%c0_1, %c0_2] : memref<32x32xbf16, #tpu.memory_space<vmem>>, vector<32x32xbf16>
    %cst = arith.constant dense<0.000000e+00> : vector<128x32xf32>
    %2 = tpu.matmul %0, %1, %cst {dimension_numbers = #tpu.dot_dimension_numbers<[1], [0], [0], [1], [0, 0, 1, 1], [], []>} : vector<128x32xbf16>, vector<32x32xbf16>, vector<128x32xf32> -> vector<128x32xf32>
    %c0_3 = arith.constant 0 : index
    %c0_4 = arith.constant 0 : index
    %3 = vector.load %arg4[%c0_3, %c0_4] : memref<1x32xf32, #tpu.memory_space<vmem>>, vector<1x32xf32>
    %4 = vector.broadcast %3 : vector<1x32xf32> to vector<128x32xf32>
    %5 = arith.addf %2, %4 : vector<128x32xf32>
    %c0_5 = arith.constant 0 : index
    %c0_6 = arith.constant 0 : index
    %6 = vector.load %arg5[%c0_5, %c0_6] : memref<128x32xf32, #tpu.memory_space<vmem>>, vector<128x32xf32>
    %7 = arith.addf %5, %6 : vector<128x32xf32>
    %c0_7 = arith.constant 0 : index
    %c0_8 = arith.constant 0 : index
    %8 = vector.load %arg6[%c0_7, %c0_8] : memref<128x32xf32, #tpu.memory_space<vmem>>, vector<128x32xf32>
    tpu.vector_store %arg6[%c0_7, %c0_8], %7 {strides = array<i32>} : memref<128x32xf32, #tpu.memory_space<vmem>>, vector<128x32xf32>,
    return
  }
  func.func @transform_0(%arg0: i32, %arg1: i32) -> (i32, i32) {
    %c0_i32 = arith.constant 0 : i32
    %c0_i32_0 = arith.constant 0 : i32
    return %arg0, %c0_i32 : i32, i32
  }
  func.func @transform_1(%arg0: i32, %arg1: i32) -> (i32, i32) {
    %c0_i32 = arith.constant 0 : i32
    %c0_i32_0 = arith.constant 0 : i32
    return %c0_i32, %arg1 : i32, i32
  }
  func.func @transform_2(%arg0: i32, %arg1: i32) -> (i32, i32) {
    %c0_i32 = arith.constant 0 : i32
    %c0_i32_0 = arith.constant 0 : i32
    return %c0_i32, %arg1 : i32, i32
  }
  func.func @transform_3(%arg0: i32, %arg1: i32) -> (i32, i32) {
    %c0_i32 = arith.constant 0 : i32
    return %arg0, %arg1 : i32, i32
  }
  func.func @transform_4(%arg0: i32, %arg1: i32) -> (i32, i32) {
    %c0_i32 = arith.constant 0 : i32
    return %arg0, %arg1 : i32, i32
  }
}

module attributes {stable_mosaic.version = 11 : i64} {
  func.func @_ln_matmul_kernel(%arg0: i32, %arg1: i32, %arg2: memref<128x32xf32, #tpu.memory_space<vmem>>, %arg3: memref<1x32xf32, #tpu.memory_space<vmem>>, %arg4: memref<1x32xf32, #tpu.memory_space<vmem>>, %arg5: memref<32x96xbf16, #tpu.memory_space<vmem>>, %arg6: memref<128x96xbf16, #tpu.memory_space<vmem>>) attributes {dimension_semantics = [#tpu.dimension_semantics<parallel>, #tpu.dimension_semantics<parallel>], iteration_bounds = array<i64: 1, 1>, scalar_prefetch = 0 : i64, scratch_operands = 0 : i64, tpu.core_type = #tpu.core_type<tc>, window_params = [{transform_indices = @transform_0, window_bounds = array<i64: 128, 32>}, {pipeline_mode = #tpu.pipeline_mode<synchronous>, transform_indices = @transform_1, window_bounds = array<i64: 1, 32>}, {pipeline_mode = #tpu.pipeline_mode<synchronous>, transform_indices = @transform_2, window_bounds = array<i64: 1, 32>}, {transform_indices = @transform_3, window_bounds = array<i64: 32, 96>}, {transform_indices = @transform_4, window_bounds = array<i64: 128, 96>}]} {
    %c0 = arith.constant 0 : index
    %c0_0 = arith.constant 0 : index
    %0 = vector.load %arg2[%c0, %c0_0] : memref<128x32xf32, #tpu.memory_space<vmem>>, vector<128x32xf32>
    %cst = arith.constant dense<0.000000e+00> : vector<128xf32>
    %1 = vector.multi_reduction <add>, %0, %cst [1] : vector<128x32xf32> to vector<128xf32>
    %2 = vector.shape_cast %1 : vector<128xf32> to vector<128x1xf32>
    %cst_1 = arith.constant 3.200000e+01 : f32
    %3 = vector.broadcast %cst_1 : f32 to vector<128x1xf32>
    %4 = arith.divf %2, %3 : vector<128x1xf32>
    %5 = vector.broadcast %4 : vector<128x1xf32> to vector<128x32xf32>
    %6 = arith.subf %0, %5 : vector<128x32xf32>
    %7 = arith.mulf %6, %6 : vector<128x32xf32>
    %cst_2 = arith.constant dense<0.000000e+00> : vector<128xf32>
    %8 = vector.multi_reduction <add>, %7, %cst_2 [1] : vector<128x32xf32> to vector<128xf32>
    %9 = vector.shape_cast %8 : vector<128xf32> to vector<128x1xf32>
    %cst_3 = arith.constant 3.200000e+01 : f32
    %10 = vector.broadcast %cst_3 : f32 to vector<128x1xf32>
    %11 = arith.divf %9, %10 : vector<128x1xf32>
    %cst_4 = arith.constant 9.99999974E-6 : f32
    %12 = vector.broadcast %cst_4 : f32 to vector<128x1xf32>
    %13 = arith.addf %11, %12 : vector<128x1xf32>
    %14 = math.rsqrt %13 : vector<128x1xf32>
    %15 = vector.broadcast %14 : vector<128x1xf32> to vector<128x32xf32>
    %16 = arith.mulf %6, %15 : vector<128x32xf32>
    %c0_5 = arith.constant 0 : index
    %c0_6 = arith.constant 0 : index
    %17 = vector.load %arg3[%c0_5, %c0_6] : memref<1x32xf32, #tpu.memory_space<vmem>>, vector<1x32xf32>
    %18 = vector.broadcast %17 : vector<1x32xf32> to vector<128x32xf32>
    %19 = arith.mulf %16, %18 : vector<128x32xf32>
    %c0_7 = arith.constant 0 : index
    %c0_8 = arith.constant 0 : index
    %20 = vector.load %arg4[%c0_7, %c0_8] : memref<1x32xf32, #tpu.memory_space<vmem>>, vector<1x32xf32>
    %21 = vector.broadcast %20 : vector<1x32xf32> to vector<128x32xf32>
    %22 = arith.addf %19, %21 : vector<128x32xf32>
    %23 = arith.truncf %22 : vector<128x32xf32> to vector<128x32xbf16>
    %c0_9 = arith.constant 0 : index
    %c0_10 = arith.constant 0 : index
    %24 = vector.load %arg5[%c0_9, %c0_10] : memref<32x96xbf16, #tpu.memory_space<vmem>>, vector<32x96xbf16>
    %cst_11 = arith.constant dense<0.000000e+00> : vector<128x96xf32>
    %25 = tpu.matmul %23, %24, %cst_11 {dimension_numbers = #tpu.dot_dimension_numbers<[1], [0], [0], [1], [0, 0, 1, 1], [], []>} : vector<128x32xbf16>, vector<32x96xbf16>, vector<128x96xf32> -> vector<128x96xf32>
    %26 = arith.truncf %25 : vector<128x96xf32> to vector<128x96xbf16>
    %c0_12 = arith.constant 0 : index
    %c0_13 = arith.constant 0 : index
    %27 = vector.load %arg6[%c0_12, %c0_13] : memref<128x96xbf16, #tpu.memory_space<vmem>>, vector<128x96xbf16>
    tpu.vector_store %arg6[%c0_12, %c0_13], %26 {strides = array<i32>} : memref<128x96xbf16, #tpu.memory_space<vmem>>, vector<128x96xbf16>,
    return
  }
  func.func @transform_0(%arg0: i32, %arg1: i32) -> (i32, i32) {
    %c0_i32 = arith.constant 0 : i32
    %c0_i32_0 = arith.constant 0 : i32
    return %arg0, %c0_i32 : i32, i32
  }
  func.func @transform_1(%arg0: i32, %arg1: i32) -> (i32, i32) {
    %c0_i32 = arith.constant 0 : i32
    %c0_i32_0 = arith.constant 0 : i32
    %c0_i32_1 = arith.constant 0 : i32
    return %c0_i32, %c0_i32_0 : i32, i32
  }
  func.func @transform_2(%arg0: i32, %arg1: i32) -> (i32, i32) {
    %c0_i32 = arith.constant 0 : i32
    %c0_i32_0 = arith.constant 0 : i32
    %c0_i32_1 = arith.constant 0 : i32
    return %c0_i32, %c0_i32_0 : i32, i32
  }
  func.func @transform_3(%arg0: i32, %arg1: i32) -> (i32, i32) {
    %c0_i32 = arith.constant 0 : i32
    %c0_i32_0 = arith.constant 0 : i32
    return %c0_i32, %arg1 : i32, i32
  }
  func.func @transform_4(%arg0: i32, %arg1: i32) -> (i32, i32) {
    %c0_i32 = arith.constant 0 : i32
    return %arg0, %arg1 : i32, i32
  }
}

module attributes {stable_mosaic.version = 11 : i64} {
  func.func @_attention_kernel(%arg0: i32, %arg1: memref<8x96xbf16, #tpu.memory_space<vmem>>, %arg2: memref<8x32xbf16, #tpu.memory_space<vmem>>) attributes {dimension_semantics = [#tpu.dimension_semantics<parallel>], iteration_bounds = array<i64: 16>, scalar_prefetch = 0 : i64, scratch_operands = 0 : i64, tpu.core_type = #tpu.core_type<tc>, window_params = [{transform_indices = @transform_0, window_bounds = array<i64: 8, 96>}, {transform_indices = @transform_1, window_bounds = array<i64: 8, 32>}]} {
    %c0 = arith.constant 0 : index
    %c0_0 = arith.constant 0 : index
    %0 = vector.load %arg1[%c0, %c0_0] : memref<8x96xbf16, #tpu.memory_space<vmem>>, vector<8x8xbf16>
    %1 = arith.extf %0 : vector<8x8xbf16> to vector<8x8xf32>
    %cst = arith.constant 0.353553385 : f32
    %2 = vector.broadcast %cst : f32 to vector<8x8xf32>
    %3 = arith.mulf %1, %2 : vector<8x8xf32>
    %4 = arith.truncf %3 : vector<8x8xf32> to vector<8x8xbf16>
    %cst_1 = arith.constant 0xFF800000 : f32
    %5 = vector.broadcast %cst_1 : f32 to vector<8x1xf32>
    %cst_2 = arith.constant 0.000000e+00 : f32
    %6 = vector.broadcast %cst_2 : f32 to vector<8x1xf32>
    %cst_3 = arith.constant 0.000000e+00 : f32
    %7 = vector.broadcast %cst_3 : f32 to vector<8x8xf32>
    %c0_4 = arith.constant 0 : index
    %c32 = arith.constant 32 : index
    %8 = vector.load %arg1[%c0_4, %c32] : memref<8x96xbf16, #tpu.memory_space<vmem>>, vector<8x8xbf16>
    %c0_5 = arith.constant 0 : index
    %c64 = arith.constant 64 : index
    %9 = vector.load %arg1[%c0_5, %c64] : memref<8x96xbf16, #tpu.memory_space<vmem>>, vector<8x8xbf16>
    %cst_6 = arith.constant dense<0.000000e+00> : vector<8x8xf32>
    %10 = tpu.matmul %4, %8, %cst_6 {dimension_numbers = #tpu.dot_dimension_numbers<[1], [1], [0], [0], [0, 0, 1, 0], [], []>} : vector<8x8xbf16>, vector<8x8xbf16>, vector<8x8xf32> -> vector<8x8xf32>
    %cst_7 = arith.constant dense<0xFF800000> : vector<8xf32>
    %11 = vector.multi_reduction <maximumf>, %10, %cst_7 [1] : vector<8x8xf32> to vector<8xf32>
    %12 = vector.shape_cast %11 : vector<8xf32> to vector<8x1xf32>
    %13 = arith.maximumf %5, %12 : vector<8x1xf32>
    %14 = arith.subf %5, %13 : vector<8x1xf32>
    %15 = math.exp %14 : vector<8x1xf32>
    %16 = vector.broadcast %13 : vector<8x1xf32> to vector<8x8xf32>
    %17 = arith.subf %10, %16 : vector<8x8xf32>
    %18 = math.exp %17 : vector<8x8xf32>
    %19 = arith.mulf %15, %6 : vector<8x1xf32>
    %cst_8 = arith.constant dense<0.000000e+00> : vector<8xf32>
    %20 = vector.multi_reduction <add>, %18, %cst_8 [1] : vector<8x8xf32> to vector<8xf32>
    %21 = vector.shape_cast %20 : vector<8xf32> to vector<8x1xf32>
    %22 = arith.addf %19, %21 : vector<8x1xf32>
    %23 = vector.broadcast %15 : vector<8x1xf32> to vector<8x8xf32>
    %24 = arith.mulf %23, %7 : vector<8x8xf32>
    %25 = arith.truncf %18 : vector<8x8xf32> to vector<8x8xbf16>
    %cst_9 = arith.constant dense<0.000000e+00> : vector<8x8xf32>
    %26 = tpu.matmul %25, %9, %cst_9 {dimension_numbers = #tpu.dot_dimension_numbers<[1], [0], [0], [1], [0, 0, 1, 1], [], []>} : vector<8x8xbf16>, vector<8x8xbf16>, vector<8x8xf32> -> vector<8x8xf32>
    %27 = arith.addf %24, %26 : vector<8x8xf32>
    %28 = tpu.reciprocal %22 {approx = true} : vector<8x1xf32> -> vector<8x1xf32>
    %29 = vector.broadcast %28 : vector<8x1xf32> to vector<8x8xf32>
    %30 = arith.mulf %27, %29 : vector<8x8xf32>
    %31 = arith.truncf %30 : vector<8x8xf32> to vector<8x8xbf16>
    %c0_10 = arith.constant 0 : index
    %c0_11 = arith.constant 0 : index
    %32 = vector.load %arg2[%c0_10, %c0_11] : memref<8x32xbf16, #tpu.memory_space<vmem>>, vector<8x8xbf16>
    tpu.vector_store %arg2[%c0_10, %c0_11], %31 {strides = array<i32>} : memref<8x32xbf16, #tpu.memory_space<vmem>>, vector<8x8xbf16>,
    %c0_12 = arith.constant 0 : index
    %c8 = arith.constant 8 : index
    %33 = vector.load %arg1[%c0_12, %c8] : memref<8x96xbf16, #tpu.memory_space<vmem>>, vector<8x8xbf16>
    %34 = arith.extf %33 : vector<8x8xbf16> to vector<8x8xf32>
    %cst_13 = arith.constant 0.353553385 : f32
    %35 = vector.broadcast %cst_13 : f32 to vector<8x8xf32>
    %36 = arith.mulf %34, %35 : vector<8x8xf32>
    %37 = arith.truncf %36 : vector<8x8xf32> to vector<8x8xbf16>
    %cst_14 = arith.constant 0xFF800000 : f32
    %38 = vector.broadcast %cst_14 : f32 to vector<8x1xf32>
    %cst_15 = arith.constant 0.000000e+00 : f32
    %39 = vector.broadcast %cst_15 : f32 to vector<8x1xf32>
    %cst_16 = arith.constant 0.000000e+00 : f32
    %40 = vector.broadcast %cst_16 : f32 to vector<8x8xf32>
    %c0_17 = arith.constant 0 : index
    %c40 = arith.constant 40 : index
    %41 = vector.load %arg1[%c0_17, %c40] : memref<8x96xbf16, #tpu.memory_space<vmem>>, vector<8x8xbf16>
    %c0_18 = arith.constant 0 : index
    %c72 = arith.constant 72 : index
    %42 = vector.load %arg1[%c0_18, %c72] : memref<8x96xbf16, #tpu.memory_space<vmem>>, vector<8x8xbf16>
    %cst_19 = arith.constant dense<0.000000e+00> : vector<8x8xf32>
    %43 = tpu.matmul %37, %41, %cst_19 {dimension_numbers = #tpu.dot_dimension_numbers<[1], [1], [0], [0], [0, 0, 1, 0], [], []>} : vector<8x8xbf16>, vector<8x8xbf16>, vector<8x8xf32> -> vector<8x8xf32>
    %cst_20 = arith.constant dense<0xFF800000> : vector<8xf32>
    %44 = vector.multi_reduction <maximumf>, %43, %cst_20 [1] : vector<8x8xf32> to vector<8xf32>
    %45 = vector.shape_cast %44 : vector<8xf32> to vector<8x1xf32>
    %46 = arith.maximumf %38, %45 : vector<8x1xf32>
    %47 = arith.subf %38, %46 : vector<8x1xf32>
    %48 = math.exp %47 : vector<8x1xf32>
    %49 = vector.broadcast %46 : vector<8x1xf32> to vector<8x8xf32>
    %50 = arith.subf %43, %49 : vector<8x8xf32>
    %51 = math.exp %50 : vector<8x8xf32>
    %52 = arith.mulf %48, %39 : vector<8x1xf32>
    %cst_21 = arith.constant dense<0.000000e+00> : vector<8xf32>
    %53 = vector.multi_reduction <add>, %51, %cst_21 [1] : vector<8x8xf32> to vector<8xf32>
    %54 = vector.shape_cast %53 : vector<8xf32> to vector<8x1xf32>
    %55 = arith.addf %52, %54 : vector<8x1xf32>
    %56 = vector.broadcast %48 : vector<8x1xf32> to vector<8x8xf32>
    %57 = arith.mulf %56, %40 : vector<8x8xf32>
    %58 = arith.truncf %51 : vector<8x8xf32> to vector<8x8xbf16>
    %cst_22 = arith.constant dense<0.000000e+00> : vector<8x8xf32>
    %59 = tpu.matmul %58, %42, %cst_22 {dimension_numbers = #tpu.dot_dimension_numbers<[1], [0], [0], [1], [0, 0, 1, 1], [], []>} : vector<8x8xbf16>, vector<8x8xbf16>, vector<8x8xf32> -> vector<8x8xf32>
    %60 = arith.addf %57, %59 : vector<8x8xf32>
    %61 = tpu.reciprocal %55 {approx = true} : vector<8x1xf32> -> vector<8x1xf32>
    %62 = vector.broadcast %61 : vector<8x1xf32> to vector<8x8xf32>
    %63 = arith.mulf %60, %62 : vector<8x8xf32>
    %64 = arith.truncf %63 : vector<8x8xf32> to vector<8x8xbf16>
    %c0_23 = arith.constant 0 : index
    %c8_24 = arith.constant 8 : index
    %65 = vector.load %arg2[%c0_23, %c8_24] : memref<8x32xbf16, #tpu.memory_space<vmem>>, vector<8x8xbf16>
    tpu.vector_store %arg2[%c0_23, %c8_24], %64 {strides = array<i32>} : memref<8x32xbf16, #tpu.memory_space<vmem>>, vector<8x8xbf16>,
    %c0_25 = arith.constant 0 : index
    %c16 = arith.constant 16 : index
    %66 = vector.load %arg1[%c0_25, %c16] : memref<8x96xbf16, #tpu.memory_space<vmem>>, vector<8x8xbf16>
    %67 = arith.extf %66 : vector<8x8xbf16> to vector<8x8xf32>
    %cst_26 = arith.constant 0.353553385 : f32
    %68 = vector.broadcast %cst_26 : f32 to vector<8x8xf32>
    %69 = arith.mulf %67, %68 : vector<8x8xf32>
    %70 = arith.truncf %69 : vector<8x8xf32> to vector<8x8xbf16>
    %cst_27 = arith.constant 0xFF800000 : f32
    %71 = vector.broadcast %cst_27 : f32 to vector<8x1xf32>
    %cst_28 = arith.constant 0.000000e+00 : f32
    %72 = vector.broadcast %cst_28 : f32 to vector<8x1xf32>
    %cst_29 = arith.constant 0.000000e+00 : f32
    %73 = vector.broadcast %cst_29 : f32 to vector<8x8xf32>
    %c0_30 = arith.constant 0 : index
    %c48 = arith.constant 48 : index
    %74 = vector.load %arg1[%c0_30, %c48] : memref<8x96xbf16, #tpu.memory_space<vmem>>, vector<8x8xbf16>
    %c0_31 = arith.constant 0 : index
    %c80 = arith.constant 80 : index
    %75 = vector.load %arg1[%c0_31, %c80] : memref<8x96xbf16, #tpu.memory_space<vmem>>, vector<8x8xbf16>
    %cst_32 = arith.constant dense<0.000000e+00> : vector<8x8xf32>
    %76 = tpu.matmul %70, %74, %cst_32 {dimension_numbers = #tpu.dot_dimension_numbers<[1], [1], [0], [0], [0, 0, 1, 0], [], []>} : vector<8x8xbf16>, vector<8x8xbf16>, vector<8x8xf32> -> vector<8x8xf32>
    %cst_33 = arith.constant dense<0xFF800000> : vector<8xf32>
    %77 = vector.multi_reduction <maximumf>, %76, %cst_33 [1] : vector<8x8xf32> to vector<8xf32>
    %78 = vector.shape_cast %77 : vector<8xf32> to vector<8x1xf32>
    %79 = arith.maximumf %71, %78 : vector<8x1xf32>
    %80 = arith.subf %71, %79 : vector<8x1xf32>
    %81 = math.exp %80 : vector<8x1xf32>
    %82 = vector.broadcast %79 : vector<8x1xf32> to vector<8x8xf32>
    %83 = arith.subf %76, %82 : vector<8x8xf32>
    %84 = math.exp %83 : vector<8x8xf32>
    %85 = arith.mulf %81, %72 : vector<8x1xf32>
    %cst_34 = arith.constant dense<0.000000e+00> : vector<8xf32>
    %86 = vector.multi_reduction <add>, %84, %cst_34 [1] : vector<8x8xf32> to vector<8xf32>
    %87 = vector.shape_cast %86 : vector<8xf32> to vector<8x1xf32>
    %88 = arith.addf %85, %87 : vector<8x1xf32>
    %89 = vector.broadcast %81 : vector<8x1xf32> to vector<8x8xf32>
    %90 = arith.mulf %89, %73 : vector<8x8xf32>
    %91 = arith.truncf %84 : vector<8x8xf32> to vector<8x8xbf16>
    %cst_35 = arith.constant dense<0.000000e+00> : vector<8x8xf32>
    %92 = tpu.matmul %91, %75, %cst_35 {dimension_numbers = #tpu.dot_dimension_numbers<[1], [0], [0], [1], [0, 0, 1, 1], [], []>} : vector<8x8xbf16>, vector<8x8xbf16>, vector<8x8xf32> -> vector<8x8xf32>
    %93 = arith.addf %90, %92 : vector<8x8xf32>
    %94 = tpu.reciprocal %88 {approx = true} : vector<8x1xf32> -> vector<8x1xf32>
    %95 = vector.broadcast %94 : vector<8x1xf32> to vector<8x8xf32>
    %96 = arith.mulf %93, %95 : vector<8x8xf32>
    %97 = arith.truncf %96 : vector<8x8xf32> to vector<8x8xbf16>
    %c0_36 = arith.constant 0 : index
    %c16_37 = arith.constant 16 : index
    %98 = vector.load %arg2[%c0_36, %c16_37] : memref<8x32xbf16, #tpu.memory_space<vmem>>, vector<8x8xbf16>
    tpu.vector_store %arg2[%c0_36, %c16_37], %97 {strides = array<i32>} : memref<8x32xbf16, #tpu.memory_space<vmem>>, vector<8x8xbf16>,
    %c0_38 = arith.constant 0 : index
    %c24 = arith.constant 24 : index
    %99 = vector.load %arg1[%c0_38, %c24] : memref<8x96xbf16, #tpu.memory_space<vmem>>, vector<8x8xbf16>
    %100 = arith.extf %99 : vector<8x8xbf16> to vector<8x8xf32>
    %cst_39 = arith.constant 0.353553385 : f32
    %101 = vector.broadcast %cst_39 : f32 to vector<8x8xf32>
    %102 = arith.mulf %100, %101 : vector<8x8xf32>
    %103 = arith.truncf %102 : vector<8x8xf32> to vector<8x8xbf16>
    %cst_40 = arith.constant 0xFF800000 : f32
    %104 = vector.broadcast %cst_40 : f32 to vector<8x1xf32>
    %cst_41 = arith.constant 0.000000e+00 : f32
    %105 = vector.broadcast %cst_41 : f32 to vector<8x1xf32>
    %cst_42 = arith.constant 0.000000e+00 : f32
    %106 = vector.broadcast %cst_42 : f32 to vector<8x8xf32>
    %c0_43 = arith.constant 0 : index
    %c56 = arith.constant 56 : index
    %107 = vector.load %arg1[%c0_43, %c56] : memref<8x96xbf16, #tpu.memory_space<vmem>>, vector<8x8xbf16>
    %c0_44 = arith.constant 0 : index
    %c88 = arith.constant 88 : index
    %108 = vector.load %arg1[%c0_44, %c88] : memref<8x96xbf16, #tpu.memory_space<vmem>>, vector<8x8xbf16>
    %cst_45 = arith.constant dense<0.000000e+00> : vector<8x8xf32>
    %109 = tpu.matmul %103, %107, %cst_45 {dimension_numbers = #tpu.dot_dimension_numbers<[1], [1], [0], [0], [0, 0, 1, 0], [], []>} : vector<8x8xbf16>, vector<8x8xbf16>, vector<8x8xf32> -> vector<8x8xf32>
    %cst_46 = arith.constant dense<0xFF800000> : vector<8xf32>
    %110 = vector.multi_reduction <maximumf>, %109, %cst_46 [1] : vector<8x8xf32> to vector<8xf32>
    %111 = vector.shape_cast %110 : vector<8xf32> to vector<8x1xf32>
    %112 = arith.maximumf %104, %111 : vector<8x1xf32>
    %113 = arith.subf %104, %112 : vector<8x1xf32>
    %114 = math.exp %113 : vector<8x1xf32>
    %115 = vector.broadcast %112 : vector<8x1xf32> to vector<8x8xf32>
    %116 = arith.subf %109, %115 : vector<8x8xf32>
    %117 = math.exp %116 : vector<8x8xf32>
    %118 = arith.mulf %114, %105 : vector<8x1xf32>
    %cst_47 = arith.constant dense<0.000000e+00> : vector<8xf32>
    %119 = vector.multi_reduction <add>, %117, %cst_47 [1] : vector<8x8xf32> to vector<8xf32>
    %120 = vector.shape_cast %119 : vector<8xf32> to vector<8x1xf32>
    %121 = arith.addf %118, %120 : vector<8x1xf32>
    %122 = vector.broadcast %114 : vector<8x1xf32> to vector<8x8xf32>
    %123 = arith.mulf %122, %106 : vector<8x8xf32>
    %124 = arith.truncf %117 : vector<8x8xf32> to vector<8x8xbf16>
    %cst_48 = arith.constant dense<0.000000e+00> : vector<8x8xf32>
    %125 = tpu.matmul %124, %108, %cst_48 {dimension_numbers = #tpu.dot_dimension_numbers<[1], [0], [0], [1], [0, 0, 1, 1], [], []>} : vector<8x8xbf16>, vector<8x8xbf16>, vector<8x8xf32> -> vector<8x8xf32>
    %126 = arith.addf %123, %125 : vector<8x8xf32>
    %127 = tpu.reciprocal %121 {approx = true} : vector<8x1xf32> -> vector<8x1xf32>
    %128 = vector.broadcast %127 : vector<8x1xf32> to vector<8x8xf32>
    %129 = arith.mulf %126, %128 : vector<8x8xf32>
    %130 = arith.truncf %129 : vector<8x8xf32> to vector<8x8xbf16>
    %c0_49 = arith.constant 0 : index
    %c24_50 = arith.constant 24 : index
    %131 = vector.load %arg2[%c0_49, %c24_50] : memref<8x32xbf16, #tpu.memory_space<vmem>>, vector<8x8xbf16>
    tpu.vector_store %arg2[%c0_49, %c24_50], %130 {strides = array<i32>} : memref<8x32xbf16, #tpu.memory_space<vmem>>, vector<8x8xbf16>,
    return
  }
  func.func @transform_0(%arg0: i32) -> (i32, i32) {
    %c0_i32 = arith.constant 0 : i32
    %c0_i32_0 = arith.constant 0 : i32
    return %arg0, %c0_i32 : i32, i32
  }
  func.func @transform_1(%arg0: i32) -> (i32, i32) {
    %c0_i32 = arith.constant 0 : i32
    %c0_i32_0 = arith.constant 0 : i32
    return %arg0, %c0_i32 : i32, i32
  }
}

module attributes {stable_mosaic.version = 11 : i64} {
  func.func @_ln_matmul_kernel(%arg0: i32, %arg1: i32, %arg2: memref<128x32xf32, #tpu.memory_space<vmem>>, %arg3: memref<1x32xf32, #tpu.memory_space<vmem>>, %arg4: memref<1x32xf32, #tpu.memory_space<vmem>>, %arg5: memref<32x64xbf16, #tpu.memory_space<vmem>>, %arg6: memref<1x64xf32, #tpu.memory_space<vmem>>, %arg7: memref<128x64xbf16, #tpu.memory_space<vmem>>) attributes {dimension_semantics = [#tpu.dimension_semantics<parallel>, #tpu.dimension_semantics<parallel>], iteration_bounds = array<i64: 1, 1>, scalar_prefetch = 0 : i64, scratch_operands = 0 : i64, tpu.core_type = #tpu.core_type<tc>, window_params = [{transform_indices = @transform_0, window_bounds = array<i64: 128, 32>}, {pipeline_mode = #tpu.pipeline_mode<synchronous>, transform_indices = @transform_1, window_bounds = array<i64: 1, 32>}, {pipeline_mode = #tpu.pipeline_mode<synchronous>, transform_indices = @transform_2, window_bounds = array<i64: 1, 32>}, {transform_indices = @transform_3, window_bounds = array<i64: 32, 64>}, {transform_indices = @transform_4, window_bounds = array<i64: 1, 64>}, {transform_indices = @transform_5, window_bounds = array<i64: 128, 64>}]} {
    %c0 = arith.constant 0 : index
    %c0_0 = arith.constant 0 : index
    %0 = vector.load %arg2[%c0, %c0_0] : memref<128x32xf32, #tpu.memory_space<vmem>>, vector<128x32xf32>
    %cst = arith.constant dense<0.000000e+00> : vector<128xf32>
    %1 = vector.multi_reduction <add>, %0, %cst [1] : vector<128x32xf32> to vector<128xf32>
    %2 = vector.shape_cast %1 : vector<128xf32> to vector<128x1xf32>
    %cst_1 = arith.constant 3.200000e+01 : f32
    %3 = vector.broadcast %cst_1 : f32 to vector<128x1xf32>
    %4 = arith.divf %2, %3 : vector<128x1xf32>
    %5 = vector.broadcast %4 : vector<128x1xf32> to vector<128x32xf32>
    %6 = arith.subf %0, %5 : vector<128x32xf32>
    %7 = arith.mulf %6, %6 : vector<128x32xf32>
    %cst_2 = arith.constant dense<0.000000e+00> : vector<128xf32>
    %8 = vector.multi_reduction <add>, %7, %cst_2 [1] : vector<128x32xf32> to vector<128xf32>
    %9 = vector.shape_cast %8 : vector<128xf32> to vector<128x1xf32>
    %cst_3 = arith.constant 3.200000e+01 : f32
    %10 = vector.broadcast %cst_3 : f32 to vector<128x1xf32>
    %11 = arith.divf %9, %10 : vector<128x1xf32>
    %cst_4 = arith.constant 9.99999974E-6 : f32
    %12 = vector.broadcast %cst_4 : f32 to vector<128x1xf32>
    %13 = arith.addf %11, %12 : vector<128x1xf32>
    %14 = math.rsqrt %13 : vector<128x1xf32>
    %15 = vector.broadcast %14 : vector<128x1xf32> to vector<128x32xf32>
    %16 = arith.mulf %6, %15 : vector<128x32xf32>
    %c0_5 = arith.constant 0 : index
    %c0_6 = arith.constant 0 : index
    %17 = vector.load %arg3[%c0_5, %c0_6] : memref<1x32xf32, #tpu.memory_space<vmem>>, vector<1x32xf32>
    %18 = vector.broadcast %17 : vector<1x32xf32> to vector<128x32xf32>
    %19 = arith.mulf %16, %18 : vector<128x32xf32>
    %c0_7 = arith.constant 0 : index
    %c0_8 = arith.constant 0 : index
    %20 = vector.load %arg4[%c0_7, %c0_8] : memref<1x32xf32, #tpu.memory_space<vmem>>, vector<1x32xf32>
    %21 = vector.broadcast %20 : vector<1x32xf32> to vector<128x32xf32>
    %22 = arith.addf %19, %21 : vector<128x32xf32>
    %23 = arith.truncf %22 : vector<128x32xf32> to vector<128x32xbf16>
    %c0_9 = arith.constant 0 : index
    %c0_10 = arith.constant 0 : index
    %24 = vector.load %arg5[%c0_9, %c0_10] : memref<32x64xbf16, #tpu.memory_space<vmem>>, vector<32x64xbf16>
    %cst_11 = arith.constant dense<0.000000e+00> : vector<128x64xf32>
    %25 = tpu.matmul %23, %24, %cst_11 {dimension_numbers = #tpu.dot_dimension_numbers<[1], [0], [0], [1], [0, 0, 1, 1], [], []>} : vector<128x32xbf16>, vector<32x64xbf16>, vector<128x64xf32> -> vector<128x64xf32>
    %c0_12 = arith.constant 0 : index
    %c0_13 = arith.constant 0 : index
    %26 = vector.load %arg6[%c0_12, %c0_13] : memref<1x64xf32, #tpu.memory_space<vmem>>, vector<1x64xf32>
    %27 = vector.broadcast %26 : vector<1x64xf32> to vector<128x64xf32>
    %28 = arith.addf %25, %27 : vector<128x64xf32>
    %29 = arith.truncf %28 : vector<128x64xf32> to vector<128x64xbf16>
    %30 = arith.mulf %29, %29 : vector<128x64xbf16>
    %31 = arith.mulf %29, %30 : vector<128x64xbf16>
    %cst_14 = arith.constant 4.467770e-02 : bf16
    %32 = vector.broadcast %cst_14 : bf16 to vector<128x64xbf16>
    %33 = arith.mulf %32, %31 : vector<128x64xbf16>
    %34 = arith.addf %29, %33 : vector<128x64xbf16>
    %cst_15 = arith.constant 7.968750e-01 : bf16
    %35 = vector.broadcast %cst_15 : bf16 to vector<128x64xbf16>
    %36 = arith.mulf %35, %34 : vector<128x64xbf16>
    %37 = math.tanh %36 : vector<128x64xbf16>
    %cst_16 = arith.constant 1.000000e+00 : bf16
    %38 = vector.broadcast %cst_16 : bf16 to vector<128x64xbf16>
    %39 = arith.addf %38, %37 : vector<128x64xbf16>
    %cst_17 = arith.constant 5.000000e-01 : bf16
    %40 = vector.broadcast %cst_17 : bf16 to vector<128x64xbf16>
    %41 = arith.mulf %40, %39 : vector<128x64xbf16>
    %42 = arith.mulf %29, %41 : vector<128x64xbf16>
    %c0_18 = arith.constant 0 : index
    %c0_19 = arith.constant 0 : index
    %43 = vector.load %arg7[%c0_18, %c0_19] : memref<128x64xbf16, #tpu.memory_space<vmem>>, vector<128x64xbf16>
    tpu.vector_store %arg7[%c0_18, %c0_19], %42 {strides = array<i32>} : memref<128x64xbf16, #tpu.memory_space<vmem>>, vector<128x64xbf16>,
    return
  }
  func.func @transform_0(%arg0: i32, %arg1: i32) -> (i32, i32) {
    %c0_i32 = arith.constant 0 : i32
    %c0_i32_0 = arith.constant 0 : i32
    return %arg0, %c0_i32 : i32, i32
  }
  func.func @transform_1(%arg0: i32, %arg1: i32) -> (i32, i32) {
    %c0_i32 = arith.constant 0 : i32
    %c0_i32_0 = arith.constant 0 : i32
    %c0_i32_1 = arith.constant 0 : i32
    return %c0_i32, %c0_i32_0 : i32, i32
  }
  func.func @transform_2(%arg0: i32, %arg1: i32) -> (i32, i32) {
    %c0_i32 = arith.constant 0 : i32
    %c0_i32_0 = arith.constant 0 : i32
    %c0_i32_1 = arith.constant 0 : i32
    return %c0_i32, %c0_i32_0 : i32, i32
  }
  func.func @transform_3(%arg0: i32, %arg1: i32) -> (i32, i32) {
    %c0_i32 = arith.constant 0 : i32
    %c0_i32_0 = arith.constant 0 : i32
    return %c0_i32, %arg1 : i32, i32
  }
  func.func @transform_4(%arg0: i32, %arg1: i32) -> (i32, i32) {
    %c0_i32 = arith.constant 0 : i32
    %c0_i32_0 = arith.constant 0 : i32
    return %c0_i32, %arg1 : i32, i32
  }
  func.func @transform_5(%arg0: i32, %arg1: i32) -> (i32, i32) {
    %c0_i32 = arith.constant 0 : i32
    return %arg0, %arg1 : i32, i32
  }
}

module attributes {stable_mosaic.version = 11 : i64} {
  func.func @_matmul_bias_residual_kernel(%arg0: i32, %arg1: i32, %arg2: memref<128x64xbf16, #tpu.memory_space<vmem>>, %arg3: memref<64x32xbf16, #tpu.memory_space<vmem>>, %arg4: memref<1x32xf32, #tpu.memory_space<vmem>>, %arg5: memref<128x32xf32, #tpu.memory_space<vmem>>, %arg6: memref<128x32xf32, #tpu.memory_space<vmem>>) attributes {dimension_semantics = [#tpu.dimension_semantics<parallel>, #tpu.dimension_semantics<parallel>], iteration_bounds = array<i64: 1, 1>, scalar_prefetch = 0 : i64, scratch_operands = 0 : i64, tpu.core_type = #tpu.core_type<tc>, window_params = [{transform_indices = @transform_0, window_bounds = array<i64: 128, 64>}, {transform_indices = @transform_1, window_bounds = array<i64: 64, 32>}, {transform_indices = @transform_2, window_bounds = array<i64: 1, 32>}, {transform_indices = @transform_3, window_bounds = array<i64: 128, 32>}, {transform_indices = @transform_4, window_bounds = array<i64: 128, 32>}]} {
    %c0 = arith.constant 0 : index
    %c0_0 = arith.constant 0 : index
    %0 = vector.load %arg2[%c0, %c0_0] : memref<128x64xbf16, #tpu.memory_space<vmem>>, vector<128x64xbf16>
    %c0_1 = arith.constant 0 : index
    %c0_2 = arith.constant 0 : index
    %1 = vector.load %arg3[%c0_1, %c0_2] : memref<64x32xbf16, #tpu.memory_space<vmem>>, vector<64x32xbf16>
    %cst = arith.constant dense<0.000000e+00> : vector<128x32xf32>
    %2 = tpu.matmul %0, %1, %cst {dimension_numbers = #tpu.dot_dimension_numbers<[1], [0], [0], [1], [0, 0, 1, 1], [], []>} : vector<128x64xbf16>, vector<64x32xbf16>, vector<128x32xf32> -> vector<128x32xf32>
    %c0_3 = arith.constant 0 : index
    %c0_4 = arith.constant 0 : index
    %3 = vector.load %arg4[%c0_3, %c0_4] : memref<1x32xf32, #tpu.memory_space<vmem>>, vector<1x32xf32>
    %4 = vector.broadcast %3 : vector<1x32xf32> to vector<128x32xf32>
    %5 = arith.addf %2, %4 : vector<128x32xf32>
    %c0_5 = arith.constant 0 : index
    %c0_6 = arith.constant 0 : index
    %6 = vector.load %arg5[%c0_5, %c0_6] : memref<128x32xf32, #tpu.memory_space<vmem>>, vector<128x32xf32>
    %7 = arith.addf %5, %6 : vector<128x32xf32>
    %c0_7 = arith.constant 0 : index
    %c0_8 = arith.constant 0 : index
    %8 = vector.load %arg6[%c0_7, %c0_8] : memref<128x32xf32, #tpu.memory_space<vmem>>, vector<128x32xf32>
    tpu.vector_store %arg6[%c0_7, %c0_8], %7 {strides = array<i32>} : memref<128x32xf32, #tpu.memory_space<vmem>>, vector<128x32xf32>,
    return
  }
  func.func @transform_0(%arg0: i32, %arg1: i32) -> (i32, i32) {
    %c0_i32 = arith.constant 0 : i32
    %c0_i32_0 = arith.constant 0 : i32
    return %arg0, %c0_i32 : i32, i32
  }
  func.func @transform_1(%arg0: i32, %arg1: i32) -> (i32, i32) {
    %c0_i32 = arith.constant 0 : i32
    %c0_i32_0 = arith.constant 0 : i32
    return %c0_i32, %arg1 : i32, i32
  }
  func.func @transform_2(%arg0: i32, %arg1: i32) -> (i32, i32) {
    %c0_i32 = arith.constant 0 : i32
    %c0_i32_0 = arith.constant 0 : i32
    return %c0_i32, %arg1 : i32, i32
  }
  func.func @transform_3(%arg0: i32, %arg1: i32) -> (i32, i32) {
    %c0_i32 = arith.constant 0 : i32
    return %arg0, %arg1 : i32, i32
  }
  func.func @transform_4(%arg0: i32, %arg1: i32) -> (i32, i32) {
    %c0_i32 = arith.constant 0 : i32
    return %arg0, %arg1 : i32, i32
  }
}

</mosaic_0001>

<bundles_post_ra>
// kernel: transformer_forward_pallas.10
= control target key start
LH: loop header
LB: loop body
LE: loop exit
PB: predicated region body
PF: predicated region fallthrough
CT: control target
= control target key end

     0   :  { %vm34_vm0 = vcmask 261120   ;;  %v629_v32 = vmov 32.0   ;;  %s1286_s0 = inlined_call_operand.vmem [shape: f32[128,32], index: 0, kind: input, shape index: {}]   ;;  %s1287_s1 = inlined_call_operand.vmem [shape: f32[1,32], index: 1, kind: input, shape index: {}]   ;;  %s1288_s2 = inlined_call_operand.vmem [shape: f32[1,32], index: 2, kind: input, shape index: {}]   ;;  %s1289_s3 = inlined_call_operand.vmem [shape: bf16[32,96], index: 3, kind: input, shape index: {}]   ;;  %s1290_s4 = inlined_call_operand.vmem [shape: bf16[128,96], index: 4, kind: output, shape index: {}]  }
   0x1   :  { %v30_v0 = vld [vmem:[%s1286_s0 + $0x60] sm:$0xff]  ;;  %v673_v6 = vld [vmem:[%s1286_s0 + $0x68] sm:$0xff]  ;;  %v704_v14 = vld [vmem:[%s1286_s0 + $0x50] sm:$0xff]  ;;  %595 = vrcp.f32 %v629_v32 }
   0x2   :  { %v26_v1 = vld [vmem:[%s1286_s0 + $0x40] sm:$0xff]  ;;  %v71_v3 = vsel %vm34_vm0, %v30_v0, 0.0  ;;  %v678_v7 = vld [vmem:[%s1286_s0 + $0x48] sm:$0xff]  ;;  %v74_v9 = vsel %vm34_vm0, %v673_v6, 0.0  ;;  %v65_v17 = vsel %vm34_vm0, %v704_v14, 0.0  ;;  %v715_v18 = vld [vmem:[%s1286_s0 + $0x58] sm:$0xff] }
   0x3   :  { %v664_v2 = vld [vmem:[%s1286_s0] sm:$0xff]  ;;  %v59_v4 = vsel %vm34_vm0, %v26_v1, 0.0  ;;  %72 = vadd.xlane.f32.xlu1 %v71_v3  ;;  %v683_v8 = vld [vmem:[%s1286_s0 + $0x8] sm:$0xff]  ;;  %v62_v10 = vsel %vm34_vm0, %v678_v7, 0.0  ;;  %v720_v19 = vld [vmem:[%s1286_s0 + $0x70] sm:$0xff]  ;;  %v68_v21 = vsel %vm34_vm0, %v715_v18, 0.0 }
   0x4   :  { %v35_v5 = vsel %vm34_vm0, %v664_v2, 0.0  ;;  %60 = vadd.xlane.f32.xlu0 %v59_v4  ;;  %v38_v11 = vsel %vm34_vm0, %v683_v8, 0.0  ;;  %v694_v12 = vld [vmem:[%s1286_s0 + $0x20] sm:$0xff]  ;;  %v699_v13 = vld [vmem:[%s1286_s0 + $0x28] sm:$0xff]  ;;  %v725_v20 = vld [vmem:[%s1286_s0 + $0x78] sm:$0xff]  ;;  %v77_v22 = vsel %vm34_vm0, %v720_v19, 0.0 }
   0x5   :  { %36 = vadd.xlane.f32.xlu2 %v35_v5  ;;  %v47_v15 = vsel %vm34_vm0, %v694_v12, 0.0  ;;  %v50_v16 = vsel %vm34_vm0, %v699_v13, 0.0  ;;  %v80_v23 = vsel %vm34_vm0, %v725_v20, 0.0  ;;  %v736_v24 = vld [vmem:[%s1286_s0 + $0x10] sm:$0xff]  ;;  %v741_v25 = vld [vmem:[%s1286_s0 + $0x18] sm:$0xff] }
   0x6   :  { %v746_v26 = vld [vmem:[%s1286_s0 + $0x30] sm:$0xff]  ;;  %v41_v27 = vsel %vm34_vm0, %v736_v24, 0.0  ;;  %v44_v28 = vsel %vm34_vm0, %v741_v25, 0.0  ;;  %v757_v30 = vld [vmem:[%s1286_s0 + $0x38] sm:$0xff] }
   0x7   :  { %v53_v29 = vsel %vm34_vm0, %v746_v26, 0.0  ;;  %v56_v31 = vsel %vm34_vm0, %v757_v30, 0.0  ;;  %v596_v33 = vpop.eup %595 }
   0x8   :  { %v84_v34 = vmul.f32 32.0, %v596_v33  ;;  %vm88_vm1 = vweird.f32 %v596_v33 }
   0xa   :  { %v85_v35 = vsub.f32 1.0, %v84_v34 }
   0xb   :  { %75 = vadd.xlane.f32.xlu1 %v74_v9 }
   0xc   :  { %63 = vadd.xlane.f32.xlu0 %v62_v10  ;;  %v86_v36 = vmul.f32 %v596_v33, %v85_v35 }
   0xd   :  { %39 = vadd.xlane.f32.xlu2 %v38_v11 }
   0xe   :  { %v87_v37 = vadd.f32 %v596_v33, %v86_v36 }
  0x10   :  { %v761_v38 = vsel %vm88_vm1, %v596_v33, %v87_v37 }
  0x13   :  { %51 = vadd.xlane.f32.xlu1 %v50_v16 }
  0x14   :  { %48 = vadd.xlane.f32.xlu0 %v47_v15 }
  0x15   :  { %66 = vadd.xlane.f32.xlu2 %v65_v17 }
  0x1b   :  { %78 = vadd.xlane.f32.xlu1 %v77_v22 }
  0x1c   :  { %69 = vadd.xlane.f32.xlu0 %v68_v21 }
  0x1d   :  { %81 = vadd.xlane.f32.xlu2 %v80_v23 }
  0x23   :  { %45 = vadd.xlane.f32.xlu1 %v44_v28 }
  0x24   :  { %42 = vadd.xlane.f32.xlu0 %v41_v27 }
  0x25   :  { %54 = vadd.xlane.f32.xlu2 %v53_v29 }
  0x2c   :  { %57 = vadd.xlane.f32.xlu0 %v56_v31 }
  0x76   :  { %v73_v39 = vpop.xlane.xlu1 %72 }
  0x77   :  { %v61_v40 = vpop.xlane.xlu0 %60  ;;  %v102_v41 = vmul.f32 %v761_v38, %v73_v39 }
  0x78   :  { %v98_v42 = vmul.f32 %v761_v38, %v61_v40  ;;  %v37_v43 = vpop.xlane.xlu2 %36 }
  0x79   :  { %v765_v44 = vsub.f32 %v30_v0, %v102_v41  ;;  %v90_v56 = vmul.f32 %v761_v38, %v37_v43 }
  0x7a   :  { %v767_v45 = vsub.f32 %v26_v1, %v98_v42 }
  0x7b   :  { %v134_v47 = vmul.f32 %v765_v44, %v765_v44  ;;  %v795_v63 = vsub.f32 %v664_v2, %v90_v56 }
  0x7c   :  { %v130_v46 = vmul.f32 %v767_v45, %v767_v45 }
  0x7d   :  { %v174_v49 = vsel %vm34_vm0, %v134_v47, 0.0  ;;  %v122_v10 = vmul.f32 %v795_v63, %v795_v63 }
  0x7e   :  { %v162_v48 = vsel %vm34_vm0, %v130_v46, 0.0  ;;  %v76_v50 = vpop.xlane.xlu1 %75  ;;  %175 = vadd.xlane.f32.xlu0 %v174_v49 }
  0x7f   :  { %v64_v51 = vpop.xlane.xlu0 %63  ;;  %163 = vadd.xlane.f32.xlu1 %v162_v48  ;;  %v103_v52 = vmul.f32 %v761_v38, %v76_v50 }
  0x80   :  { %v99_v53 = vmul.f32 %v761_v38, %v64_v51  ;;  %v40_v54 = vpop.xlane.xlu2 %39 }
  0x81   :  { %v91_v55 = vmul.f32 %v761_v38, %v40_v54  ;;  %v780_v57 = vsub.f32 %v673_v6, %v103_v52 }
  0x82   :  { %v783_v58 = vsub.f32 %v678_v7, %v99_v53 }
  0x83   :  { %v786_v59 = vsub.f32 %v683_v8, %v91_v55  ;;  %v135_v60 = vmul.f32 %v780_v57, %v780_v57 }
  0x84   :  { %v131_v61 = vmul.f32 %v783_v58, %v783_v58 }
  0x85   :  { %v123_v62 = vmul.f32 %v786_v59, %v786_v59  ;;  %v177_v0 = vsel %vm34_vm0, %v135_v60, 0.0 }
  0x86   :  { %v165_v1 = vsel %vm34_vm0, %v131_v61, 0.0  ;;  %v52_v5 = vpop.xlane.xlu1 %51 }
  0x87   :  { %v49_v3 = vpop.xlane.xlu0 %48  ;;  %178 = vadd.xlane.f32.xlu1 %v177_v0  ;;  %166 = vadd.xlane.f32.xlu2 %v165_v1  ;;  %v141_v4 = vsel %vm34_vm0, %v123_v62, 0.0  ;;  %v95_v8 = vmul.f32 %v761_v38, %v52_v5 }
  0x88   :  { %v94_v6 = vmul.f32 %v761_v38, %v49_v3  ;;  %142 = vadd.xlane.f32.xlu0 %v141_v4  ;;  %v67_v7 = vpop.xlane.xlu2 %66 }
  0x89   :  { %v100_v9 = vmul.f32 %v761_v38, %v67_v7  ;;  %v812_v15 = vsub.f32 %v699_v13, %v95_v8 }
  0x8a   :  { %v804_v2 = vsub.f32 %v694_v12, %v94_v6  ;;  %v138_v12 = vsel %vm34_vm0, %v122_v10, 0.0 }
  0x8b   :  { %v809_v11 = vsub.f32 %v704_v14, %v100_v9  ;;  %v127_v29 = vmul.f32 %v812_v15, %v812_v15 }
  0x8c   :  { %v126_v16 = vmul.f32 %v804_v2, %v804_v2 }
  0x8d   :  { %v132_v17 = vmul.f32 %v809_v11, %v809_v11  ;;  %v153_v36 = vsel %vm34_vm0, %v127_v29, 0.0 }
  0x8e   :  { %v150_v21 = vsel %vm34_vm0, %v126_v16, 0.0  ;;  %v79_v14 = vpop.xlane.xlu1 %78 }
  0x8f   :  { %v70_v22 = vpop.xlane.xlu0 %69  ;;  %151 = vadd.xlane.f32.xlu1 %v150_v21  ;;  %139 = vadd.xlane.f32.xlu2 %v138_v12  ;;  %v168_v23 = vsel %vm34_vm0, %v132_v17, 0.0  ;;  %v104_v28 = vmul.f32 %v761_v38, %v79_v14  ;;  %v584_v17 = vld [vmem:[%s1289_s3] sm:$0xff] }
  0x90   :  { %v101_v27 = vmul.f32 %v761_v38, %v70_v22  ;;  %169 = vadd.xlane.f32.xlu0 %v168_v23  ;;  %v82_v13 = vpop.xlane.xlu2 %81 }
  0x91   :  { %v105_v31 = vmul.f32 %v761_v38, %v82_v13  ;;  %v833_v34 = vsub.f32 %v720_v19, %v104_v28 }
  0x92   :  { %v827_v32 = vsub.f32 %v715_v18, %v101_v27 }
  0x93   :  { %v830_v33 = vsub.f32 %v725_v20, %v105_v31  ;;  %v136_v43 = vmul.f32 %v833_v34, %v833_v34 }
  0x94   :  { %v133_v35 = vmul.f32 %v827_v32, %v827_v32 }
  0x95   :  { %v137_v37 = vmul.f32 %v830_v33, %v830_v33  ;;  %v180_v51 = vsel %vm34_vm0, %v136_v43, 0.0 }
  0x96   :  { %v171_v39 = vsel %vm34_vm0, %v133_v35, 0.0  ;;  %v46_v20 = vpop.xlane.xlu1 %45 }
  0x97   :  { %172 = vadd.xlane.f32.xlu1 %v171_v39  ;;  %v43_v40 = vpop.xlane.xlu0 %42  ;;  %154 = vadd.xlane.f32.xlu2 %v153_v36  ;;  %v183_v18 = vsel %vm34_vm0, %v137_v37, 0.0  ;;  %v93_v42 = vmul.f32 %v761_v38, %v46_v20 }
  0x98   :  { %v92_v41 = vmul.f32 %v761_v38, %v43_v40  ;;  %184 = vadd.xlane.f32.xlu0 %v183_v18  ;;  %v55_v19 = vpop.xlane.xlu2 %54 }
  0x99   :  { %v96_v46 = vmul.f32 %v761_v38, %v55_v19  ;;  %v854_v49 = vsub.f32 %v741_v25, %v93_v42 }
  0x9a   :  { %v848_v47 = vsub.f32 %v736_v24, %v92_v41 }
  0x9b   :  { %v851_v48 = vsub.f32 %v746_v26, %v96_v46  ;;  %v125_v25 = vmul.f32 %v854_v49, %v854_v49 }
  0x9c   :  { %v124_v50 = vmul.f32 %v848_v47, %v848_v47 }
  0x9d   :  { %v128_v52 = vmul.f32 %v851_v48, %v851_v48  ;;  %v147_v60 = vsel %vm34_vm0, %v125_v25, 0.0 }
  0x9e   :  { %v144_v53 = vsel %vm34_vm0, %v124_v50, 0.0 }
  0x9f   :  { %145 = vadd.xlane.f32.xlu1 %v144_v53  ;;  %v58_v54 = vpop.xlane.xlu0 %57  ;;  %181 = vadd.xlane.f32.xlu2 %v180_v51  ;;  %v156_v24 = vsel %vm34_vm0, %v128_v52, 0.0 }
  0xa0   :  { %v97_v26 = vmul.f32 %v761_v38, %v58_v54  ;;  %157 = vadd.xlane.f32.xlu0 %v156_v24 }
  0xa2   :  { %v867_v55 = vsub.f32 %v757_v30, %v97_v26  ;;  %v585_v30 = vld [vmem:[%s1289_s3 + $0x8] sm:$0xff] }
  0xa3   :  { %587 = vmatpush.bf16.msra.mxu2 %v585_v30  ;;  %588 = vmatpush.bf16.msra.mxu3 %v585_v30 }
  0xa4   :  { %v129_v56 = vmul.f32 %v867_v55, %v867_v55  ;;  %488 = vmatpush.bf16.msra.mxu0 %v585_v30  ;;  %586 = vmatpush.bf16.msra.mxu1 %v585_v30 }
  0xa6   :  { %v159_v61 = vsel %vm34_vm0, %v129_v56, 0.0 }
  0xa7   :  { %160 = vadd.xlane.f32.xlu1 %v159_v61  ;;  %148 = vadd.xlane.f32.xlu2 %v147_v60 }
  0xa8   :  { %590 = vmatpush.bf16.msra.mxu2 %v584_v17  ;;  %591 = vmatpush.bf16.msra.mxu3 %v584_v17 }
  0xa9   :  { %489 = vmatpush.bf16.msra.mxu0 %v584_v17  ;;  %589 = vmatpush.bf16.msra.mxu1 %v584_v17 }
  0xf1   :  { %v176_v0 = vpop.xlane.xlu0 %175 }
  0xf2   :  { %v164_v62 = vpop.xlane.xlu1 %163  ;;  %v198_v3 = vmul.f32 %v176_v0, %v761_v38 }
  0xf3   :  { %v194_v1 = vmul.f32 %v164_v62, %v761_v38 }
  0xf4   :  { %v214_v5 = vadd.f32 1e-05, %v198_v3 }
  0xf5   :  { %v210_v4 = vadd.f32 1e-05, %v194_v1 }
  0xf6   :  { %vm344_vm6 = vweird.f32 %v214_v5 }
  0xf7   :  { %597 = vrsqrt.f32 %v210_v4  ;;  %vm304_vm4 = vweird.f32 %v210_v4 }
  0xf8   :  { %599 = vrsqrt.f32 %v214_v5 }
  0xfa   :  { %v179_v6 = vpop.xlane.xlu1 %178  ;;  %v167_v7 = vpop.xlane.xlu2 %166 }
  0xfb   :  { %v199_v8 = vmul.f32 %v179_v6, %v761_v38  ;;  %v143_v9 = vpop.xlane.xlu0 %142  ;;  %v195_v10 = vmul.f32 %v167_v7, %v761_v38 }
  0xfc   :  { %v187_v16 = vmul.f32 %v143_v9, %v761_v38 }
  0xfd   :  { %v884_v21 = vpop.eup %597  ;;  %v886_v12 = vadd.f32 1e-05, %v199_v8  ;;  %v888_v22 = vadd.f32 1e-05, %v195_v10 }
  0xfe   :  { %v890_v23 = vpop.eup %599  ;;  %v299_v14 = vmul.f32 %v884_v21, %v210_v4  ;;  %v893_v27 = vadd.f32 1e-05, %v187_v16  ;;  %vm305_vm2 = vweird.f32 %v884_v21 }
  0xff   :  { %v339_v13 = vmul.f32 %v890_v23, %v214_v5  ;;  %601 = vrsqrt.f32 %v886_v12  ;;  %vm345_vm3 = vweird.f32 %v890_v23  ;;  %vm927_vm5 = vmor %vm304_vm4, %vm305_vm2  ;;  %vm354_vm8 = vweird.f32 %v886_v12 }
 0x100   :  { %v300_v28 = vmul.f32 %v884_v21, %v299_v14  ;;  %603 = vrsqrt.f32 %v893_v27  ;;  %vm934_vm7 = vmor %vm344_vm6, %vm345_vm3  ;;  %vm234_vm9 = vweird.f32 %v893_v27  ;;  %vm314_vm11 = vweird.f32 %v888_v22 }
 0x101   :  { %v340_v29 = vmul.f32 %v890_v23, %v339_v13  ;;  %605 = vrsqrt.f32 %v888_v22 }
 0x102   :  { %v301_v31 = vmul.f32 0.5, %v300_v28  ;;  %v152_v35 = vpop.xlane.xlu1 %151  ;;  %v140_v36 = vpop.xlane.xlu2 %139 }
 0x103   :  { %v341_v37 = vmul.f32 0.5, %v340_v29  ;;  %v190_v39 = vmul.f32 %v152_v35, %v761_v38  ;;  %v170_v40 = vpop.xlane.xlu0 %169  ;;  %v186_v18 = vmul.f32 %v140_v36, %v761_v38 }
 0x104   :  { %v302_v20 = vsub.f32 1.5, %v301_v31  ;;  %v196_v41 = vmul.f32 %v170_v40, %v761_v38  ;;  %v963_v31 = vld [vmem:[%s1287_s1] ss:$0 sm:$0xff] }
 0x105   :  { %v904_v19 = vpop.eup %601  ;;  %v342_v42 = vsub.f32 1.5, %v341_v37  ;;  %v907_v43 = vadd.f32 1e-05, %v190_v39  ;;  %v916_v52 = vadd.f32 1e-05, %v186_v18 }
 0x106   :  { %v909_v46 = vpop.eup %603  ;;  %v349_v50 = vmul.f32 %v904_v19, %v886_v12  ;;  %v914_v51 = vadd.f32 1e-05, %v196_v41  ;;  %v303_v54 = vmul.f32 %v884_v21, %v302_v20  ;;  %vm355_vm12 = vweird.f32 %v904_v19 }
 0x107   :  { %v606_v53 = vpop.eup %605  ;;  %v343_v24 = vmul.f32 %v890_v23, %v342_v42  ;;  %v229_v26 = vmul.f32 %v909_v46, %v893_v27  ;;  %607 = vrsqrt.f32 %v907_v43  ;;  %vm235_vm14 = vweird.f32 %v909_v46  ;;  %vm997_vm2 = vmor %vm354_vm8, %vm355_vm12 }
 0x108   :  { %v350_v25 = vmul.f32 %v904_v19, %v349_v50  ;;  %v309_v56 = vmul.f32 %v606_v53, %v888_v22  ;;  %609 = vrsqrt.f32 %v914_v51  ;;  %v307_v30 = vsel %vm927_vm5, %v884_v21, %v303_v54  ;;  %vm1019_vm5 = vmor %vm234_vm9, %vm235_vm14 }
 0x109   :  { %v230_v61 = vmul.f32 %v909_v46, %v229_v26  ;;  %v347_v5 = vsel %vm934_vm7, %v890_v23, %v343_v24  ;;  %611 = vrsqrt.f32 %v916_v52  ;;  %vm315_vm10 = vweird.f32 %v606_v53 }
 0x10a   :  { %v351_v0 = vmul.f32 0.5, %v350_v25  ;;  %v310_v1 = vmul.f32 %v606_v53, %v309_v56  ;;  %v173_v3 = vpop.xlane.xlu1 %172  ;;  %v155_v4 = vpop.xlane.xlu2 %154  ;;  %v386_v13 = vmul.f32 %v307_v30, %v767_v45  ;;  %v390_v28 = vmul.f32 %v347_v5, %v765_v44  ;;  %vm316_vm13 = vmor %vm314_vm11, %vm315_vm10 }
 0x10b   :  { %v185_v6 = vpop.xlane.xlu0 %184  ;;  %v231_v7 = vmul.f32 0.5, %v230_v61  ;;  %v197_v9 = vmul.f32 %v173_v3, %v761_v38  ;;  %v191_v21 = vmul.f32 %v155_v4, %v761_v38  ;;  %vm264_vm15 = vweird.f32 %v907_v43 }
 0x10c   :  { %v311_v8 = vmul.f32 0.5, %v310_v1  ;;  %v201_v10 = vmul.f32 %v185_v6, %v761_v38  ;;  %v352_v17 = vsub.f32 1.5, %v351_v0  ;;  %vm324_vm1 = vweird.f32 %v914_v51 }
 0x10d   :  { %v948_v16 = vpop.eup %607  ;;  %v958_v29 = vadd.f32 1e-05, %v197_v9  ;;  %v232_v36 = vsub.f32 1.5, %v231_v7  ;;  %v977_v18 = vadd.f32 1e-05, %v191_v21  ;;  %v406_v25 = vmul.f32 %v963_v31, %v386_v13 }
 0x10e   :  { %v312_v14 = vsub.f32 1.5, %v311_v8  ;;  %v259_v23 = vmul.f32 %v948_v16, %v907_v43  ;;  %v965_v35 = vpop.eup %609  ;;  %v968_v40 = vadd.f32 1e-05, %v201_v10  ;;  %v353_v44 = vmul.f32 %v904_v19, %v352_v17 }
 0x10f   :  { %v970_v45 = vpop.eup %611  ;;  %v319_v22 = vmul.f32 %v965_v35, %v914_v51  ;;  %613 = vrsqrt.f32 %v958_v29  ;;  %v1002_v56 = vmul.f32 %v909_v46, %v232_v36  ;;  %vm224_vm3 = vweird.f32 %v916_v52 }
 0x110   :  { %v313_v37 = vmul.f32 %v606_v53, %v312_v14  ;;  %v260_v39 = vmul.f32 %v948_v16, %v259_v23  ;;  %v219_v42 = vmul.f32 %v970_v45, %v916_v52  ;;  %615 = vrsqrt.f32 %v968_v40 }
 0x111   :  { %v320_v54 = vmul.f32 %v965_v35, %v319_v22  ;;  %v410_v62 = vmul.f32 %v963_v31, %v390_v28  ;;  %v357_v12 = vsel %vm997_vm2, %v904_v19, %v353_v44  ;;  %617 = vrsqrt.f32 %v977_v18 }
 0x112   :  { %v317_v20 = vsel %vm316_vm13, %v606_v53, %v313_v37  ;;  %v261_v41 = vmul.f32 0.5, %v260_v39  ;;  %v146_v24 = vpop.xlane.xlu1 %145  ;;  %v991_v53 = vld [vmem:[%s1288_s2] ss:$0 sm:$0xff]  ;;  %v220_v60 = vmul.f32 %v970_v45, %v219_v42  ;;  %v182_v61 = vpop.xlane.xlu2 %181  ;;  %vm265_vm4 = vweird.f32 %v948_v16 }
 0x113   :  { %v387_v50 = vmul.f32 %v317_v20, %v783_v58  ;;  %v158_v26 = vpop.xlane.xlu0 %157  ;;  %v321_v1 = vmul.f32 0.5, %v320_v54  ;;  %v188_v4 = vmul.f32 %v146_v24, %v761_v38  ;;  %v200_v6 = vmul.f32 %v182_v61, %v761_v38  ;;  %vm1061_vm9 = vmor %vm264_vm15, %vm265_vm4 }
 0x114   :  { %v262_v0 = vsub.f32 1.5, %v261_v41  ;;  %v221_v3 = vmul.f32 0.5, %v220_v60  ;;  %v192_v30 = vmul.f32 %v158_v26, %v761_v38  ;;  %v426_v8 = vadd.f32 %v991_v53, %v406_v25 }
 0x115   :  { %v322_v19 = vsub.f32 1.5, %v321_v1  ;;  %v407_v7 = vmul.f32 %v963_v31, %v387_v50  ;;  %v391_v9 = vmul.f32 %v357_v12, %v780_v57  ;;  %v237_v10 = vsel %vm1019_vm5, %v909_v46, %v1002_v56  ;;  %v1033_v21 = vpop.eup %613 }
 0x116   :  { %v222_v17 = vsub.f32 1.5, %v221_v3  ;;  %v1031_v27 = vadd.f32 1e-05, %v188_v4  ;;  %v1036_v14 = vmul.f32 %v948_v16, %v262_v0  ;;  %vm325_vm6 = vweird.f32 %v965_v35  ;;  %v1042_v57 = vpop.eup %615 }
 0x117   :  { %vm225_vm7 = vweird.f32 %v970_v45  ;;  %v1040_v23 = vadd.f32 1e-05, %v192_v30  ;;  %v329_v28 = vmul.f32 %v1033_v21, %v958_v29  ;;  %v1048_v36 = vadd.f32 1e-05, %v200_v6  ;;  %v1050_v37 = vpop.eup %617  ;;  %vm1090_vm14 = vmor %vm324_vm1, %vm325_vm6 }
 0x118   :  { %v223_v13 = vmul.f32 %v970_v45, %v222_v17  ;;  %619 = vrsqrt.f32 %v1031_v27  ;;  %v323_v39 = vmul.f32 %v965_v35, %v322_v19  ;;  %vm334_vm8 = vweird.f32 %v958_v29  ;;  %vm1079_vm12 = vmor %vm224_vm3, %vm225_vm7 }
 0x119   :  { %v369_v44 = vmul.f32 %v1042_v57, %v968_v40  ;;  %v427_v22 = vadd.f32 %v991_v53, %v407_v7  ;;  %v330_v41 = vmul.f32 %v1033_v21, %v329_v28  ;;  %vm374_vm10 = vweird.f32 %v968_v40 }
 0x11a   :  { %v269_v42 = vmul.f32 %v1050_v37, %v977_v18  ;;  %vm274_vm11 = vweird.f32 %v977_v18  ;;  %v411_v50 = vmul.f32 %v963_v31, %v391_v9  ;;  %v267_v43 = vsel %vm1061_vm9, %v948_v16, %v1036_v14  ;;  %v161_v26 = vpop.xlane.xlu1 %160  ;;  %v149_v60 = vpop.xlane.xlu2 %148 }
 0x11b   :  { %vm335_vm13 = vweird.f32 %v1033_v21  ;;  %v370_v24 = vmul.f32 %v1042_v57, %v369_v44  ;;  %621 = vrsqrt.f32 %v1040_v23  ;;  %v227_v52 = vsel %vm1079_vm12, %v970_v45, %v223_v13 }
 0x11c   :  { %v331_v25 = vmul.f32 0.5, %v330_v41  ;;  %v270_v58 = vmul.f32 %v1050_v37, %v269_v42  ;;  %623 = vrsqrt.f32 %v1048_v36  ;;  %v327_v61 = vsel %vm1090_vm14, %v965_v35, %v323_v39  ;;  %vm1120_vm1 = vmor %vm334_vm8, %vm335_vm13 }
 0x11d   :  { %v371_v12 = vmul.f32 0.5, %v370_v24  ;;  %v438_v51 = vpack.c.bf16 %v427_v22, %v426_v8  ;;  %v430_v0 = vadd.f32 %v991_v53, %v410_v62  ;;  %v431_v45 = vadd.f32 %v991_v53, %v411_v50 }
 0x11e   :  { %v1103_v1 = vpop.eup %619  ;;  %v332_v3 = vsub.f32 1.5, %v331_v25  ;;  %v271_v4 = vmul.f32 0.5, %v270_v58  ;;  %v193_v30 = vmul.f32 %v161_v26, %v761_v38  ;;  %v378_v19 = vmul.f32 %v227_v52, %v795_v63 }
 0x11f   :  { %v372_v6 = vsub.f32 1.5, %v371_v12  ;;  %v239_v7 = vmul.f32 %v1103_v1, %v1031_v27  ;;  %580 = vmatmul.msk.bf16.vlgmr.msra.gmra.mxu2 %vm34_vm0, %v438_v51  ;;  %v189_v35 = vmul.f32 %v149_v60, %v761_v38  ;;  %vm275_vm15 = vweird.f32 %v1050_v37 }
 0x120   :  { %v333_v62 = vmul.f32 %v1033_v21, %v332_v3  ;;  %v272_v8 = vsub.f32 1.5, %v271_v4  ;;  %v440_v9 = vpack.c.bf16 %v431_v45, %v430_v0  ;;  %vm375_vm2 = vweird.f32 %v1042_v57  ;;  %vm276_vm3 = vmor %vm274_vm11, %vm275_vm15 }
 0x121   :  { %v1114_v17 = vpop.eup %621  ;;  %v373_v14 = vmul.f32 %v1042_v57, %v372_v6  ;;  %v240_v38 = vmul.f32 %v1103_v1, %v239_v7  ;;  %v1127_v13 = vadd.f32 1e-05, %v193_v30  ;;  %v1136_v22 = vadd.f32 1e-05, %v189_v35  ;;  %vm1159_vm4 = vmor %vm374_vm10, %vm375_vm2 }
 0x122   :  { %v624_v28 = vpop.eup %623  ;;  %v337_v39 = vsel %vm1120_vm1, %v1033_v21, %v333_v62  ;;  %v273_v44 = vmul.f32 %v1050_v37, %v272_v8  ;;  %v279_v29 = vmul.f32 %v1114_v17, %v1040_v23  ;;  %582 = vmatmul.msk.bf16.vlgmr.msra.gmra.mxu3 %vm34_vm0, %v440_v9  ;;  %v379_v20 = vmul.f32 %v237_v10, %v786_v59 }
 0x123   :  { %v382_v41 = vmul.f32 %v267_v43, %v804_v2  ;;  %v359_v21 = vmul.f32 %v624_v28, %v1048_v36  ;;  %v398_v42 = vmul.f32 %v963_v31, %v378_v19  ;;  %v388_v50 = vmul.f32 %v327_v61, %v809_v11 }
 0x124   :  { %v389_v54 = vmul.f32 %v337_v39, %v827_v32  ;;  %v277_v5 = vsel %vm276_vm3, %v1050_v37, %v273_v44  ;;  %v280_v46 = vmul.f32 %v1114_v17, %v279_v29  ;;  %v241_v18 = vmul.f32 0.5, %v240_v38 }
 0x125   :  { %v383_v2 = vmul.f32 %v277_v5, %v812_v15  ;;  %v360_v56 = vmul.f32 %v624_v28, %v359_v21  ;;  %625 = vrsqrt.f32 %v1127_v13  ;;  %v377_v11 = vsel %vm1159_vm4, %v1042_v57, %v373_v14 }
 0x126   :  { %v281_v32 = vmul.f32 0.5, %v280_v46  ;;  %vm284_vm5 = vweird.f32 %v1040_v23  ;;  %627 = vrsqrt.f32 %v1136_v22  ;;  %vm365_vm6 = vweird.f32 %v624_v28 }
 0x127   :  { %v361_v40 = vmul.f32 0.5, %v360_v56  ;;  %v399_v10 = vmul.f32 %v963_v31, %v379_v20  ;;  %v418_v37 = vadd.f32 %v991_v53, %v398_v42  ;;  %v402_v43 = vmul.f32 %v963_v31, %v382_v41 }
 0x128   :  { %v282_v15 = vsub.f32 1.5, %v281_v32  ;;  %v403_v24 = vmul.f32 %v963_v31, %v383_v2  ;;  %v408_v26 = vmul.f32 %v963_v31, %v388_v50  ;;  %v242_v16 = vsub.f32 1.5, %v241_v18 }
 0x129   :  { %v362_v57 = vsub.f32 1.5, %v361_v40  ;;  %v419_v52 = vadd.f32 %v991_v53, %v399_v10  ;;  %v409_v25 = vmul.f32 %v963_v31, %v389_v54  ;;  %v393_v58 = vmul.f32 %v377_v11, %v830_v33 }
 0x12a   :  { %vm364_vm7 = vweird.f32 %v1048_v36  ;;  %v422_v60 = vadd.f32 %v991_v53, %v402_v43  ;;  %v423_v61 = vadd.f32 %v991_v53, %v403_v24  ;;  %vm285_vm8 = vweird.f32 %v1114_v17 }
 0x12b   :  { %v626_v12 = vpop.eup %625  ;;  %v363_v51 = vmul.f32 %v624_v28, %v362_v57  ;;  %v434_v0 = vpack.c.bf16 %v419_v52, %v418_v37  ;;  %v429_v3 = vadd.f32 %v991_v53, %v409_v25  ;;  %v283_v45 = vmul.f32 %v1114_v17, %v282_v15  ;;  %vm366_vm9 = vmor %vm364_vm7, %vm365_vm6 }
 0x12c   :  { %v628_v4 = vpop.eup %627  ;;  %v289_v33 = vmul.f32 %v626_v12, %v1127_v13  ;;  %v436_v30 = vpack.c.bf16 %v423_v61, %v422_v60  ;;  %v428_v36 = vadd.f32 %v991_v53, %v408_v26  ;;  %v243_v19 = vmul.f32 %v1103_v1, %v242_v16  ;;  %vm286_vm12 = vmor %vm284_vm5, %vm285_vm8 }
 0x12d   :  { %vm245_vm10 = vweird.f32 %v1103_v1  ;;  %v367_v6 = vsel %vm366_vm9, %v624_v28, %v363_v51  ;;  %v249_v7 = vmul.f32 %v628_v4, %v1136_v22  ;;  %576 = vmatmul.msk.bf16.vlgmr.msra.gmra.mxu0 %vm34_vm0, %v434_v0  ;;  %v413_v9 = vmul.f32 %v963_v31, %v393_v58 }
 0x12e   :  { %v392_v35 = vmul.f32 %v367_v6, %v833_v34  ;;  %v290_v62 = vmul.f32 %v626_v12, %v289_v33  ;;  %578 = vmatmul.msk.bf16.vlgmr.msra.gmra.mxu1 %vm34_vm0, %v436_v30  ;;  %v439_v8 = vpack.c.bf16 %v429_v3, %v428_v36  ;;  %vm244_vm11 = vweird.f32 %v1031_v27 }
 0x12f   :  { %v250_v63 = vmul.f32 %v628_v4, %v249_v7  ;;  %vm246_vm13 = vmor %vm244_vm11, %vm245_vm10  ;;  %v287_v14 = vsel %vm286_vm12, %v1114_v17, %v283_v45  ;;  %vm295_vm14 = vweird.f32 %v626_v12  ;;  %v433_v29 = vadd.f32 %v991_v53, %v413_v9 }
 0x130   :  { %v291_v38 = vmul.f32 0.5, %v290_v62  ;;  %581 = vmatmul.msk.bf16.gmra.mxu2 %vm34_vm0, %v439_v8  ;;  %v412_v34 = vmul.f32 %v963_v31, %v392_v35  ;;  %v247_v28 = vsel %vm246_vm13, %v1103_v1, %v243_v19  ;;  %v384_v23 = vmul.f32 %v287_v14, %v851_v48 }
 0x131   :  { %v251_v39 = vmul.f32 0.5, %v250_v63  ;;  %vm255_vm15 = vweird.f32 %v628_v4  ;;  %v380_v17 = vmul.f32 %v247_v28, %v848_v47  ;;  %vm294_vm1 = vweird.f32 %v1127_v13 }
 0x132   :  { %v292_v44 = vsub.f32 1.5, %v291_v38  ;;  %v432_v27 = vadd.f32 %v991_v53, %v412_v34  ;;  %vm296_vm2 = vmor %vm294_vm1, %vm295_vm14  ;;  %vm254_vm3 = vweird.f32 %v1136_v22  ;;  %v404_v48 = vmul.f32 %v963_v31, %v384_v23 }
 0x133   :  { %v252_v20 = vsub.f32 1.5, %v251_v39  ;;  %vm256_vm4 = vmor %vm254_vm3, %vm255_vm15  ;;  %v400_v47 = vmul.f32 %v963_v31, %v380_v17  ;;  %vm547_vm5 = vcmask 781312  }
 0x134   :  { %v293_v41 = vmul.f32 %v626_v12, %v292_v44  ;;  %v441_v21 = vpack.c.bf16 %v433_v29, %v432_v27  ;;  %v424_v59 = vadd.f32 %v991_v53, %v404_v48 }
 0x135   :  { %v253_v42 = vmul.f32 %v628_v4, %v252_v20  ;;  %v420_v2 = vadd.f32 %v991_v53, %v400_v47 }
 0x136   :  { %v297_v1 = vsel %vm296_vm2, %v626_v12, %v293_v41  ;;  %583 = vmatmul.msk.bf16.gmra.mxu3 %vm34_vm0, %v441_v21 }
 0x137   :  { %v385_v50 = vmul.f32 %v297_v1, %v867_v55  ;;  %v257_v54 = vsel %vm256_vm4, %v628_v4, %v253_v42 }
 0x138   :  { %v381_v5 = vmul.f32 %v257_v54, %v854_v49 }
 0x139   :  { %v405_v13 = vmul.f32 %v963_v31, %v385_v50 }
 0x13a   :  { %v401_v46 = vmul.f32 %v963_v31, %v381_v5 }
 0x13b   :  { %v425_v22 = vadd.f32 %v991_v53, %v405_v13 }
 0x13c   :  { %v421_v18 = vadd.f32 %v991_v53, %v401_v46 }
 0x13d   :  { %v437_v55 = vpack.c.bf16 %v425_v22, %v424_v59 }
 0x13e   :  { %v435_v56 = vpack.c.bf16 %v421_v18, %v420_v2 }
 0x13f   :  { %579 = vmatmul.msk.bf16.gmra.mxu1 %vm34_vm0, %v437_v55 }
 0x140   :  { %577 = vmatmul.msk.bf16.gmra.mxu0 %vm34_vm0, %v435_v56 }
 0x1a2   :  { %v511_v49 = vpop.f32.mrf.mxu2 }
 0x1a3   :  { %v539_v11 = vpack.c.bf16 %v511_v49, %v511_v49 }
 0x1a5   :  { %556 = vst.msk [vmem:[%s1290_s4 + $0x20] sm:$0xf] %vm547_vm5, %v539_v11  ;;  %v521_v31 = vpop.f32.mrf.mxu3 }
 0x1a6   :  { %v543_v32 = vpack.c.bf16 %v521_v31, %v521_v31 }
 0x1a8   :  { %560 = vst.msk [vmem:[%s1290_s4 + $0x30] sm:$0xf] %vm547_vm5, %v543_v32 }
 0x1aa   :  { %v491_v53 = vpop.f32.mrf.mxu0  ;;  %v513_v40 = vpop.f32.mrf.mxu2 }
 0x1ab   :  { %v531_v10 = vpack.c.bf16 %v491_v53, %v491_v53  ;;  %v540_v37 = vpack.c.bf16 %v513_v40, %v513_v40  ;;  %v501_v15 = vpop.f32.mrf.mxu1 }
 0x1ac   :  { %v535_v43 = vpack.c.bf16 %v501_v15, %v501_v15 }
 0x1ad   :  { %548 = vst.msk [vmem:[%s1290_s4] sm:$0xf] %vm547_vm5, %v531_v10  ;;  %v523_v24 = vpop.f32.mrf.mxu3 }
 0x1ae   :  { %557 = vst.msk [vmem:[%s1290_s4 + $0x24] sm:$0xf] %vm547_vm5, %v540_v37  ;;  %v544_v26 = vpack.c.bf16 %v523_v24, %v523_v24 }
 0x1af   :  { %552 = vst.msk [vmem:[%s1290_s4 + $0x10] sm:$0xf] %vm547_vm5, %v535_v43 }
 0x1b0   :  { %561 = vst.msk [vmem:[%s1290_s4 + $0x34] sm:$0xf] %vm547_vm5, %v544_v26 }
 0x1b2   :  { %v493_v16 = vpop.f32.mrf.mxu0 }
 0x1b3   :  { %v532_v57 = vpack.c.bf16 %v493_v16, %v493_v16  ;;  %v516_v52 = vpop.f32.mrf.mxu2  ;;  %v503_v25 = vpop.f32.mrf.mxu1 }
 0x1b4   :  { %v541_v58 = vpack.c.bf16 %v516_v52, %v516_v52  ;;  %v536_v60 = vpack.c.bf16 %v503_v25, %v503_v25 }
 0x1b5   :  { %549 = vst.msk [vmem:[%s1290_s4 + $0x4] sm:$0xf] %vm547_vm5, %v532_v57 }
 0x1b6   :  { %558 = vst.msk [vmem:[%s1290_s4 + $0x28] sm:$0xf] %vm547_vm5, %v541_v58 }
 0x1b7   :  { %553 = vst.msk [vmem:[%s1290_s4 + $0x14] sm:$0xf] %vm547_vm5, %v536_v60 }
 0x1b9   :  { %v526_v61 = vpop.f32.mrf.mxu3 }
 0x1ba   :  { %v545_v12 = vpack.c.bf16 %v526_v61, %v526_v61 }
 0x1bb   :  { %v518_v51 = vpop.f32.mrf.mxu2 }
 0x1bc   :  { %v542_v0 = vpack.c.bf16 %v518_v51, %v518_v51  ;;  %562 = vst.msk [vmem:[%s1290_s4 + $0x38] sm:$0xf] %vm547_vm5, %v545_v12  ;;  %v506_v3 = vpop.f32.mrf.mxu1 }
 0x1bd   :  { %v496_v4 = vpop.f32.mrf.mxu0  ;;  %v537_v45 = vpack.c.bf16 %v506_v3, %v506_v3 }
 0x1be   :  { %559 = vst.msk [vmem:[%s1290_s4 + $0x2c] sm:$0xf] %vm547_vm5, %v542_v0  ;;  %v533_v33 = vpack.c.bf16 %v496_v4, %v496_v4 }
 0x1bf   :  { %554 = vst.msk [vmem:[%s1290_s4 + $0x18] sm:$0xf] %vm547_vm5, %v537_v45 }
 0x1c0   :  { %550 = vst.msk [vmem:[%s1290_s4 + $0x8] sm:$0xf] %vm547_vm5, %v533_v33 }
 0x1c1   :  { %v528_v30 = vpop.f32.mrf.mxu3 }
 0x1c2   :  { %v546_v36 = vpack.c.bf16 %v528_v30, %v528_v30 }
 0x1c4   :  { %563 = vst.msk [vmem:[%s1290_s4 + $0x3c] sm:$0xf] %vm547_vm5, %v546_v36  ;;  %v508_v19 = vpop.f32.mrf.mxu1 }
 0x1c5   :  { %v498_v6 = vpop.f32.mrf.mxu0  ;;  %v538_v7 = vpack.c.bf16 %v508_v19, %v508_v19 }
 0x1c6   :  { %v534_v35 = vpack.c.bf16 %v498_v6, %v498_v6 }
 0x1c7   :  { %555 = vst.msk [vmem:[%s1290_s4 + $0x1c] sm:$0xf] %vm547_vm5, %v538_v7 }
 0x1c8   :  { %551 = vst.msk [vmem:[%s1290_s4 + $0xc] sm:$0xf] %vm547_vm5, %v534_v35 }

// kernel: transformer_forward_pallas.12
= control target key start
LH: loop header
LB: loop body
LE: loop exit
PB: predicated region body
PF: predicated region fallthrough
CT: control target
= control target key end

     0   :  { %vm94_vm0 = vcmask 261120   ;;  %s481_s1 = inlined_call_operand.vmem [shape: bf16[32,32], index: 1, kind: input, shape index: {}]   ;;  %s482_s0 = inlined_call_operand.vmem [shape: bf16[128,32], index: 0, kind: input, shape index: {}]   ;;  %s483_s2 = inlined_call_operand.vmem [shape: f32[1,32], index: 2, kind: input, shape index: {}]   ;;  %s484_s3 = inlined_call_operand.vmem [shape: f32[128,32], index: 3, kind: input, shape index: {}]   ;;  %s485_s4 = inlined_call_operand.vmem [shape: f32[128,32], index: 4, kind: output, shape index: {}]  }
   0x1   :  { %v277_v0 = vld [vmem:[%s481_s1 + $0x8] sm:$0xff]  ;;  %v276_v1 = vld [vmem:[%s481_s1] sm:$0xff]  ;;  %v270_v3 = vld [vmem:[%s482_s0 + $0x10] sm:$0xff] }
   0x2   :  { %125 = vmatpush.bf16.msra.mxu0 %v277_v0  ;;  %278 = vmatpush.bf16.msra.mxu1 %v277_v0  ;;  %v268_v2 = vld [vmem:[%s482_s0] sm:$0xff]  ;;  %v274_v5 = vld [vmem:[%s482_s0 + $0x30] sm:$0xff]  ;;  %v269_v6 = vld [vmem:[%s482_s0 + $0x8] sm:$0xff] }
   0x3   :  { %279 = vmatpush.bf16.msra.mxu2 %v277_v0  ;;  %280 = vmatpush.bf16.msra.mxu3 %v277_v0  ;;  %v272_v4 = vld [vmem:[%s482_s0 + $0x20] sm:$0xff]  ;;  %v271_v7 = vld [vmem:[%s482_s0 + $0x18] sm:$0xff]  ;;  %v273_v8 = vld [vmem:[%s482_s0 + $0x28] sm:$0xff] }
   0x4   :  { %v275_v9 = vld [vmem:[%s482_s0 + $0x38] sm:$0xff]  ;;  %v351_v10 = vld [vmem:[%s483_s2] ss:$0 sm:$0xff]  ;;  %v169_v26 = vld [vmem:[%s484_s3 + $0x8] sm:$0xff] }
   0x5   :  { %v168_v12 = vld [vmem:[%s484_s3] sm:$0xff]  ;;  %v173_v28 = vld [vmem:[%s484_s3 + $0x28] sm:$0xff]  ;;  %v170_v42 = vld [vmem:[%s484_s3 + $0x10] sm:$0xff] }
   0x6   :  { %126 = vmatpush.bf16.msra.mxu0 %v276_v1  ;;  %281 = vmatpush.bf16.msra.mxu1 %v276_v1  ;;  %v172_v14 = vld [vmem:[%s484_s3 + $0x20] sm:$0xff]  ;;  %v177_v36 = vld [vmem:[%s484_s3 + $0x48] sm:$0xff]  ;;  %v174_v44 = vld [vmem:[%s484_s3 + $0x30] sm:$0xff] }
   0x7   :  { %282 = vmatpush.bf16.msra.mxu2 %v276_v1  ;;  %283 = vmatpush.bf16.msra.mxu3 %v276_v1  ;;  %v176_v20 = vld [vmem:[%s484_s3 + $0x40] sm:$0xff]  ;;  %v181_v38 = vld [vmem:[%s484_s3 + $0x68] sm:$0xff]  ;;  %v178_v52 = vld [vmem:[%s484_s3 + $0x50] sm:$0xff] }
   0x8   :  { %v180_v22 = vld [vmem:[%s484_s3 + $0x60] sm:$0xff]  ;;  %v182_v54 = vld [vmem:[%s484_s3 + $0x70] sm:$0xff]  ;;  %v171_v58 = vld [vmem:[%s484_s3 + $0x18] sm:$0xff] }
   0x9   :  { %260 = vmatmul.msk.bf16.vlgmr.msra.gmra.mxu0 %vm94_vm0, %v268_v2  ;;  %262 = vmatmul.msk.bf16.vlgmr.msra.gmra.mxu1 %vm94_vm0, %v270_v3  ;;  %v175_v60 = vld [vmem:[%s484_s3 + $0x38] sm:$0xff] }
   0xa   :  { %264 = vmatmul.msk.bf16.vlgmr.msra.gmra.mxu2 %vm94_vm0, %v272_v4  ;;  %266 = vmatmul.msk.bf16.vlgmr.msra.gmra.mxu3 %vm94_vm0, %v274_v5  ;;  %v179_v4 = vld [vmem:[%s484_s3 + $0x58] sm:$0xff] }
  0x19   :  { %261 = vmatmul.msk.bf16.gmra.mxu0 %vm94_vm0, %v269_v6  ;;  %263 = vmatmul.msk.bf16.gmra.mxu1 %vm94_vm0, %v271_v7  ;;  %v183_v6 = vld [vmem:[%s484_s3 + $0x78] sm:$0xff] }
  0x1a   :  { %265 = vmatmul.msk.bf16.gmra.mxu2 %vm94_vm0, %v273_v8  ;;  %267 = vmatmul.msk.bf16.gmra.mxu3 %vm94_vm0, %v275_v9 }
  0x86   :  { %v128_v11 = vpop.f32.mrf.mxu0  ;;  %v138_v13 = vpop.f32.mrf.mxu1 }
  0x87   :  { %v129_v15 = vadd.f32 %v351_v10, %v128_v11  ;;  %v139_v16 = vadd.f32 %v351_v10, %v138_v13 }
  0x89   :  { %v184_v17 = vadd.f32 %v168_v12, %v129_v15  ;;  %v188_v18 = vadd.f32 %v172_v14, %v139_v16 }
  0x8b   :  { %200 = vst.msk [vmem:[%s485_s4] sm:$0xff] %vm94_vm0, %v184_v17 }
  0x8c   :  { %204 = vst.msk [vmem:[%s485_s4 + $0x20] sm:$0xff] %vm94_vm0, %v188_v18 }
  0x8d   :  { %v148_v19 = vpop.f32.mrf.mxu2  ;;  %v158_v21 = vpop.f32.mrf.mxu3 }
  0x8e   :  { %v149_v23 = vadd.f32 %v351_v10, %v148_v19  ;;  %v159_v24 = vadd.f32 %v351_v10, %v158_v21  ;;  %v130_v25 = vpop.f32.mrf.mxu0  ;;  %v140_v27 = vpop.f32.mrf.mxu1 }
  0x8f   :  { %v131_v29 = vadd.f32 %v351_v10, %v130_v25  ;;  %v141_v30 = vadd.f32 %v351_v10, %v140_v27 }
  0x90   :  { %v192_v31 = vadd.f32 %v176_v20, %v149_v23  ;;  %v196_v32 = vadd.f32 %v180_v22, %v159_v24 }
  0x91   :  { %v185_v33 = vadd.f32 %v169_v26, %v131_v29  ;;  %v189_v34 = vadd.f32 %v173_v28, %v141_v30 }
  0x92   :  { %208 = vst.msk [vmem:[%s485_s4 + $0x40] sm:$0xff] %vm94_vm0, %v192_v31 }
  0x93   :  { %212 = vst.msk [vmem:[%s485_s4 + $0x60] sm:$0xff] %vm94_vm0, %v196_v32 }
  0x94   :  { %201 = vst.msk [vmem:[%s485_s4 + $0x8] sm:$0xff] %vm94_vm0, %v185_v33 }
  0x95   :  { %205 = vst.msk [vmem:[%s485_s4 + $0x28] sm:$0xff] %vm94_vm0, %v189_v34  ;;  %v150_v35 = vpop.f32.mrf.mxu2  ;;  %v160_v37 = vpop.f32.mrf.mxu3 }
  0x96   :  { %v151_v39 = vadd.f32 %v351_v10, %v150_v35  ;;  %v161_v40 = vadd.f32 %v351_v10, %v160_v37  ;;  %v133_v41 = vpop.f32.mrf.mxu0  ;;  %v143_v43 = vpop.f32.mrf.mxu1 }
  0x97   :  { %v134_v45 = vadd.f32 %v351_v10, %v133_v41  ;;  %v144_v46 = vadd.f32 %v351_v10, %v143_v43 }
  0x98   :  { %v193_v47 = vadd.f32 %v177_v36, %v151_v39  ;;  %v197_v48 = vadd.f32 %v181_v38, %v161_v40 }
  0x99   :  { %v186_v49 = vadd.f32 %v170_v42, %v134_v45  ;;  %v190_v50 = vadd.f32 %v174_v44, %v144_v46 }
  0x9a   :  { %209 = vst.msk [vmem:[%s485_s4 + $0x48] sm:$0xff] %vm94_vm0, %v193_v47 }
  0x9b   :  { %213 = vst.msk [vmem:[%s485_s4 + $0x68] sm:$0xff] %vm94_vm0, %v197_v48 }
  0x9c   :  { %202 = vst.msk [vmem:[%s485_s4 + $0x10] sm:$0xff] %vm94_vm0, %v186_v49 }
  0x9d   :  { %206 = vst.msk [vmem:[%s485_s4 + $0x30] sm:$0xff] %vm94_vm0, %v190_v50  ;;  %v153_v51 = vpop.f32.mrf.mxu2  ;;  %v163_v53 = vpop.f32.mrf.mxu3 }
  0x9e   :  { %v154_v55 = vadd.f32 %v351_v10, %v153_v51  ;;  %v164_v56 = vadd.f32 %v351_v10, %v163_v53  ;;  %v135_v57 = vpop.f32.mrf.mxu0  ;;  %v145_v59 = vpop.f32.mrf.mxu1 }
  0x9f   :  { %v136_v61 = vadd.f32 %v351_v10, %v135_v57  ;;  %v146_v62 = vadd.f32 %v351_v10, %v145_v59 }
  0xa0   :  { %v194_v63 = vadd.f32 %v178_v52, %v154_v55  ;;  %v198_v0 = vadd.f32 %v182_v54, %v164_v56 }
  0xa1   :  { %v187_v1 = vadd.f32 %v171_v58, %v136_v61  ;;  %v191_v2 = vadd.f32 %v175_v60, %v146_v62 }
  0xa2   :  { %210 = vst.msk [vmem:[%s485_s4 + $0x50] sm:$0xff] %vm94_vm0, %v194_v63 }
  0xa3   :  { %214 = vst.msk [vmem:[%s485_s4 + $0x70] sm:$0xff] %vm94_vm0, %v198_v0 }
  0xa4   :  { %203 = vst.msk [vmem:[%s485_s4 + $0x18] sm:$0xff] %vm94_vm0, %v187_v1 }
  0xa5   :  { %207 = vst.msk [vmem:[%s485_s4 + $0x38] sm:$0xff] %vm94_vm0, %v191_v2  ;;  %v155_v3 = vpop.f32.mrf.mxu2  ;;  %v165_v5 = vpop.f32.mrf.mxu3 }
  0xa6   :  { %v156_v7 = vadd.f32 %v351_v10, %v155_v3  ;;  %v166_v8 = vadd.f32 %v351_v10, %v165_v5 }
  0xa8   :  { %v195_v9 = vadd.f32 %v179_v4, %v156_v7  ;;  %v199_v11 = vadd.f32 %v183_v6, %v166_v8 }
  0xaa   :  { %211 = vst.msk [vmem:[%s485_s4 + $0x58] sm:$0xff] %vm94_vm0, %v195_v9 }
  0xab   :  { %215 = vst.msk [vmem:[%s485_s4 + $0x78] sm:$0xff] %vm94_vm0, %v199_v11 }

// kernel: transformer_forward_pallas.11
= control target key start
LH: loop header
LB: loop body
LE: loop exit
PB: predicated region body
PF: predicated region fallthrough
CT: control target
= control target key end

     0   :  { %s564_s6 = smov 0   ;;  %s630_s0 = inlined_call_operand.vmem [shape: bf16[128,96], index: 0, kind: input, shape index: {}]   ;;  %s631_s1 = inlined_call_operand.vmem [shape: bf16[128,32], index: 1, kind: output, shape index: {}]  }
   0x1 LB: > { %s469_s7 = sadd.s32 4294967295, %s538_s6   ;;  %p473_p0 = scmp.ge.s32.totalorder %s538_s6, 1  ;;  %s538_s6 = sphi %s564_s6, %s11_s6  }
   0x2   : > { %p86_p1 = scmp.lt.s32.totalorder %s538_s6, 17 }
   0x4   : > { %p87_p2 = pnand %p473_p0, %p86_p1 }
   0x5   : > { %p104_p3 = scmp.lt.s32.totalorder (!%p87_p2), %s469_s7, 15  ;;  %s540_s12 = smov (!%p87_p2), 96  }
   0x6   : > { %90 = sbr.rel (%p87_p2) target bundleno = 925 (0x39d), region = 24  ;;  %s541_s13 = smov (!%p87_p2), 88  }
   0x7   : > { %s542_s14 = smov (!%p87_p2), 120   ;;  %s543_s15 = smov (!%p87_p2), 72  }
   0x8   : > { %s544_s16 = smov (!%p87_p2), 104   ;;  %s545_s17 = smov (!%p87_p2), 64  }
   0x9   : > { %s546_s18 = smov (!%p87_p2), 80   ;;  %s547_s19 = smov (!%p87_p2), 112  }
   0xa   : > { %s548_s20 = smov (!%p87_p2), 56   ;;  %s549_s21 = smov (!%p87_p2), 40  }
   0xb   : > { %s633_s7 = smov (!%p104_p3, %s469_s7), 15  ;;  %vm122_vm0 = vcmask 64512   ;;  %vm162_vm1 = vcmask 1043456   ;;  %s550_s22 = smov 48   ;;  %vm183_vm2 = vcmask 60416   ;;  %vm260_vm3 = vcmask 126016  }
   0xc   : > { %s474_s8 = sshll.u32 %s633_s7, 2  ;;  %s551_s23 = smov 8   ;;  %vm337_vm4 = vcmask 191616   ;;  %vm414_vm5 = vcmask 257216  }
   0xd   : > { %s580_s11 = scalar_lea.vmem %s630_s0, %s474_s8  ;;  %s552_s24 = smov 24  }
   0xe   : > { %v113_v0 = vld [vmem:[%s580_s11] sm:$0xf]  ;;  %s111_s27 = scalar_lea.vmem %s631_s1, %s474_s8  ;;  %s553_s28 = smov 16  }
   0xf   : > { %v185_v1 = vld [vmem:[%s580_s11] sm:$0xf]  ;;  %v118_v2 = vunpack.c.l.b16 %v113_v0  ;;  %v114_v15 = vunpack.c.l.bf16 %v113_v0 }
  0x10   : > { %v193_v3 = vunpack.c.l.b16 %v185_v1  ;;  %v186_v4 = vunpack.c.l.bf16 %v185_v1  ;;  %v339_v9 = vld [vmem:[%s580_s11] sm:$0xf] }
  0x11   : > { %v119_v5 = vpack.c.b16 %v118_v2, %v118_v2  ;;  %v347_v10 = vunpack.c.l.b16 %v339_v9  ;;  %v340_v12 = vunpack.c.l.bf16 %v339_v9  ;;  %v115_v19 = vmul.f32 0.35355338, %v114_v15  ;;  %v262_v26 = vld [vmem:[%s580_s11] sm:$0xf] }
  0x12   : > { %v194_v6 = vpack.c.b16 %v193_v3, %v193_v3  ;;  %v187_v7 = vmul.f32 0.35355338, %v186_v4  ;;  %v270_v27 = vunpack.c.l.b16 %v262_v26  ;;  %v263_v28 = vunpack.c.l.bf16 %v262_v26 }
  0x13   : > { %120 = vrot.lane.b32.xlu0 %v119_v5, %s540_s12  ;;  %v348_v11 = vpack.c.b16 %v347_v10, %v347_v10  ;;  %v341_v13 = vmul.f32 0.35355338, %v340_v12  ;;  %v116_v21 = vpack.c.bf16 %v115_v19, %v115_v19  ;;  %157 = vrot.lane.b32.xlu2 %v119_v5, %s545_s17 }
  0x14   : > { %195 = vrot.lane.b32.xlu1 %v194_v6, %s541_s13  ;;  %v188_v8 = vpack.c.bf16 %v187_v7, %v187_v7  ;;  %v271_v29 = vpack.c.b16 %v270_v27, %v270_v27  ;;  %v264_v30 = vmul.f32 0.35355338, %v263_v28 }
  0x15   : > { %v342_v14 = vpack.c.bf16 %v341_v13, %v341_v13 }
  0x16   : > { %v265_v31 = vpack.c.bf16 %v264_v30, %v264_v30 }
  0x1b   : > { %272 = vrot.lane.b32.xlu2 %v271_v29, %s546_s18 }
  0x1c   : > { %190 = vrot.lane.b32.xlu1 %v188_v8, %s542_s14 }
  0x23   : > { %267 = vrot.lane.b32.xlu2 %v265_v31, %s547_s19 }
  0x24   : > { %349 = vrot.lane.b32.xlu1 %v348_v11, %s543_s15 }
  0x2c   : > { %344 = vrot.lane.b32.xlu1 %v342_v14, %s544_s16 }
  0x34   : > { %231 = vrot.lane.b32.xlu1 %v194_v6, %s548_s20 }
  0x6d   : > { %v158_v39 = vpop.permute.xlu2 %157 }
  0x6e   : > { %v164_v41 = vsel %vm162_vm1, %v158_v39, 0 }
  0x6f   : > { %173 = vmatpush.bf16.msra.mxu1 %v164_v41 }
  0x75   : > { %v273_v42 = vpop.permute.xlu2 %272 }
  0x76   : > { %v278_v44 = vsel %vm122_vm0, %v273_v42, 0 }
  0x77   : > { %287 = vmatpush.bf16.xpose.msrb.mxu1 %v278_v44 }
  0x7d   : > { %v268_v50 = vpop.permute.xlu2 %267 }
  0x85   : > { %v121_v16 = vpop.permute.xlu0 %120 }
  0x86   : > { %v196_v17 = vpop.permute.xlu1 %195  ;;  %v127_v18 = vsel %vm122_vm0, %v121_v16, 0 }
  0x87   : > { %v201_v20 = vsel %vm122_vm0, %v196_v17, 0  ;;  %136 = vmatpush.bf16.xpose.msra.mxu0 %v127_v18 }
  0x88   : > { %210 = vmatpush.bf16.xpose.msra.mxu2 %v201_v20 }
  0x8e   : > { %v191_v22 = vpop.permute.xlu1 %190  ;;  %476 = vmatmul.msk.bf16.vlgmr.msra.gmra.mxu0 %vm122_vm0, %v116_v21 }
  0x8f   : > { %478 = vmatmul.msk.bf16.vlgmr.msra.gmra.mxu2 %vm122_vm0, %v191_v22 }
  0x96   : > { %v350_v23 = vpop.permute.xlu1 %349 }
  0x97   : > { %v355_v24 = vsel %vm122_vm0, %v350_v23, 0 }
  0x98   : > { %364 = vmatpush.bf16.xpose.msrb.mxu0 %v355_v24 }
  0x9e   : > { %v345_v25 = vpop.permute.xlu1 %344 }
  0x9f   : > { %482 = vmatmul.msk.bf16.vlgmr.msrb.gmra.mxu0 %vm122_vm0, %v345_v25 }
  0xa6   : > { %v232_v55 = vpop.permute.xlu1 %231 }
  0xa7   : > { %v237_v56 = vsel %vm162_vm1, %v232_v55, 0 }
  0xa8   : > { %246 = vmatpush.bf16.msra.mxu3 %v237_v56 }
 0x10b   : > { %v138_v32 = vpop.f32.mrf.mxu0 }
 0x10c   : > { %v142_v33 = vsel %vm122_vm0, %v138_v32, -inf }
 0x10d   : > { %143 = vmax.xlane.f32.xlu0 %v142_v33 }
 0x112   : > { %v212_v34 = vpop.f32.mrf.mxu2 }
 0x113   : > { %v140_v35 = vpop.f32.mrf.mxu0  ;;  %v216_v37 = vsel %vm122_vm0, %v212_v34, -inf }
 0x114   : > { %217 = vmax.xlane.f32.xlu2 %v216_v37 }
 0x11a   : > { %v214_v36 = vpop.f32.mrf.mxu2 }
 0x11c   : > { %v366_v38 = vpop.f32.mrf.mxu0 }
 0x11d   : > { %v370_v40 = vsel %vm122_vm0, %v366_v38, -inf }
 0x11e   : > { %371 = vmax.xlane.f32.xlu0 %v370_v40 }
 0x124   : > { %v368_v43 = vpop.f32.mrf.mxu0 }
 0x12c   : > { %385 = vrot.lane.b32.xlu2 %v348_v11, %s549_s21 }
 0x132   : > { %308 = vrot.lane.b32.xlu0 %v271_v29, %s550_s22 }
 0x180   : > { %v597_v45 = vpop.xlane.xlu0 %143 }
 0x181   : > { %v148_v46 = vsub.f32 %v138_v32, %v597_v45  ;;  %v145_v41 = vsub.f32 -inf, %v597_v45 }
 0x183   : > { %v149_v47 = vmul.f32 1.442695, %v148_v46  ;;  %v146_v43 = vmul.f32 1.442695, %v145_v41 }
 0x185   : > { %508 = vpow2.f32 %v149_v47 }
 0x187   : > { %v218_v51 = vpop.xlane.xlu2 %217 }
 0x188   : > { %v222_v52 = vsub.f32 %v212_v34, %v218_v51  ;;  %v219_v8 = vsub.f32 -inf, %v218_v51 }
 0x18a   : > { %v223_v53 = vmul.f32 1.442695, %v222_v52  ;;  %v220_v9 = vmul.f32 1.442695, %v219_v8 }
 0x18b   : > { %v600_v48 = vpop.eup %508 }
 0x18c   : > { %v156_v49 = vpack.c.bf16 %v600_v48, %v600_v48  ;;  %510 = vpow2.f32 %v223_v53 }
 0x18e   : > { %477 = vmatmul.msk.bf16.vlgmr.msra.gmra.mxu1 %vm122_vm0, %v156_v49 }
 0x18f   : > { %v386_v58 = vpop.permute.xlu2 %385 }
 0x190   : > { %v391_v60 = vsel %vm162_vm1, %v386_v58, 0 }
 0x191   : > { %400 = vmatpush.bf16.msrb.mxu2 %v391_v60  ;;  %v372_v61 = vpop.xlane.xlu0 %371 }
 0x192   : > { %v511_v54 = vpop.eup %510  ;;  %v376_v62 = vsub.f32 %v366_v38, %v372_v61  ;;  %v373_v19 = vsub.f32 -inf, %v372_v61  ;;  %v152_v38 = vsel %vm122_vm0, %v600_v48, 0.0 }
 0x193   : > { %v230_v57 = vpack.c.bf16 %v511_v54, %v511_v54  ;;  %v226_v59 = vsel %vm122_vm0, %v511_v54, 0.0 }
 0x194   : > { %227 = vadd.xlane.f32.xlu0 %v226_v59  ;;  %v377_v63 = vmul.f32 1.442695, %v376_v62  ;;  %v374_v21 = vmul.f32 1.442695, %v373_v19 }
 0x195   : > { %479 = vmatmul.msk.bf16.vlgmr.msra.gmra.mxu3 %vm122_vm0, %v230_v57 }
 0x196   : > { %512 = vpow2.f32 %v377_v63 }
 0x197   : > { %514 = vpow2.f32 %v220_v9 }
 0x19c   : > { %v513_v0 = vpop.eup %512 }
 0x19d   : > { %v384_v1 = vpack.c.bf16 %v513_v0, %v513_v0  ;;  %v380_v2 = vsel %vm122_vm0, %v513_v0, 0.0  ;;  %v515_v11 = vpop.eup %514 }
 0x19e   : > { %480 = vmatmul.msk.bf16.vlgmr.msrb.gmra.mxu1 %vm122_vm0, %v268_v50  ;;  %381 = vadd.xlane.f32.xlu2 %v380_v2  ;;  %v225_v12 = vmul.f32 0.0, %v515_v11 }
 0x19f   : > { %483 = vmatmul.msk.bf16.vlgmr.msrb.gmra.mxu2 %vm122_vm0, %v384_v1 }
 0x1a4   : > { %v309_v10 = vpop.permute.xlu0 %308 }
 0x1a5   : > { %v314_v22 = vsel %vm162_vm1, %v309_v10, 0 }
 0x1a6   : > { %323 = vmatpush.bf16.msrb.mxu3 %v314_v22 }
 0x207   : > { %v228_v13 = vpop.xlane.xlu0 %227 }
 0x208   : > { %v229_v14 = vadd.f32 %v228_v13, %v225_v12 }
 0x20a   : > { %516 = vrcp.f32 %v229_v14 }
 0x20b   : > { %v612_v3 = vpop.f32.mrf.mxu1  ;;  %518 = vpow2.f32 %v374_v21 }
 0x210   : > { %v517_v15 = vpop.eup %516 }
 0x211   : > { %v519_v23 = vpop.eup %518  ;;  %v382_v25 = vpop.xlane.xlu2 %381 }
 0x212   : > { %v379_v24 = vmul.f32 0.0, %v519_v23 }
 0x213   : > { %v177_v4 = vpop.f32.mrf.mxu1 }
 0x214   : > { %v383_v26 = vadd.f32 %v382_v25, %v379_v24 }
 0x216   : > { %520 = vrcp.f32 %v383_v26 }
 0x218   : > { %v248_v16 = vpop.f32.mrf.mxu3 }
 0x219   : > { %v252_v17 = vadd.f32 %v248_v16, %v225_v12 }
 0x21b   : > { %v289_v5 = vpop.f32.mrf.mxu1  ;;  %v254_v18 = vmul.f32 %v517_v15, %v252_v17 }
 0x21c   : > { %v293_v6 = vsel %vm122_vm0, %v289_v5, -inf  ;;  %v521_v27 = vpop.eup %520 }
 0x21d   : > { %294 = vmax.xlane.f32.xlu1 %v293_v6  ;;  %v255_v39 = vpack.c.bf16 %v254_v18, %v254_v18 }
 0x220   : > { %v250_v20 = vpop.f32.mrf.mxu3 }
 0x222   : > { %v402_v28 = vpop.f32.mrf.mxu2 }
 0x223   : > { %v291_v7 = vpop.f32.mrf.mxu1  ;;  %v406_v29 = vadd.f32 %v402_v28, %v379_v24 }
 0x225   : > { %v408_v30 = vmul.f32 %v521_v27, %v406_v29 }
 0x227   : > { %v409_v40 = vpack.c.bf16 %v408_v30, %v408_v30 }
 0x22a   : > { %v404_v31 = vpop.f32.mrf.mxu2 }
 0x290   : > { %v295_v32 = vpop.xlane.xlu1 %294 }
 0x291   : > { %v299_v33 = vsub.f32 %v289_v5, %v295_v32  ;;  %v296_v42 = vsub.f32 -inf, %v295_v32 }
 0x293   : > { %v300_v34 = vmul.f32 1.442695, %v299_v33  ;;  %v297_v44 = vmul.f32 1.442695, %v296_v42 }
 0x295   : > { %522 = vpow2.f32 %v300_v34 }
 0x296   : > { %524 = vpow2.f32 %v146_v43 }
 0x297   : > { %526 = vpow2.f32 %v297_v44 }
 0x29b   : > { %v523_v35 = vpop.eup %522 }
 0x29c   : > { %v303_v36 = vsel %vm122_vm0, %v523_v35, 0.0  ;;  %v307_v37 = vpack.c.bf16 %v523_v35, %v523_v35  ;;  %v525_v47 = vpop.eup %524 }
 0x29d   : > { %304 = vadd.xlane.f32.xlu1 %v303_v36  ;;  %v527_v49 = vpop.eup %526  ;;  %v151_v50 = vmul.f32 0.0, %v525_v47 }
 0x29e   : > { %481 = vmatmul.msk.bf16.vlgmr.msrb.gmra.mxu3 %vm122_vm0, %v307_v37  ;;  %v302_v48 = vmul.f32 0.0, %v527_v49 }
 0x29f   : > { %v179_v54 = vadd.f32 %v612_v3, %v151_v50 }
 0x2a5   : > { %153 = vadd.xlane.f32.xlu1 %v152_v38 }
 0x2be   : > { %257 = vrot.lane.b32.xlu1 %v255_v39, %s551_s23 }
 0x2c6   : > { %411 = vrot.lane.b32.xlu1 %v409_v40, %s552_s24 }
 0x310   : > { %v305_v46 = vpop.xlane.xlu1 %304 }
 0x311   : > { %v306_v52 = vadd.f32 %v305_v46, %v302_v48 }
 0x318   : > { %v154_v51 = vpop.xlane.xlu1 %153 }
 0x319   : > { %v155_v53 = vadd.f32 %v154_v51, %v151_v50 }
 0x31b   : > { %528 = vrcp.f32 %v155_v53 }
 0x31c   : > { %530 = vrcp.f32 %v306_v52 }
 0x321   : > { %v529_v55 = vpop.eup %528  ;;  %v325_v45 = vpop.f32.mrf.mxu3 }
 0x322   : > { %v181_v56 = vmul.f32 %v529_v55, %v179_v54  ;;  %v329_v57 = vadd.f32 %v325_v45, %v302_v48  ;;  %v531_v58 = vpop.eup %530 }
 0x324   : > { %v182_v59 = vpack.c.bf16 %v181_v56, %v181_v56  ;;  %v331_v60 = vmul.f32 %v531_v58, %v329_v57 }
 0x326   : > { %v332_v61 = vpack.c.bf16 %v331_v60, %v331_v60  ;;  %184 = vst.msk [vmem:[%s111_s27] sm:$0xf] %vm183_vm2, %v182_v59 }
 0x328   : > { %334 = vrot.lane.b32.xlu0 %v332_v61, %s553_s28 }
 0x329   : > { %v327_v62 = vpop.f32.mrf.mxu3 }
 0x330   : > { %v258_v63 = vpop.permute.xlu1 %257 }
 0x331   : > { %261 = vst.msk [vmem:[%s111_s27] sm:$0xf] %vm260_vm3, %v258_v63 }
 0x338   : > { %v412_v1 = vpop.permute.xlu1 %411 }
 0x39a   : > { %v335_v0 = vpop.permute.xlu0 %334 }
 0x39b   : > { %338 = vst.msk [vmem:[%s111_s27] sm:$0xf] %vm337_vm4, %v335_v0 }
 0x39c   : > { %415 = vst.msk [vmem:[%s111_s27] sm:$0xf] %vm414_vm5, %v412_v1 }
 0x39d PF: > { %s11_s6 = sadd.s32 1, %s538_s6  }
 0x39e   : > { %p8_p4 = scmp.ge.s32.totalorder %s11_s6, 18  }
 0x3a0   :  { %10 = sbr.rel (!%p8_p4) target bundleno = 1 (0x1), region = 54 }

// kernel: transformer_forward_pallas.13
= control target key start
LH: loop header
LB: loop body
LE: loop exit
PB: predicated region body
PF: predicated region fallthrough
CT: control target
= control target key end

     0   :  { %vm37_vm0 = vcmask 261120   ;;  %v1101_v32 = vmov 32.0   ;;  %s1907_s0 = inlined_call_operand.vmem [shape: f32[128,32], index: 0, kind: input, shape index: {}]   ;;  %s1908_s1 = inlined_call_operand.vmem [shape: f32[1,32], index: 1, kind: input, shape index: {}]   ;;  %s1909_s2 = inlined_call_operand.vmem [shape: f32[1,32], index: 2, kind: input, shape index: {}]   ;;  %s1910_s4 = inlined_call_operand.vmem [shape: f32[1,64], index: 4, kind: input, shape index: {}]   ;;  %s1911_s3 = inlined_call_operand.vmem [shape: bf16[32,64], index: 3, kind: input, shape index: {}]   ;;  %s1912_s5 = inlined_call_operand.vmem [shape: bf16[128,64], index: 5, kind: output, shape index: {}]  }
   0x1   :  { %v33_v0 = vld [vmem:[%s1907_s0 + $0x60] sm:$0xff]  ;;  %v1150_v6 = vld [vmem:[%s1907_s0 + $0x68] sm:$0xff]  ;;  %v1181_v14 = vld [vmem:[%s1907_s0 + $0x50] sm:$0xff]  ;;  %1035 = vrcp.f32 %v1101_v32 }
   0x2   :  { %v29_v1 = vld [vmem:[%s1907_s0 + $0x40] sm:$0xff]  ;;  %v74_v3 = vsel %vm37_vm0, %v33_v0, 0.0  ;;  %v1155_v7 = vld [vmem:[%s1907_s0 + $0x48] sm:$0xff]  ;;  %v77_v9 = vsel %vm37_vm0, %v1150_v6, 0.0  ;;  %v68_v17 = vsel %vm37_vm0, %v1181_v14, 0.0  ;;  %v1192_v18 = vld [vmem:[%s1907_s0 + $0x58] sm:$0xff] }
   0x3   :  { %v1141_v2 = vld [vmem:[%s1907_s0] sm:$0xff]  ;;  %v62_v4 = vsel %vm37_vm0, %v29_v1, 0.0  ;;  %75 = vadd.xlane.f32.xlu1 %v74_v3  ;;  %v1160_v8 = vld [vmem:[%s1907_s0 + $0x8] sm:$0xff]  ;;  %v65_v10 = vsel %vm37_vm0, %v1155_v7, 0.0  ;;  %v1197_v19 = vld [vmem:[%s1907_s0 + $0x70] sm:$0xff]  ;;  %v71_v21 = vsel %vm37_vm0, %v1192_v18, 0.0 }
   0x4   :  { %v38_v5 = vsel %vm37_vm0, %v1141_v2, 0.0  ;;  %63 = vadd.xlane.f32.xlu0 %v62_v4  ;;  %v41_v11 = vsel %vm37_vm0, %v1160_v8, 0.0  ;;  %v1171_v12 = vld [vmem:[%s1907_s0 + $0x20] sm:$0xff]  ;;  %v1176_v13 = vld [vmem:[%s1907_s0 + $0x28] sm:$0xff]  ;;  %v1202_v20 = vld [vmem:[%s1907_s0 + $0x78] sm:$0xff]  ;;  %v80_v22 = vsel %vm37_vm0, %v1197_v19, 0.0 }
   0x5   :  { %39 = vadd.xlane.f32.xlu2 %v38_v5  ;;  %v50_v15 = vsel %vm37_vm0, %v1171_v12, 0.0  ;;  %v53_v16 = vsel %vm37_vm0, %v1176_v13, 0.0  ;;  %v83_v23 = vsel %vm37_vm0, %v1202_v20, 0.0  ;;  %v1213_v24 = vld [vmem:[%s1907_s0 + $0x10] sm:$0xff]  ;;  %v1218_v25 = vld [vmem:[%s1907_s0 + $0x18] sm:$0xff] }
   0x6   :  { %v1223_v26 = vld [vmem:[%s1907_s0 + $0x30] sm:$0xff]  ;;  %v44_v27 = vsel %vm37_vm0, %v1213_v24, 0.0  ;;  %v47_v28 = vsel %vm37_vm0, %v1218_v25, 0.0  ;;  %v1234_v30 = vld [vmem:[%s1907_s0 + $0x38] sm:$0xff] }
   0x7   :  { %v56_v29 = vsel %vm37_vm0, %v1223_v26, 0.0  ;;  %v59_v31 = vsel %vm37_vm0, %v1234_v30, 0.0  ;;  %v1036_v33 = vpop.eup %1035 }
   0x8   :  { %v87_v34 = vmul.f32 32.0, %v1036_v33  ;;  %vm91_vm1 = vweird.f32 %v1036_v33 }
   0xa   :  { %v88_v35 = vsub.f32 1.0, %v87_v34 }
   0xb   :  { %78 = vadd.xlane.f32.xlu1 %v77_v9 }
   0xc   :  { %66 = vadd.xlane.f32.xlu0 %v65_v10  ;;  %v89_v36 = vmul.f32 %v1036_v33, %v88_v35 }
   0xd   :  { %42 = vadd.xlane.f32.xlu2 %v41_v11 }
   0xe   :  { %v90_v37 = vadd.f32 %v1036_v33, %v89_v36 }
  0x10   :  { %v1238_v38 = vsel %vm91_vm1, %v1036_v33, %v90_v37 }
  0x13   :  { %54 = vadd.xlane.f32.xlu1 %v53_v16 }
  0x14   :  { %51 = vadd.xlane.f32.xlu0 %v50_v15 }
  0x15   :  { %69 = vadd.xlane.f32.xlu2 %v68_v17 }
  0x1b   :  { %81 = vadd.xlane.f32.xlu1 %v80_v22 }
  0x1c   :  { %72 = vadd.xlane.f32.xlu0 %v71_v21 }
  0x1d   :  { %84 = vadd.xlane.f32.xlu2 %v83_v23 }
  0x23   :  { %48 = vadd.xlane.f32.xlu1 %v47_v28 }
  0x24   :  { %45 = vadd.xlane.f32.xlu0 %v44_v27 }
  0x25   :  { %57 = vadd.xlane.f32.xlu2 %v56_v29 }
  0x2c   :  { %60 = vadd.xlane.f32.xlu0 %v59_v31 }
  0x76   :  { %v76_v39 = vpop.xlane.xlu1 %75 }
  0x77   :  { %v64_v40 = vpop.xlane.xlu0 %63  ;;  %v105_v41 = vmul.f32 %v1238_v38, %v76_v39 }
  0x78   :  { %v101_v42 = vmul.f32 %v1238_v38, %v64_v40  ;;  %v40_v43 = vpop.xlane.xlu2 %39 }
  0x79   :  { %v1242_v44 = vsub.f32 %v33_v0, %v105_v41  ;;  %v93_v56 = vmul.f32 %v1238_v38, %v40_v43 }
  0x7a   :  { %v1244_v45 = vsub.f32 %v29_v1, %v101_v42 }
  0x7b   :  { %v137_v47 = vmul.f32 %v1242_v44, %v1242_v44  ;;  %v1272_v63 = vsub.f32 %v1141_v2, %v93_v56 }
  0x7c   :  { %v133_v46 = vmul.f32 %v1244_v45, %v1244_v45 }
  0x7d   :  { %v177_v49 = vsel %vm37_vm0, %v137_v47, 0.0  ;;  %v125_v10 = vmul.f32 %v1272_v63, %v1272_v63 }
  0x7e   :  { %v165_v48 = vsel %vm37_vm0, %v133_v46, 0.0  ;;  %v79_v50 = vpop.xlane.xlu1 %78  ;;  %178 = vadd.xlane.f32.xlu0 %v177_v49 }
  0x7f   :  { %v67_v51 = vpop.xlane.xlu0 %66  ;;  %166 = vadd.xlane.f32.xlu1 %v165_v48  ;;  %v106_v52 = vmul.f32 %v1238_v38, %v79_v50 }
  0x80   :  { %v102_v53 = vmul.f32 %v1238_v38, %v67_v51  ;;  %v43_v54 = vpop.xlane.xlu2 %42 }
  0x81   :  { %v94_v55 = vmul.f32 %v1238_v38, %v43_v54  ;;  %v1257_v57 = vsub.f32 %v1150_v6, %v106_v52 }
  0x82   :  { %v1260_v58 = vsub.f32 %v1155_v7, %v102_v53 }
  0x83   :  { %v1263_v59 = vsub.f32 %v1160_v8, %v94_v55  ;;  %v138_v60 = vmul.f32 %v1257_v57, %v1257_v57 }
  0x84   :  { %v134_v61 = vmul.f32 %v1260_v58, %v1260_v58 }
  0x85   :  { %v126_v62 = vmul.f32 %v1263_v59, %v1263_v59  ;;  %v180_v0 = vsel %vm37_vm0, %v138_v60, 0.0 }
  0x86   :  { %v168_v1 = vsel %vm37_vm0, %v134_v61, 0.0  ;;  %v55_v5 = vpop.xlane.xlu1 %54 }
  0x87   :  { %v52_v3 = vpop.xlane.xlu0 %51  ;;  %181 = vadd.xlane.f32.xlu1 %v180_v0  ;;  %169 = vadd.xlane.f32.xlu2 %v168_v1  ;;  %v144_v4 = vsel %vm37_vm0, %v126_v62, 0.0  ;;  %v98_v8 = vmul.f32 %v1238_v38, %v55_v5 }
  0x88   :  { %v97_v6 = vmul.f32 %v1238_v38, %v52_v3  ;;  %145 = vadd.xlane.f32.xlu0 %v144_v4  ;;  %v70_v7 = vpop.xlane.xlu2 %69 }
  0x89   :  { %v103_v9 = vmul.f32 %v1238_v38, %v70_v7  ;;  %v1289_v15 = vsub.f32 %v1176_v13, %v98_v8 }
  0x8a   :  { %v1281_v2 = vsub.f32 %v1171_v12, %v97_v6  ;;  %v141_v12 = vsel %vm37_vm0, %v125_v10, 0.0 }
  0x8b   :  { %v1286_v11 = vsub.f32 %v1181_v14, %v103_v9  ;;  %v130_v29 = vmul.f32 %v1289_v15, %v1289_v15 }
  0x8c   :  { %v129_v16 = vmul.f32 %v1281_v2, %v1281_v2 }
  0x8d   :  { %v135_v17 = vmul.f32 %v1286_v11, %v1286_v11  ;;  %v156_v36 = vsel %vm37_vm0, %v130_v29, 0.0 }
  0x8e   :  { %v153_v21 = vsel %vm37_vm0, %v129_v16, 0.0  ;;  %v82_v14 = vpop.xlane.xlu1 %81 }
  0x8f   :  { %v73_v22 = vpop.xlane.xlu0 %72  ;;  %154 = vadd.xlane.f32.xlu1 %v153_v21  ;;  %142 = vadd.xlane.f32.xlu2 %v141_v12  ;;  %v171_v23 = vsel %vm37_vm0, %v135_v17, 0.0  ;;  %v107_v28 = vmul.f32 %v1238_v38, %v82_v14  ;;  %v1023_v17 = vld [vmem:[%s1911_s3] sm:$0xff] }
  0x90   :  { %v104_v27 = vmul.f32 %v1238_v38, %v73_v22  ;;  %172 = vadd.xlane.f32.xlu0 %v171_v23  ;;  %v85_v13 = vpop.xlane.xlu2 %84 }
  0x91   :  { %v108_v31 = vmul.f32 %v1238_v38, %v85_v13  ;;  %v1310_v34 = vsub.f32 %v1197_v19, %v107_v28 }
  0x92   :  { %v1304_v32 = vsub.f32 %v1192_v18, %v104_v27 }
  0x93   :  { %v1307_v33 = vsub.f32 %v1202_v20, %v108_v31  ;;  %v139_v43 = vmul.f32 %v1310_v34, %v1310_v34 }
  0x94   :  { %v136_v35 = vmul.f32 %v1304_v32, %v1304_v32 }
  0x95   :  { %v140_v37 = vmul.f32 %v1307_v33, %v1307_v33  ;;  %v183_v51 = vsel %vm37_vm0, %v139_v43, 0.0 }
  0x96   :  { %v174_v39 = vsel %vm37_vm0, %v136_v35, 0.0  ;;  %v49_v20 = vpop.xlane.xlu1 %48 }
  0x97   :  { %175 = vadd.xlane.f32.xlu1 %v174_v39  ;;  %v46_v40 = vpop.xlane.xlu0 %45  ;;  %157 = vadd.xlane.f32.xlu2 %v156_v36  ;;  %v186_v18 = vsel %vm37_vm0, %v140_v37, 0.0  ;;  %v96_v42 = vmul.f32 %v1238_v38, %v49_v20 }
  0x98   :  { %v95_v41 = vmul.f32 %v1238_v38, %v46_v40  ;;  %187 = vadd.xlane.f32.xlu0 %v186_v18  ;;  %v58_v19 = vpop.xlane.xlu2 %57 }
  0x99   :  { %v99_v46 = vmul.f32 %v1238_v38, %v58_v19  ;;  %v1331_v49 = vsub.f32 %v1218_v25, %v96_v42 }
  0x9a   :  { %v1325_v47 = vsub.f32 %v1213_v24, %v95_v41 }
  0x9b   :  { %v1328_v48 = vsub.f32 %v1223_v26, %v99_v46  ;;  %v128_v25 = vmul.f32 %v1331_v49, %v1331_v49 }
  0x9c   :  { %v127_v50 = vmul.f32 %v1325_v47, %v1325_v47 }
  0x9d   :  { %v131_v52 = vmul.f32 %v1328_v48, %v1328_v48  ;;  %v150_v60 = vsel %vm37_vm0, %v128_v25, 0.0 }
  0x9e   :  { %v147_v53 = vsel %vm37_vm0, %v127_v50, 0.0 }
  0x9f   :  { %148 = vadd.xlane.f32.xlu1 %v147_v53  ;;  %v61_v54 = vpop.xlane.xlu0 %60  ;;  %184 = vadd.xlane.f32.xlu2 %v183_v51  ;;  %v159_v24 = vsel %vm37_vm0, %v131_v52, 0.0 }
  0xa0   :  { %v100_v26 = vmul.f32 %v1238_v38, %v61_v54  ;;  %160 = vadd.xlane.f32.xlu0 %v159_v24 }
  0xa2   :  { %v1344_v55 = vsub.f32 %v1234_v30, %v100_v26  ;;  %v1024_v30 = vld [vmem:[%s1911_s3 + $0x8] sm:$0xff] }
  0xa3   :  { %1026 = vmatpush.bf16.msra.mxu2 %v1024_v30  ;;  %1027 = vmatpush.bf16.msra.mxu3 %v1024_v30 }
  0xa4   :  { %v132_v56 = vmul.f32 %v1344_v55, %v1344_v55  ;;  %495 = vmatpush.bf16.msra.mxu0 %v1024_v30  ;;  %1025 = vmatpush.bf16.msra.mxu1 %v1024_v30 }
  0xa6   :  { %v162_v61 = vsel %vm37_vm0, %v132_v56, 0.0 }
  0xa7   :  { %163 = vadd.xlane.f32.xlu1 %v162_v61  ;;  %151 = vadd.xlane.f32.xlu2 %v150_v60 }
  0xa8   :  { %1029 = vmatpush.bf16.msra.mxu2 %v1023_v17  ;;  %1030 = vmatpush.bf16.msra.mxu3 %v1023_v17 }
  0xa9   :  { %496 = vmatpush.bf16.msra.mxu0 %v1023_v17  ;;  %1028 = vmatpush.bf16.msra.mxu1 %v1023_v17 }
  0xf1   :  { %v179_v0 = vpop.xlane.xlu0 %178 }
  0xf2   :  { %v167_v62 = vpop.xlane.xlu1 %166  ;;  %v201_v3 = vmul.f32 %v179_v0, %v1238_v38 }
  0xf3   :  { %v197_v1 = vmul.f32 %v167_v62, %v1238_v38 }
  0xf4   :  { %v217_v5 = vadd.f32 1e-05, %v201_v3 }
  0xf5   :  { %v213_v4 = vadd.f32 1e-05, %v197_v1 }
  0xf6   :  { %vm347_vm6 = vweird.f32 %v217_v5 }
  0xf7   :  { %1037 = vrsqrt.f32 %v213_v4  ;;  %vm307_vm4 = vweird.f32 %v213_v4 }
  0xf8   :  { %1039 = vrsqrt.f32 %v217_v5 }
  0xfa   :  { %v182_v6 = vpop.xlane.xlu1 %181  ;;  %v170_v7 = vpop.xlane.xlu2 %169 }
  0xfb   :  { %v202_v8 = vmul.f32 %v182_v6, %v1238_v38  ;;  %v146_v9 = vpop.xlane.xlu0 %145  ;;  %v198_v10 = vmul.f32 %v170_v7, %v1238_v38 }
  0xfc   :  { %v190_v16 = vmul.f32 %v146_v9, %v1238_v38 }
  0xfd   :  { %v1361_v21 = vpop.eup %1037  ;;  %v1363_v12 = vadd.f32 1e-05, %v202_v8  ;;  %v1365_v22 = vadd.f32 1e-05, %v198_v10 }
  0xfe   :  { %v1367_v23 = vpop.eup %1039  ;;  %v302_v14 = vmul.f32 %v1361_v21, %v213_v4  ;;  %v1370_v27 = vadd.f32 1e-05, %v190_v16  ;;  %vm308_vm2 = vweird.f32 %v1361_v21 }
  0xff   :  { %v342_v13 = vmul.f32 %v1367_v23, %v217_v5  ;;  %1041 = vrsqrt.f32 %v1363_v12  ;;  %vm348_vm3 = vweird.f32 %v1367_v23  ;;  %vm1404_vm5 = vmor %vm307_vm4, %vm308_vm2  ;;  %vm357_vm8 = vweird.f32 %v1363_v12 }
 0x100   :  { %v303_v28 = vmul.f32 %v1361_v21, %v302_v14  ;;  %1043 = vrsqrt.f32 %v1370_v27  ;;  %vm1411_vm7 = vmor %vm347_vm6, %vm348_vm3  ;;  %vm237_vm9 = vweird.f32 %v1370_v27  ;;  %vm317_vm11 = vweird.f32 %v1365_v22 }
 0x101   :  { %v343_v29 = vmul.f32 %v1367_v23, %v342_v13  ;;  %1045 = vrsqrt.f32 %v1365_v22 }
 0x102   :  { %v304_v31 = vmul.f32 0.5, %v303_v28  ;;  %v155_v35 = vpop.xlane.xlu1 %154  ;;  %v143_v36 = vpop.xlane.xlu2 %142 }
 0x103   :  { %v344_v37 = vmul.f32 0.5, %v343_v29  ;;  %v193_v39 = vmul.f32 %v155_v35, %v1238_v38  ;;  %v173_v40 = vpop.xlane.xlu0 %172  ;;  %v189_v18 = vmul.f32 %v143_v36, %v1238_v38 }
 0x104   :  { %v305_v20 = vsub.f32 1.5, %v304_v31  ;;  %v199_v41 = vmul.f32 %v173_v40, %v1238_v38  ;;  %v1440_v31 = vld [vmem:[%s1908_s1] ss:$0 sm:$0xff] }
 0x105   :  { %v1381_v19 = vpop.eup %1041  ;;  %v345_v42 = vsub.f32 1.5, %v344_v37  ;;  %v1384_v43 = vadd.f32 1e-05, %v193_v39  ;;  %v1393_v52 = vadd.f32 1e-05, %v189_v18 }
 0x106   :  { %v1386_v46 = vpop.eup %1043  ;;  %v352_v50 = vmul.f32 %v1381_v19, %v1363_v12  ;;  %v1391_v51 = vadd.f32 1e-05, %v199_v41  ;;  %v306_v54 = vmul.f32 %v1361_v21, %v305_v20  ;;  %vm358_vm12 = vweird.f32 %v1381_v19 }
 0x107   :  { %v1046_v53 = vpop.eup %1045  ;;  %v346_v24 = vmul.f32 %v1367_v23, %v345_v42  ;;  %v232_v26 = vmul.f32 %v1386_v46, %v1370_v27  ;;  %1047 = vrsqrt.f32 %v1384_v43  ;;  %vm238_vm14 = vweird.f32 %v1386_v46  ;;  %vm1474_vm2 = vmor %vm357_vm8, %vm358_vm12 }
 0x108   :  { %v353_v25 = vmul.f32 %v1381_v19, %v352_v50  ;;  %v312_v56 = vmul.f32 %v1046_v53, %v1365_v22  ;;  %1049 = vrsqrt.f32 %v1391_v51  ;;  %v310_v30 = vsel %vm1404_vm5, %v1361_v21, %v306_v54  ;;  %vm1496_vm5 = vmor %vm237_vm9, %vm238_vm14 }
 0x109   :  { %v233_v61 = vmul.f32 %v1386_v46, %v232_v26  ;;  %v350_v5 = vsel %vm1411_vm7, %v1367_v23, %v346_v24  ;;  %1051 = vrsqrt.f32 %v1393_v52  ;;  %vm318_vm10 = vweird.f32 %v1046_v53 }
 0x10a   :  { %v354_v0 = vmul.f32 0.5, %v353_v25  ;;  %v313_v1 = vmul.f32 %v1046_v53, %v312_v56  ;;  %v176_v3 = vpop.xlane.xlu1 %175  ;;  %v158_v4 = vpop.xlane.xlu2 %157  ;;  %v389_v13 = vmul.f32 %v310_v30, %v1244_v45  ;;  %v393_v28 = vmul.f32 %v350_v5, %v1242_v44  ;;  %vm319_vm13 = vmor %vm317_vm11, %vm318_vm10 }
 0x10b   :  { %v188_v6 = vpop.xlane.xlu0 %187  ;;  %v234_v7 = vmul.f32 0.5, %v233_v61  ;;  %v200_v9 = vmul.f32 %v176_v3, %v1238_v38  ;;  %v194_v21 = vmul.f32 %v158_v4, %v1238_v38  ;;  %vm267_vm15 = vweird.f32 %v1384_v43 }
 0x10c   :  { %v314_v8 = vmul.f32 0.5, %v313_v1  ;;  %v204_v10 = vmul.f32 %v188_v6, %v1238_v38  ;;  %v355_v17 = vsub.f32 1.5, %v354_v0  ;;  %vm327_vm1 = vweird.f32 %v1391_v51 }
 0x10d   :  { %v1425_v16 = vpop.eup %1047  ;;  %v1435_v29 = vadd.f32 1e-05, %v200_v9  ;;  %v235_v36 = vsub.f32 1.5, %v234_v7  ;;  %v1454_v18 = vadd.f32 1e-05, %v194_v21  ;;  %v409_v25 = vmul.f32 %v1440_v31, %v389_v13 }
 0x10e   :  { %v315_v14 = vsub.f32 1.5, %v314_v8  ;;  %v262_v23 = vmul.f32 %v1425_v16, %v1384_v43  ;;  %v1442_v35 = vpop.eup %1049  ;;  %v1445_v40 = vadd.f32 1e-05, %v204_v10  ;;  %v356_v44 = vmul.f32 %v1381_v19, %v355_v17 }
 0x10f   :  { %v1447_v45 = vpop.eup %1051  ;;  %v322_v22 = vmul.f32 %v1442_v35, %v1391_v51  ;;  %1053 = vrsqrt.f32 %v1435_v29  ;;  %v1479_v56 = vmul.f32 %v1386_v46, %v235_v36  ;;  %vm227_vm3 = vweird.f32 %v1393_v52 }
 0x110   :  { %v316_v37 = vmul.f32 %v1046_v53, %v315_v14  ;;  %v263_v39 = vmul.f32 %v1425_v16, %v262_v23  ;;  %v222_v42 = vmul.f32 %v1447_v45, %v1393_v52  ;;  %1055 = vrsqrt.f32 %v1445_v40 }
 0x111   :  { %v323_v54 = vmul.f32 %v1442_v35, %v322_v22  ;;  %v413_v62 = vmul.f32 %v1440_v31, %v393_v28  ;;  %v360_v12 = vsel %vm1474_vm2, %v1381_v19, %v356_v44  ;;  %1057 = vrsqrt.f32 %v1454_v18 }
 0x112   :  { %v320_v20 = vsel %vm319_vm13, %v1046_v53, %v316_v37  ;;  %v264_v41 = vmul.f32 0.5, %v263_v39  ;;  %v149_v24 = vpop.xlane.xlu1 %148  ;;  %v1468_v53 = vld [vmem:[%s1909_s2] ss:$0 sm:$0xff]  ;;  %v223_v60 = vmul.f32 %v1447_v45, %v222_v42  ;;  %v185_v61 = vpop.xlane.xlu2 %184  ;;  %vm268_vm4 = vweird.f32 %v1425_v16 }
 0x113   :  { %v390_v50 = vmul.f32 %v320_v20, %v1260_v58  ;;  %v161_v26 = vpop.xlane.xlu0 %160  ;;  %v324_v1 = vmul.f32 0.5, %v323_v54  ;;  %v191_v4 = vmul.f32 %v149_v24, %v1238_v38  ;;  %v203_v6 = vmul.f32 %v185_v61, %v1238_v38  ;;  %vm1538_vm9 = vmor %vm267_vm15, %vm268_vm4 }
 0x114   :  { %v265_v0 = vsub.f32 1.5, %v264_v41  ;;  %v224_v3 = vmul.f32 0.5, %v223_v60  ;;  %v195_v30 = vmul.f32 %v161_v26, %v1238_v38  ;;  %v429_v8 = vadd.f32 %v1468_v53, %v409_v25 }
 0x115   :  { %v325_v19 = vsub.f32 1.5, %v324_v1  ;;  %v410_v7 = vmul.f32 %v1440_v31, %v390_v50  ;;  %v394_v9 = vmul.f32 %v360_v12, %v1257_v57  ;;  %v240_v10 = vsel %vm1496_vm5, %v1386_v46, %v1479_v56  ;;  %v1510_v21 = vpop.eup %1053 }
 0x116   :  { %v225_v17 = vsub.f32 1.5, %v224_v3  ;;  %v1508_v27 = vadd.f32 1e-05, %v191_v4  ;;  %v1513_v14 = vmul.f32 %v1425_v16, %v265_v0  ;;  %vm328_vm6 = vweird.f32 %v1442_v35  ;;  %v1519_v57 = vpop.eup %1055 }
 0x117   :  { %vm228_vm7 = vweird.f32 %v1447_v45  ;;  %v1517_v23 = vadd.f32 1e-05, %v195_v30  ;;  %v332_v28 = vmul.f32 %v1510_v21, %v1435_v29  ;;  %v1525_v36 = vadd.f32 1e-05, %v203_v6  ;;  %v1527_v37 = vpop.eup %1057  ;;  %vm1567_vm14 = vmor %vm327_vm1, %vm328_vm6 }
 0x118   :  { %v226_v13 = vmul.f32 %v1447_v45, %v225_v17  ;;  %1059 = vrsqrt.f32 %v1508_v27  ;;  %v326_v39 = vmul.f32 %v1442_v35, %v325_v19  ;;  %vm337_vm8 = vweird.f32 %v1435_v29  ;;  %vm1556_vm12 = vmor %vm227_vm3, %vm228_vm7 }
 0x119   :  { %v372_v44 = vmul.f32 %v1519_v57, %v1445_v40  ;;  %v430_v22 = vadd.f32 %v1468_v53, %v410_v7  ;;  %v333_v41 = vmul.f32 %v1510_v21, %v332_v28  ;;  %vm377_vm10 = vweird.f32 %v1445_v40 }
 0x11a   :  { %v272_v42 = vmul.f32 %v1527_v37, %v1454_v18  ;;  %vm277_vm11 = vweird.f32 %v1454_v18  ;;  %v414_v50 = vmul.f32 %v1440_v31, %v394_v9  ;;  %v270_v43 = vsel %vm1538_vm9, %v1425_v16, %v1513_v14  ;;  %v164_v26 = vpop.xlane.xlu1 %163  ;;  %v152_v60 = vpop.xlane.xlu2 %151 }
 0x11b   :  { %vm338_vm13 = vweird.f32 %v1510_v21  ;;  %v373_v24 = vmul.f32 %v1519_v57, %v372_v44  ;;  %1061 = vrsqrt.f32 %v1517_v23  ;;  %v230_v52 = vsel %vm1556_vm12, %v1447_v45, %v226_v13 }
 0x11c   :  { %v334_v25 = vmul.f32 0.5, %v333_v41  ;;  %v273_v58 = vmul.f32 %v1527_v37, %v272_v42  ;;  %1063 = vrsqrt.f32 %v1525_v36  ;;  %v330_v61 = vsel %vm1567_vm14, %v1442_v35, %v326_v39  ;;  %vm1597_vm1 = vmor %vm337_vm8, %vm338_vm13 }
 0x11d   :  { %v374_v12 = vmul.f32 0.5, %v373_v24  ;;  %v441_v51 = vpack.c.bf16 %v430_v22, %v429_v8  ;;  %v433_v0 = vadd.f32 %v1468_v53, %v413_v62  ;;  %v434_v45 = vadd.f32 %v1468_v53, %v414_v50 }
 0x11e   :  { %v1580_v1 = vpop.eup %1059  ;;  %v335_v3 = vsub.f32 1.5, %v334_v25  ;;  %v274_v4 = vmul.f32 0.5, %v273_v58  ;;  %v196_v30 = vmul.f32 %v164_v26, %v1238_v38  ;;  %v381_v19 = vmul.f32 %v230_v52, %v1272_v63 }
 0x11f   :  { %v375_v6 = vsub.f32 1.5, %v374_v12  ;;  %v242_v7 = vmul.f32 %v1580_v1, %v1508_v27  ;;  %1019 = vmatmul.msk.bf16.vlgmr.msra.gmra.mxu2 %vm37_vm0, %v441_v51  ;;  %v192_v35 = vmul.f32 %v152_v60, %v1238_v38  ;;  %vm278_vm15 = vweird.f32 %v1527_v37 }
 0x120   :  { %v336_v62 = vmul.f32 %v1510_v21, %v335_v3  ;;  %v275_v8 = vsub.f32 1.5, %v274_v4  ;;  %v443_v9 = vpack.c.bf16 %v434_v45, %v433_v0  ;;  %vm378_vm2 = vweird.f32 %v1519_v57  ;;  %vm279_vm3 = vmor %vm277_vm11, %vm278_vm15 }
 0x121   :  { %v1591_v17 = vpop.eup %1061  ;;  %v376_v14 = vmul.f32 %v1519_v57, %v375_v6  ;;  %v243_v38 = vmul.f32 %v1580_v1, %v242_v7  ;;  %v1604_v13 = vadd.f32 1e-05, %v196_v30  ;;  %v1613_v22 = vadd.f32 1e-05, %v192_v35  ;;  %vm1636_vm4 = vmor %vm377_vm10, %vm378_vm2 }
 0x122   :  { %v1064_v28 = vpop.eup %1063  ;;  %v340_v39 = vsel %vm1597_vm1, %v1510_v21, %v336_v62  ;;  %v276_v44 = vmul.f32 %v1527_v37, %v275_v8  ;;  %v282_v29 = vmul.f32 %v1591_v17, %v1517_v23  ;;  %1021 = vmatmul.msk.bf16.vlgmr.msra.gmra.mxu3 %vm37_vm0, %v443_v9  ;;  %v382_v20 = vmul.f32 %v240_v10, %v1263_v59 }
 0x123   :  { %v385_v41 = vmul.f32 %v270_v43, %v1281_v2  ;;  %v362_v21 = vmul.f32 %v1064_v28, %v1525_v36  ;;  %v401_v42 = vmul.f32 %v1440_v31, %v381_v19  ;;  %v391_v50 = vmul.f32 %v330_v61, %v1286_v11 }
 0x124   :  { %v392_v54 = vmul.f32 %v340_v39, %v1304_v32  ;;  %v280_v5 = vsel %vm279_vm3, %v1527_v37, %v276_v44  ;;  %v283_v46 = vmul.f32 %v1591_v17, %v282_v29  ;;  %v244_v18 = vmul.f32 0.5, %v243_v38 }
 0x125   :  { %v386_v2 = vmul.f32 %v280_v5, %v1289_v15  ;;  %v363_v56 = vmul.f32 %v1064_v28, %v362_v21  ;;  %1065 = vrsqrt.f32 %v1604_v13  ;;  %v380_v11 = vsel %vm1636_vm4, %v1519_v57, %v376_v14 }
 0x126   :  { %v284_v32 = vmul.f32 0.5, %v283_v46  ;;  %vm287_vm5 = vweird.f32 %v1517_v23  ;;  %1067 = vrsqrt.f32 %v1613_v22  ;;  %vm368_vm6 = vweird.f32 %v1064_v28 }
 0x127   :  { %v364_v40 = vmul.f32 0.5, %v363_v56  ;;  %v402_v10 = vmul.f32 %v1440_v31, %v382_v20  ;;  %v421_v37 = vadd.f32 %v1468_v53, %v401_v42  ;;  %v405_v43 = vmul.f32 %v1440_v31, %v385_v41 }
 0x128   :  { %v285_v15 = vsub.f32 1.5, %v284_v32  ;;  %v406_v24 = vmul.f32 %v1440_v31, %v386_v2  ;;  %v411_v26 = vmul.f32 %v1440_v31, %v391_v50  ;;  %v245_v16 = vsub.f32 1.5, %v244_v18 }
 0x129   :  { %v365_v57 = vsub.f32 1.5, %v364_v40  ;;  %v422_v52 = vadd.f32 %v1468_v53, %v402_v10  ;;  %v412_v25 = vmul.f32 %v1440_v31, %v392_v54  ;;  %v396_v58 = vmul.f32 %v380_v11, %v1307_v33 }
 0x12a   :  { %vm367_vm7 = vweird.f32 %v1525_v36  ;;  %v425_v60 = vadd.f32 %v1468_v53, %v405_v43  ;;  %v426_v61 = vadd.f32 %v1468_v53, %v406_v24  ;;  %vm288_vm8 = vweird.f32 %v1591_v17 }
 0x12b   :  { %v1066_v12 = vpop.eup %1065  ;;  %v366_v51 = vmul.f32 %v1064_v28, %v365_v57  ;;  %v437_v0 = vpack.c.bf16 %v422_v52, %v421_v37  ;;  %v432_v3 = vadd.f32 %v1468_v53, %v412_v25  ;;  %v286_v45 = vmul.f32 %v1591_v17, %v285_v15  ;;  %vm369_vm9 = vmor %vm367_vm7, %vm368_vm6 }
 0x12c   :  { %v1068_v4 = vpop.eup %1067  ;;  %v292_v33 = vmul.f32 %v1066_v12, %v1604_v13  ;;  %v439_v30 = vpack.c.bf16 %v426_v61, %v425_v60  ;;  %v431_v36 = vadd.f32 %v1468_v53, %v411_v26  ;;  %v246_v19 = vmul.f32 %v1580_v1, %v245_v16  ;;  %vm289_vm12 = vmor %vm287_vm5, %vm288_vm8 }
 0x12d   :  { %vm248_vm10 = vweird.f32 %v1580_v1  ;;  %v370_v6 = vsel %vm369_vm9, %v1064_v28, %v366_v51  ;;  %v252_v7 = vmul.f32 %v1068_v4, %v1613_v22  ;;  %1015 = vmatmul.msk.bf16.vlgmr.msra.gmra.mxu0 %vm37_vm0, %v437_v0  ;;  %v416_v9 = vmul.f32 %v1440_v31, %v396_v58 }
 0x12e   :  { %v395_v35 = vmul.f32 %v370_v6, %v1310_v34  ;;  %v293_v62 = vmul.f32 %v1066_v12, %v292_v33  ;;  %1017 = vmatmul.msk.bf16.vlgmr.msra.gmra.mxu1 %vm37_vm0, %v439_v30  ;;  %v442_v8 = vpack.c.bf16 %v432_v3, %v431_v36  ;;  %vm247_vm11 = vweird.f32 %v1508_v27 }
 0x12f   :  { %v253_v63 = vmul.f32 %v1068_v4, %v252_v7  ;;  %vm249_vm13 = vmor %vm247_vm11, %vm248_vm10  ;;  %v290_v14 = vsel %vm289_vm12, %v1591_v17, %v286_v45  ;;  %vm298_vm14 = vweird.f32 %v1066_v12  ;;  %v436_v29 = vadd.f32 %v1468_v53, %v416_v9 }
 0x130   :  { %v294_v38 = vmul.f32 0.5, %v293_v62  ;;  %1020 = vmatmul.msk.bf16.gmra.mxu2 %vm37_vm0, %v442_v8  ;;  %v415_v34 = vmul.f32 %v1440_v31, %v395_v35  ;;  %v250_v28 = vsel %vm249_vm13, %v1580_v1, %v246_v19  ;;  %v387_v23 = vmul.f32 %v290_v14, %v1328_v48 }
 0x131   :  { %v254_v39 = vmul.f32 0.5, %v253_v63  ;;  %vm258_vm15 = vweird.f32 %v1068_v4  ;;  %v383_v17 = vmul.f32 %v250_v28, %v1325_v47  ;;  %vm297_vm1 = vweird.f32 %v1604_v13 }
 0x132   :  { %v295_v44 = vsub.f32 1.5, %v294_v38  ;;  %v435_v27 = vadd.f32 %v1468_v53, %v415_v34  ;;  %vm299_vm2 = vmor %vm297_vm1, %vm298_vm14  ;;  %vm257_vm3 = vweird.f32 %v1613_v22  ;;  %v407_v48 = vmul.f32 %v1440_v31, %v387_v23 }
 0x133   :  { %v255_v20 = vsub.f32 1.5, %v254_v39  ;;  %vm259_vm4 = vmor %vm257_vm3, %vm258_vm15  ;;  %v403_v47 = vmul.f32 %v1440_v31, %v383_v17 }
 0x134   :  { %v296_v41 = vmul.f32 %v1066_v12, %v295_v44  ;;  %v444_v21 = vpack.c.bf16 %v436_v29, %v435_v27  ;;  %v427_v59 = vadd.f32 %v1468_v53, %v407_v48 }
 0x135   :  { %v256_v42 = vmul.f32 %v1068_v4, %v255_v20  ;;  %v423_v2 = vadd.f32 %v1468_v53, %v403_v47 }
 0x136   :  { %v300_v1 = vsel %vm299_vm2, %v1066_v12, %v296_v41  ;;  %1022 = vmatmul.msk.bf16.gmra.mxu3 %vm37_vm0, %v444_v21 }
 0x137   :  { %v388_v50 = vmul.f32 %v300_v1, %v1344_v55  ;;  %v260_v54 = vsel %vm259_vm4, %v1068_v4, %v256_v42 }
 0x138   :  { %v384_v5 = vmul.f32 %v260_v54, %v1331_v49  ;;  %v1702_v49 = vld [vmem:[%s1910_s4] ss:$0 sm:$0xff] }
 0x139   :  { %v408_v13 = vmul.f32 %v1440_v31, %v388_v50 }
 0x13a   :  { %v404_v46 = vmul.f32 %v1440_v31, %v384_v5 }
 0x13b   :  { %v428_v22 = vadd.f32 %v1468_v53, %v408_v13 }
 0x13c   :  { %v424_v18 = vadd.f32 %v1468_v53, %v404_v46 }
 0x13d   :  { %v440_v55 = vpack.c.bf16 %v428_v22, %v427_v59 }
 0x13e   :  { %v438_v56 = vpack.c.bf16 %v424_v18, %v423_v2 }
 0x13f   :  { %1018 = vmatmul.msk.bf16.gmra.mxu1 %vm37_vm0, %v440_v55 }
 0x140   :  { %1016 = vmatmul.msk.bf16.gmra.mxu0 %vm37_vm0, %v438_v56  ;;  %vm986_vm0 = vcmask 519168  }
 0x1a2   :  { %v518_v31 = vpop.f32.mrf.mxu2 }
 0x1a3   :  { %v519_v11 = vadd.f32 %v1702_v49, %v518_v31 }
 0x1a5   :  { %v546_v32 = vpack.c.bf16 %v519_v11, %v519_v11  ;;  %v528_v40 = vpop.f32.mrf.mxu3 }
 0x1a6   :  { %v529_v10 = vadd.f32 %v1702_v49, %v528_v40 }
 0x1a7   :  { %v1706_v37 = vunpack.c.l.bf16 %v546_v32 }
 0x1a8   :  { %v550_v53 = vpack.c.bf16 %v529_v10, %v529_v10 }
 0x1a9   :  { %v578_v15 = vmul.f32 %v1706_v37, %v1706_v37 }
 0x1aa   :  { %v1710_v43 = vunpack.c.l.bf16 %v550_v53  ;;  %v498_v24 = vpop.f32.mrf.mxu0  ;;  %v520_v26 = vpop.f32.mrf.mxu2 }
 0x1ab   :  { %v594_v16 = vpack.c.bf16 %v578_v15, %v578_v15  ;;  %v499_v57 = vadd.f32 %v1702_v49, %v498_v24  ;;  %v521_v52 = vadd.f32 %v1702_v49, %v520_v26  ;;  %v508_v25 = vpop.f32.mrf.mxu1 }
 0x1ac   :  { %v582_v58 = vmul.f32 %v1710_v43, %v1710_v43  ;;  %v509_v60 = vadd.f32 %v1702_v49, %v508_v25 }
 0x1ad   :  { %v610_v61 = vunpack.c.l.bf16 %v594_v16  ;;  %v538_v12 = vpack.c.bf16 %v499_v57, %v499_v57  ;;  %v547_v51 = vpack.c.bf16 %v521_v52, %v521_v52  ;;  %v530_v0 = vpop.f32.mrf.mxu3 }
 0x1ae   :  { %v598_v3 = vpack.c.bf16 %v582_v58, %v582_v58  ;;  %v531_v4 = vadd.f32 %v1702_v49, %v530_v0  ;;  %v542_v45 = vpack.c.bf16 %v509_v60, %v509_v60 }
 0x1af   :  { %v626_v33 = vmul.f32 %v610_v61, %v1706_v37  ;;  %v1719_v30 = vunpack.c.l.bf16 %v538_v12  ;;  %v1721_v36 = vunpack.c.l.bf16 %v547_v51 }
 0x1b0   :  { %v614_v19 = vunpack.c.l.bf16 %v598_v3  ;;  %v551_v6 = vpack.c.bf16 %v531_v4, %v531_v4  ;;  %v1723_v7 = vunpack.c.l.bf16 %v542_v45 }
 0x1b1   :  { %v642_v35 = vpack.c.bf16 %v626_v33, %v626_v33  ;;  %v570_v62 = vmul.f32 %v1719_v30, %v1719_v30  ;;  %v579_v8 = vmul.f32 %v1721_v36, %v1721_v36 }
 0x1b2   :  { %v630_v9 = vmul.f32 %v614_v19, %v1710_v43  ;;  %v1730_v63 = vunpack.c.l.bf16 %v551_v6  ;;  %v500_v14 = vpop.f32.mrf.mxu0  ;;  %v574_v38 = vmul.f32 %v1723_v7, %v1723_v7 }
 0x1b3   :  { %v658_v34 = vunpack.c.l.bf16 %v642_v35  ;;  %v586_v28 = vpack.c.bf16 %v570_v62, %v570_v62  ;;  %v595_v39 = vpack.c.bf16 %v579_v8, %v579_v8  ;;  %v501_v44 = vadd.f32 %v1702_v49, %v500_v14  ;;  %v523_v27 = vpop.f32.mrf.mxu2 }
 0x1b4   :  { %v646_v29 = vpack.c.bf16 %v630_v9, %v630_v9  ;;  %v583_v23 = vmul.f32 %v1730_v63, %v1730_v63  ;;  %v590_v20 = vpack.c.bf16 %v574_v38, %v574_v38  ;;  %v524_v17 = vadd.f32 %v1702_v49, %v523_v27 }
 0x1b5   :  { %v674_v41 = vmul.f32 0.044677734, %v658_v34  ;;  %v602_v21 = vunpack.c.l.bf16 %v586_v28  ;;  %v611_v42 = vunpack.c.l.bf16 %v595_v39  ;;  %v539_v1 = vpack.c.bf16 %v501_v44, %v501_v44 }
 0x1b6   :  { %v662_v50 = vunpack.c.l.bf16 %v646_v29  ;;  %v599_v54 = vpack.c.bf16 %v583_v23, %v583_v23  ;;  %v606_v48 = vunpack.c.l.bf16 %v590_v20  ;;  %v548_v5 = vpack.c.bf16 %v524_v17, %v524_v17 }
 0x1b7   :  { %v690_v47 = vpack.c.bf16 %v674_v41, %v674_v41  ;;  %v618_v13 = vmul.f32 %v602_v21, %v1719_v30  ;;  %v627_v46 = vmul.f32 %v611_v42, %v1721_v36  ;;  %v1740_v59 = vunpack.c.l.bf16 %v539_v1 }
 0x1b8   :  { %v678_v22 = vmul.f32 0.044677734, %v662_v50  ;;  %v615_v2 = vunpack.c.l.bf16 %v599_v54  ;;  %v622_v18 = vmul.f32 %v606_v48, %v1723_v7  ;;  %v1743_v55 = vunpack.c.l.bf16 %v548_v5 }
 0x1b9   :  { %v706_v56 = vunpack.c.l.bf16 %v690_v47  ;;  %v634_v31 = vpack.c.bf16 %v618_v13, %v618_v13  ;;  %v643_v11 = vpack.c.bf16 %v627_v46, %v627_v46  ;;  %v571_v32 = vmul.f32 %v1740_v59, %v1740_v59 }
 0x1ba   :  { %v694_v40 = vpack.c.bf16 %v678_v22, %v678_v22  ;;  %v631_v10 = vmul.f32 %v615_v2, %v1730_v63  ;;  %v638_v53 = vpack.c.bf16 %v622_v18, %v622_v18  ;;  %v580_v15 = vmul.f32 %v1743_v55, %v1743_v55 }
 0x1bb   :  { %v722_v24 = vadd.f32 %v706_v56, %v1706_v37  ;;  %v650_v26 = vunpack.c.l.bf16 %v634_v31  ;;  %v659_v16 = vunpack.c.l.bf16 %v643_v11  ;;  %v587_v57 = vpack.c.bf16 %v571_v32, %v571_v32  ;;  %v510_v56 = vpop.f32.mrf.mxu1 }
 0x1bc   :  { %v710_v52 = vunpack.c.l.bf16 %v694_v40  ;;  %v647_v25 = vpack.c.bf16 %v631_v10, %v631_v10  ;;  %v654_v58 = vunpack.c.l.bf16 %v638_v53  ;;  %v596_v60 = vpack.c.bf16 %v580_v15, %v580_v15 }
 0x1bd   :  { %v738_v61 = vpack.c.bf16 %v722_v24, %v722_v24  ;;  %v666_v12 = vmul.f32 0.044677734, %v650_v26  ;;  %v675_v51 = vmul.f32 0.044677734, %v659_v16  ;;  %v603_v0 = vunpack.c.l.bf16 %v587_v57 }
 0x1be   :  { %v726_v3 = vadd.f32 %v710_v52, %v1710_v43  ;;  %v663_v4 = vunpack.c.l.bf16 %v647_v25  ;;  %v670_v45 = vmul.f32 0.044677734, %v654_v58  ;;  %v612_v33 = vunpack.c.l.bf16 %v596_v60  ;;  %v525_v52 = vpop.f32.mrf.mxu2 }
 0x1bf   :  { %v754_v19 = vunpack.c.l.bf16 %v738_v61  ;;  %v682_v6 = vpack.c.bf16 %v666_v12, %v666_v12  ;;  %v691_v35 = vpack.c.bf16 %v675_v51, %v675_v51  ;;  %v619_v62 = vmul.f32 %v603_v0, %v1740_v59 }
 0x1c0   :  { %v742_v8 = vpack.c.bf16 %v726_v3, %v726_v3  ;;  %v679_v9 = vmul.f32 0.044677734, %v663_v4  ;;  %v686_v14 = vpack.c.bf16 %v670_v45, %v670_v45  ;;  %v628_v23 = vmul.f32 %v612_v33, %v1743_v55 }
 0x1c1   :  { %v770_v38 = vmul.f32 0.796875, %v754_v19  ;;  %v698_v34 = vunpack.c.l.bf16 %v682_v6  ;;  %v707_v28 = vunpack.c.l.bf16 %v691_v35  ;;  %v635_v39 = vpack.c.bf16 %v619_v62, %v619_v62 }
 0x1c2   :  { %v758_v44 = vunpack.c.l.bf16 %v742_v8  ;;  %v695_v27 = vpack.c.bf16 %v679_v9, %v679_v9  ;;  %v702_v29 = vunpack.c.l.bf16 %v686_v14  ;;  %v644_v54 = vpack.c.bf16 %v628_v23, %v628_v23 }
 0x1c3   :  { %v786_v20 = vpack.c.bf16 %v770_v38, %v770_v38  ;;  %v714_v17 = vadd.f32 %v698_v34, %v1719_v30  ;;  %v723_v41 = vadd.f32 %v707_v28, %v1721_v36  ;;  %v651_v21 = vunpack.c.l.bf16 %v635_v39 }
 0x1c4   :  { %v774_v42 = vmul.f32 0.796875, %v758_v44  ;;  %v711_v1 = vunpack.c.l.bf16 %v695_v27  ;;  %v718_v50 = vadd.f32 %v702_v29, %v1723_v7  ;;  %v660_v18 = vunpack.c.l.bf16 %v644_v54 }
 0x1c5   :  { %v802_v48 = vunpack.c.l.bf16 %v786_v20  ;;  %v730_v5 = vpack.c.bf16 %v714_v17, %v714_v17  ;;  %v739_v47 = vpack.c.bf16 %v723_v41, %v723_v41  ;;  %v667_v13 = vmul.f32 0.044677734, %v651_v21  ;;  %v533_v17 = vpop.f32.mrf.mxu3 }
 0x1c6   :  { %v790_v46 = vpack.c.bf16 %v774_v42, %v774_v42  ;;  %v727_v22 = vadd.f32 %v711_v1, %v1730_v63  ;;  %v734_v2 = vpack.c.bf16 %v718_v50, %v718_v50  ;;  %v676_v15 = vmul.f32 0.044677734, %v660_v18  ;;  %v503_v1 = vpop.f32.mrf.mxu0 }
 0x1c7   :  { %1069 = vtanh.f32 %v802_v48  ;;  %v746_v31 = vunpack.c.l.bf16 %v730_v5  ;;  %v755_v11 = vunpack.c.l.bf16 %v739_v47  ;;  %v683_v32 = vpack.c.bf16 %v667_v13, %v667_v13 }
 0x1c8   :  { %v806_v40 = vunpack.c.l.bf16 %v790_v46  ;;  %v743_v10 = vpack.c.bf16 %v727_v22, %v727_v22  ;;  %v750_v53 = vunpack.c.l.bf16 %v734_v2  ;;  %v511_v57 = vadd.f32 %v1702_v49, %v510_v56 }
 0x1c9   :  { %v762_v24 = vmul.f32 0.796875, %v746_v31  ;;  %v771_v26 = vmul.f32 0.796875, %v755_v11  ;;  %v699_v16 = vunpack.c.l.bf16 %v683_v32  ;;  %v692_v60 = vpack.c.bf16 %v676_v15, %v676_v15 }
 0x1ca   :  { %1071 = vtanh.f32 %v806_v40  ;;  %v759_v25 = vunpack.c.l.bf16 %v743_v10  ;;  %v766_v58 = vmul.f32 0.796875, %v750_v53  ;;  %v543_v0 = vpack.c.bf16 %v511_v57, %v511_v57 }
 0x1cb   :  { %v778_v61 = vpack.c.bf16 %v762_v24, %v762_v24  ;;  %v787_v12 = vpack.c.bf16 %v771_v26, %v771_v26  ;;  %v715_v51 = vadd.f32 %v699_v16, %v1740_v59  ;;  %v708_v45 = vunpack.c.l.bf16 %v692_v60 }
 0x1cc   :  { %v775_v3 = vmul.f32 0.796875, %v759_v25  ;;  %v782_v4 = vpack.c.bf16 %v766_v58, %v766_v58  ;;  %v526_v33 = vadd.f32 %v1702_v49, %v525_v52  ;;  %v1761_v8 = vunpack.c.l.bf16 %v543_v0 }
 0x1cd   :  { %v1070_v19 = vpop.eup %1069  ;;  %v794_v6 = vunpack.c.l.bf16 %v778_v61  ;;  %v803_v35 = vunpack.c.l.bf16 %v787_v12  ;;  %v731_v62 = vpack.c.bf16 %v715_v51, %v715_v51  ;;  %v724_v34 = vadd.f32 %v708_v45, %v1743_v55 }
 0x1ce   :  { %v834_v9 = vpack.c.bf16 %v1070_v19, %v1070_v19  ;;  %v791_v14 = vpack.c.bf16 %v775_v3, %v775_v3  ;;  %v798_v38 = vunpack.c.l.bf16 %v782_v4  ;;  %v575_v39 = vmul.f32 %v1761_v8, %v1761_v8 }
 0x1cf   :  { %1073 = vtanh.f32 %v794_v6  ;;  %v747_v28 = vunpack.c.l.bf16 %v731_v62  ;;  %v549_v44 = vpack.c.bf16 %v526_v33, %v526_v33  ;;  %v740_v20 = vpack.c.bf16 %v724_v34, %v724_v34 }
 0x1d0   :  { %v1072_v27 = vpop.eup %1071  ;;  %v850_v29 = vunpack.c.l.bf16 %v834_v9  ;;  %1075 = vtanh.f32 %v803_v35  ;;  %v807_v23 = vunpack.c.l.bf16 %v791_v14  ;;  %v591_v42 = vpack.c.bf16 %v575_v39, %v575_v39 }
 0x1d1   :  { %v838_v41 = vpack.c.bf16 %v1072_v27, %v1072_v27  ;;  %v763_v21 = vmul.f32 0.796875, %v747_v28  ;;  %1077 = vtanh.f32 %v798_v38  ;;  %v756_v54 = vunpack.c.l.bf16 %v740_v20 }
 0x1d2   :  { %v866_v50 = vadd.f32 1.0, %v850_v29  ;;  %1079 = vtanh.f32 %v807_v23  ;;  %v1766_v48 = vunpack.c.l.bf16 %v549_v44  ;;  %v607_v13 = vunpack.c.l.bf16 %v591_v42 }
 0x1d3   :  { %v854_v5 = vunpack.c.l.bf16 %v838_v41  ;;  %v779_v47 = vpack.c.bf16 %v763_v21, %v763_v21  ;;  %v1769_v46 = vadd.f32 %v1702_v49, %v533_v17  ;;  %v772_v2 = vmul.f32 0.796875, %v756_v54 }
 0x1d4   :  { %v882_v22 = vpack.c.bf16 %v866_v50, %v866_v50  ;;  %v581_v18 = vmul.f32 %v1766_v48, %v1766_v48  ;;  %v1774_v56 = vadd.f32 %v1702_v49, %v503_v1  ;;  %v623_v40 = vmul.f32 %v607_v13, %v1761_v8 }
 0x1d5   :  { %v1074_v31 = vpop.eup %1073  ;;  %v870_v11 = vadd.f32 1.0, %v854_v5  ;;  %v795_v32 = vunpack.c.l.bf16 %v779_v47  ;;  %v552_v10 = vpack.c.bf16 %v1769_v46, %v1769_v46  ;;  %v788_v26 = vpack.c.bf16 %v772_v2, %v772_v2 }
 0x1d6   :  { %v1076_v53 = vpop.eup %1075  ;;  %v898_v15 = vunpack.c.l.bf16 %v882_v22  ;;  %v826_v24 = vpack.c.bf16 %v1074_v31, %v1074_v31  ;;  %v597_v16 = vpack.c.bf16 %v581_v18, %v581_v18  ;;  %v639_v58 = vpack.c.bf16 %v623_v40, %v623_v40 }
 0x1d7   :  { %v1078_v57 = vpop.eup %1077  ;;  %v886_v52 = vpack.c.bf16 %v870_v11, %v870_v11  ;;  %v835_v25 = vpack.c.bf16 %v1076_v53, %v1076_v53  ;;  %1081 = vtanh.f32 %v795_v32  ;;  %v804_v0 = vunpack.c.l.bf16 %v788_v26 }
 0x1d8   :  { %v1080_v60 = vpop.eup %1079  ;;  %v914_v61 = vmul.f32 0.5, %v898_v15  ;;  %v842_v12 = vunpack.c.l.bf16 %v826_v24  ;;  %v830_v51 = vpack.c.bf16 %v1078_v57, %v1078_v57  ;;  %v655_v33 = vunpack.c.l.bf16 %v639_v58 }
 0x1d9   :  { %v902_v3 = vunpack.c.l.bf16 %v886_v52  ;;  %v851_v4 = vunpack.c.l.bf16 %v835_v25  ;;  %v839_v45 = vpack.c.bf16 %v1080_v60, %v1080_v60  ;;  %1083 = vtanh.f32 %v804_v0 }
 0x1da   :  { %v930_v19 = vpack.c.bf16 %v914_v61, %v914_v61  ;;  %v858_v6 = vadd.f32 1.0, %v842_v12  ;;  %v846_v35 = vunpack.c.l.bf16 %v830_v51  ;;  %v671_v38 = vmul.f32 0.044677734, %v655_v33 }
 0x1db   :  { %v918_v62 = vmul.f32 0.5, %v902_v3  ;;  %v867_v9 = vadd.f32 1.0, %v851_v4  ;;  %v855_v14 = vunpack.c.l.bf16 %v839_v45  ;;  %v613_v44 = vunpack.c.l.bf16 %v597_v16  ;;  %v513_v4 = vpop.f32.mrf.mxu1 }
 0x1dc   :  { %v946_v34 = vunpack.c.l.bf16 %v930_v19  ;;  %v874_v28 = vpack.c.bf16 %v858_v6, %v858_v6  ;;  %v862_v39 = vadd.f32 1.0, %v846_v35  ;;  %v687_v17 = vpack.c.bf16 %v671_v38, %v671_v38 }
 0x1dd   :  { %v1082_v27 = vpop.eup %1081  ;;  %v934_v29 = vpack.c.bf16 %v918_v62, %v918_v62  ;;  %v883_v23 = vpack.c.bf16 %v867_v9, %v867_v9  ;;  %v871_v20 = vadd.f32 1.0, %v855_v14  ;;  %v629_v3 = vmul.f32 %v613_v44, %v1766_v48 }
 0x1de   :  { %v962_v41 = vmul.f32 %v946_v34, %v1706_v37  ;;  %v890_v21 = vunpack.c.l.bf16 %v874_v28  ;;  %v827_v42 = vpack.c.bf16 %v1082_v27, %v1082_v27  ;;  %v878_v1 = vpack.c.bf16 %v862_v39, %v862_v39 }
 0x1df   :  { %v950_v50 = vunpack.c.l.bf16 %v934_v29  ;;  %v899_v54 = vunpack.c.l.bf16 %v883_v23  ;;  %v887_v5 = vpack.c.bf16 %v871_v20, %v871_v20  ;;  %v703_v47 = vunpack.c.l.bf16 %v687_v17  ;;  %v1084_v13 = vpop.eup %1083 }
 0x1e0   :  { %v978_v22 = vpack.c.bf16 %v962_v41, %v962_v41  ;;  %v906_v2 = vmul.f32 0.5, %v890_v21  ;;  %v843_v18 = vunpack.c.l.bf16 %v827_v42  ;;  %v894_v31 = vunpack.c.l.bf16 %v878_v1 }
 0x1e1   :  { %v966_v11 = vmul.f32 %v950_v50, %v1710_v43  ;;  %v915_v32 = vmul.f32 0.5, %v899_v54  ;;  %v903_v40 = vunpack.c.l.bf16 %v887_v5  ;;  %v836_v53 = vpack.c.bf16 %v1084_v13, %v1084_v13  ;;  %v505_v13 = vpop.f32.mrf.mxu0 }
 0x1e2   :  { %995 = vst.msk [vmem:[%s1912_s5 + $0x20] sm:$0xf] %vm986_vm0, %v978_v22  ;;  %v922_v37 = vpack.c.bf16 %v906_v2, %v906_v2  ;;  %v859_v15 = vadd.f32 1.0, %v843_v18  ;;  %v910_v24 = vmul.f32 0.5, %v894_v31  ;;  %v719_v26 = vadd.f32 %v703_v47, %v1761_v8 }
 0x1e3   :  { %v982_v16 = vpack.c.bf16 %v966_v11, %v966_v11  ;;  %v931_v57 = vpack.c.bf16 %v915_v32, %v915_v32  ;;  %v919_v52 = vmul.f32 0.5, %v903_v40  ;;  %v852_v25 = vunpack.c.l.bf16 %v836_v53  ;;  %v515_v53 = vpop.f32.mrf.mxu1 }
 0x1e4   :  { %v938_v58 = vunpack.c.l.bf16 %v922_v37  ;;  %v875_v60 = vpack.c.bf16 %v859_v15, %v859_v15  ;;  %v926_v43 = vpack.c.bf16 %v910_v24, %v910_v24  ;;  %v735_v61 = vpack.c.bf16 %v719_v26, %v719_v26 }
 0x1e5   :  { %999 = vst.msk [vmem:[%s1912_s5 + $0x30] sm:$0xf] %vm986_vm0, %v982_v16  ;;  %v947_v12 = vunpack.c.l.bf16 %v931_v57  ;;  %v935_v51 = vpack.c.bf16 %v919_v52, %v919_v52  ;;  %v868_v0 = vadd.f32 1.0, %v852_v25  ;;  %v645_v14 = vpack.c.bf16 %v629_v3, %v629_v3 }
 0x1e6   :  { %v954_v45 = vmul.f32 %v938_v58, %v1719_v30  ;;  %v891_v33 = vunpack.c.l.bf16 %v875_v60  ;;  %v942_v19 = vunpack.c.l.bf16 %v926_v43  ;;  %v751_v6 = vunpack.c.l.bf16 %v735_v61 }
 0x1e7   :  { %v963_v35 = vmul.f32 %v947_v12, %v1721_v36  ;;  %v951_v62 = vunpack.c.l.bf16 %v935_v51  ;;  %v884_v9 = vpack.c.bf16 %v868_v0, %v868_v0  ;;  %v661_v23 = vunpack.c.l.bf16 %v645_v14 }
 0x1e8   :  { %v970_v38 = vpack.c.bf16 %v954_v45, %v954_v45  ;;  %v907_v34 = vmul.f32 0.5, %v891_v33  ;;  %v958_v28 = vmul.f32 %v942_v19, %v1723_v7  ;;  %v767_v39 = vmul.f32 0.796875, %v751_v6  ;;  %v535_v7 = vpop.f32.mrf.mxu3 }
 0x1e9   :  { %v979_v27 = vpack.c.bf16 %v963_v35, %v963_v35  ;;  %v967_v29 = vmul.f32 %v951_v62, %v1730_v63  ;;  %v900_v44 = vunpack.c.l.bf16 %v884_v9  ;;  %v1802_v17 = vunpack.c.l.bf16 %v552_v10 }
 0x1ea   :  { %987 = vst.msk [vmem:[%s1912_s5] sm:$0xf] %vm986_vm0, %v970_v38  ;;  %v923_v30 = vpack.c.bf16 %v907_v34, %v907_v34  ;;  %v974_v36 = vpack.c.bf16 %v958_v28, %v958_v28  ;;  %v783_v20 = vpack.c.bf16 %v767_v39, %v767_v39  ;;  %v677_v21 = vmul.f32 0.044677734, %v661_v23 }
 0x1eb   :  { %996 = vst.msk [vmem:[%s1912_s5 + $0x24] sm:$0xf] %vm986_vm0, %v979_v27  ;;  %v983_v63 = vpack.c.bf16 %v967_v29, %v967_v29  ;;  %v916_v41 = vmul.f32 0.5, %v900_v44  ;;  %v540_v42 = vpack.c.bf16 %v1774_v56, %v1774_v56  ;;  %v584_v10 = vmul.f32 %v1802_v17, %v1802_v17 }
 0x1ec   :  { %v939_v1 = vunpack.c.l.bf16 %v923_v30  ;;  %991 = vst.msk [vmem:[%s1912_s5 + $0x10] sm:$0xf] %vm986_vm0, %v974_v36  ;;  %v799_v46 = vunpack.c.l.bf16 %v783_v20  ;;  %v514_v50 = vadd.f32 %v1702_v49, %v513_v4  ;;  %v693_v5 = vpack.c.bf16 %v677_v21, %v677_v21 }
 0x1ed   :  { %1000 = vst.msk [vmem:[%s1912_s5 + $0x34] sm:$0xf] %vm986_vm0, %v983_v63  ;;  %v932_v54 = vpack.c.bf16 %v916_v41, %v916_v41  ;;  %v1821_v56 = vunpack.c.l.bf16 %v540_v42  ;;  %v536_v47 = vadd.f32 %v1702_v49, %v535_v7  ;;  %v600_v2 = vpack.c.bf16 %v584_v10, %v584_v10 }
 0x1ee   :  { %v955_v22 = vmul.f32 %v939_v1, %v1740_v59  ;;  %1085 = vtanh.f32 %v799_v46  ;;  %v544_v18 = vpack.c.bf16 %v514_v50, %v514_v50  ;;  %v709_v11 = vunpack.c.l.bf16 %v693_v5 }
 0x1ef   :  { %v948_v31 = vunpack.c.l.bf16 %v932_v54  ;;  %v572_v32 = vmul.f32 %v1821_v56, %v1821_v56  ;;  %v553_v40 = vpack.c.bf16 %v536_v47, %v536_v47  ;;  %v616_v15 = vunpack.c.l.bf16 %v600_v2 }
 0x1f0   :  { %v971_v37 = vpack.c.bf16 %v955_v22, %v955_v22  ;;  %v1827_v24 = vunpack.c.l.bf16 %v544_v18  ;;  %v506_v26 = vadd.f32 %v1702_v49, %v505_v13  ;;  %v725_v59 = vadd.f32 %v709_v11, %v1766_v48 }
 0x1f1   :  { %v964_v16 = vmul.f32 %v948_v31, %v1743_v55  ;;  %v588_v57 = vpack.c.bf16 %v572_v32, %v572_v32  ;;  %v1832_v52 = vunpack.c.l.bf16 %v553_v40  ;;  %v632_v25 = vmul.f32 %v616_v15, %v1802_v17 }
 0x1f2   :  { %988 = vst.msk [vmem:[%s1912_s5 + $0x4] sm:$0xf] %vm986_vm0, %v971_v37  ;;  %v576_v58 = vmul.f32 %v1827_v24, %v1827_v24  ;;  %v541_v60 = vpack.c.bf16 %v506_v26, %v506_v26  ;;  %v516_v43 = vadd.f32 %v1702_v49, %v515_v53  ;;  %v741_v55 = vpack.c.bf16 %v725_v59, %v725_v59 }
 0x1f3   :  { %v980_v61 = vpack.c.bf16 %v964_v16, %v964_v16  ;;  %v604_v12 = vunpack.c.l.bf16 %v588_v57  ;;  %v585_v51 = vmul.f32 %v1832_v52, %v1832_v52  ;;  %v648_v3 = vpack.c.bf16 %v632_v25, %v632_v25 }
 0x1f4   :  { %v1086_v0 = vpop.eup %1085  ;;  %v592_v4 = vpack.c.bf16 %v576_v58, %v576_v58  ;;  %v1844_v45 = vunpack.c.l.bf16 %v541_v60  ;;  %v545_v33 = vpack.c.bf16 %v516_v43, %v516_v43  ;;  %v757_v6 = vunpack.c.l.bf16 %v741_v55 }
 0x1f5   :  { %997 = vst.msk [vmem:[%s1912_s5 + $0x28] sm:$0xf] %vm986_vm0, %v980_v61  ;;  %v831_v19 = vpack.c.bf16 %v1086_v0, %v1086_v0  ;;  %v620_v49 = vmul.f32 %v604_v12, %v1821_v56  ;;  %v601_v35 = vpack.c.bf16 %v585_v51, %v585_v51  ;;  %v664_v62 = vunpack.c.l.bf16 %v648_v3 }
 0x1f6   :  { %v608_v9 = vunpack.c.l.bf16 %v592_v4  ;;  %v573_v14 = vmul.f32 %v1844_v45, %v1844_v45  ;;  %v1853_v38 = vunpack.c.l.bf16 %v545_v33  ;;  %v773_v28 = vmul.f32 0.796875, %v757_v6 }
 0x1f7   :  { %v847_v34 = vunpack.c.l.bf16 %v831_v19  ;;  %v636_v39 = vpack.c.bf16 %v620_v49, %v620_v49  ;;  %v617_v27 = vunpack.c.l.bf16 %v601_v35  ;;  %v680_v29 = vmul.f32 0.044677734, %v664_v62 }
 0x1f8   :  { %v624_v44 = vmul.f32 %v608_v9, %v1827_v24  ;;  %v589_v23 = vpack.c.bf16 %v573_v14, %v573_v14  ;;  %v577_v30 = vmul.f32 %v1853_v38, %v1853_v38  ;;  %v789_v20 = vpack.c.bf16 %v773_v28, %v773_v28 }
 0x1f9   :  { %v863_v36 = vadd.f32 1.0, %v847_v34  ;;  %v652_v7 = vunpack.c.l.bf16 %v636_v39  ;;  %v633_v63 = vmul.f32 %v617_v27, %v1832_v52  ;;  %v696_v41 = vpack.c.bf16 %v680_v29, %v680_v29 }
 0x1fa   :  { %v640_v21 = vpack.c.bf16 %v624_v44, %v624_v44  ;;  %v605_v42 = vunpack.c.l.bf16 %v589_v23  ;;  %v593_v1 = vpack.c.bf16 %v577_v30, %v577_v30  ;;  %v805_v10 = vunpack.c.l.bf16 %v789_v20 }
 0x1fb   :  { %v879_v46 = vpack.c.bf16 %v863_v36, %v863_v36  ;;  %v668_v50 = vmul.f32 0.044677734, %v652_v7  ;;  %v649_v54 = vpack.c.bf16 %v633_v63, %v633_v63  ;;  %v712_v5 = vunpack.c.l.bf16 %v696_v41 }
 0x1fc   :  { %v656_v47 = vunpack.c.l.bf16 %v640_v21  ;;  %v621_v13 = vmul.f32 %v605_v42, %v1844_v45  ;;  %v609_v22 = vunpack.c.l.bf16 %v593_v1  ;;  %1087 = vtanh.f32 %v805_v10 }
 0x1fd   :  { %v895_v2 = vunpack.c.l.bf16 %v879_v46  ;;  %v684_v18 = vpack.c.bf16 %v668_v50, %v668_v50  ;;  %v665_v31 = vunpack.c.l.bf16 %v649_v54  ;;  %v728_v11 = vadd.f32 %v712_v5, %v1802_v17 }
 0x1fe   :  { %v672_v32 = vmul.f32 0.044677734, %v656_v47  ;;  %v637_v40 = vpack.c.bf16 %v621_v13, %v621_v13  ;;  %v625_v53 = vmul.f32 %v609_v22, %v1853_v38 }
 0x1ff   :  { %v911_v37 = vmul.f32 0.5, %v895_v2  ;;  %v700_v15 = vunpack.c.l.bf16 %v684_v18  ;;  %v681_v26 = vmul.f32 0.044677734, %v665_v31  ;;  %v744_v16 = vpack.c.bf16 %v728_v11, %v728_v11 }
 0x200   :  { %v688_v59 = vpack.c.bf16 %v672_v32, %v672_v32  ;;  %v653_v57 = vunpack.c.l.bf16 %v637_v40  ;;  %v641_v25 = vpack.c.bf16 %v625_v53, %v625_v53 }
 0x201   :  { %v927_v58 = vpack.c.bf16 %v911_v37, %v911_v37  ;;  %v716_v60 = vadd.f32 %v700_v15, %v1821_v56  ;;  %v697_v43 = vpack.c.bf16 %v681_v26, %v681_v26  ;;  %v760_v61 = vunpack.c.l.bf16 %v744_v16 }
 0x202   :  { %v704_v55 = vunpack.c.l.bf16 %v688_v59  ;;  %v669_v12 = vmul.f32 0.044677734, %v653_v57  ;;  %v657_v51 = vunpack.c.l.bf16 %v641_v25  ;;  %v1088_v0 = vpop.eup %1087 }
 0x203   :  { %v943_v3 = vunpack.c.l.bf16 %v927_v58  ;;  %v732_v4 = vpack.c.bf16 %v716_v60, %v716_v60  ;;  %v713_v33 = vunpack.c.l.bf16 %v697_v43  ;;  %v837_v19 = vpack.c.bf16 %v1088_v0, %v1088_v0 }
 0x204   :  { %v776_v6 = vmul.f32 0.796875, %v760_v61  ;;  %v720_v49 = vadd.f32 %v704_v55, %v1827_v24  ;;  %v685_v35 = vpack.c.bf16 %v669_v12, %v669_v12  ;;  %v673_v34 = vmul.f32 0.044677734, %v657_v51 }
 0x205   :  { %v959_v62 = vmul.f32 %v943_v3, %v1761_v8  ;;  %v748_v9 = vunpack.c.l.bf16 %v732_v4  ;;  %v729_v14 = vadd.f32 %v713_v33, %v1832_v52  ;;  %v853_v28 = vunpack.c.l.bf16 %v837_v19 }
 0x206   :  { %v792_v39 = vpack.c.bf16 %v776_v6, %v776_v6  ;;  %v736_v27 = vpack.c.bf16 %v720_v49, %v720_v49  ;;  %v701_v29 = vunpack.c.l.bf16 %v685_v35  ;;  %v689_v36 = vpack.c.bf16 %v673_v34, %v673_v34 }
 0x207   :  { %v975_v44 = vpack.c.bf16 %v959_v62, %v959_v62  ;;  %v764_v23 = vmul.f32 0.796875, %v748_v9  ;;  %v745_v30 = vpack.c.bf16 %v729_v14, %v729_v14  ;;  %v869_v20 = vadd.f32 1.0, %v853_v28 }
 0x208   :  { %v808_v7 = vunpack.c.l.bf16 %v792_v39  ;;  %v752_v63 = vunpack.c.l.bf16 %v736_v27  ;;  %v717_v41 = vadd.f32 %v701_v29, %v1844_v45  ;;  %v705_v42 = vunpack.c.l.bf16 %v689_v36 }
 0x209   :  { %992 = vst.msk [vmem:[%s1912_s5 + $0x14] sm:$0xf] %vm986_vm0, %v975_v44  ;;  %v780_v8 = vpack.c.bf16 %v764_v23, %v764_v23  ;;  %v761_v21 = vunpack.c.l.bf16 %v745_v30  ;;  %v885_v1 = vpack.c.bf16 %v869_v20, %v869_v20 }
 0x20a   :  { %1089 = vtanh.f32 %v808_v7  ;;  %v768_v46 = vmul.f32 0.796875, %v752_v63  ;;  %v733_v10 = vpack.c.bf16 %v717_v41, %v717_v41  ;;  %v721_v5 = vadd.f32 %v705_v42, %v1853_v38 }
 0x20b   :  { %v796_v50 = vunpack.c.l.bf16 %v780_v8  ;;  %v777_v54 = vmul.f32 0.796875, %v761_v21  ;;  %v901_v47 = vunpack.c.l.bf16 %v885_v1 }
 0x20c   :  { %v784_v13 = vpack.c.bf16 %v768_v46, %v768_v46  ;;  %v749_v22 = vunpack.c.l.bf16 %v733_v10  ;;  %v737_v18 = vpack.c.bf16 %v721_v5, %v721_v5 }
 0x20d   :  { %1091 = vtanh.f32 %v796_v50  ;;  %v793_v2 = vpack.c.bf16 %v777_v54, %v777_v54  ;;  %v917_v31 = vmul.f32 0.5, %v901_v47 }
 0x20e   :  { %v800_v11 = vunpack.c.l.bf16 %v784_v13  ;;  %v765_v32 = vmul.f32 0.796875, %v749_v22  ;;  %v753_v53 = vunpack.c.l.bf16 %v737_v18 }
 0x20f   :  { %v809_v40 = vunpack.c.l.bf16 %v793_v2  ;;  %v933_v15 = vpack.c.bf16 %v917_v31, %v917_v31 }
 0x210   :  { %v1090_v37 = vpop.eup %1089  ;;  %1093 = vtanh.f32 %v800_v11  ;;  %v781_v26 = vpack.c.bf16 %v765_v32, %v765_v32  ;;  %v769_v59 = vmul.f32 0.796875, %v753_v53 }
 0x211   :  { %v840_v16 = vpack.c.bf16 %v1090_v37, %v1090_v37  ;;  %1095 = vtanh.f32 %v809_v40  ;;  %v949_v57 = vunpack.c.l.bf16 %v933_v15 }
 0x212   :  { %v797_v25 = vunpack.c.l.bf16 %v781_v26  ;;  %v785_v43 = vpack.c.bf16 %v769_v59, %v769_v59 }
 0x213   :  { %v1092_v58 = vpop.eup %1091  ;;  %v856_v60 = vunpack.c.l.bf16 %v840_v16  ;;  %v965_v61 = vmul.f32 %v949_v57, %v1766_v48 }
 0x214   :  { %v828_v55 = vpack.c.bf16 %v1092_v58, %v1092_v58  ;;  %1097 = vtanh.f32 %v797_v25  ;;  %v801_v51 = vunpack.c.l.bf16 %v785_v43 }
 0x215   :  { %v872_v12 = vadd.f32 1.0, %v856_v60  ;;  %v981_v3 = vpack.c.bf16 %v965_v61, %v965_v61 }
 0x216   :  { %v1094_v0 = vpop.eup %1093  ;;  %v844_v4 = vunpack.c.l.bf16 %v828_v55  ;;  %1099 = vtanh.f32 %v801_v51 }
 0x217   :  { %v1096_v33 = vpop.eup %1095  ;;  %v888_v19 = vpack.c.bf16 %v872_v12, %v872_v12  ;;  %v832_v6 = vpack.c.bf16 %v1094_v0, %v1094_v0  ;;  %998 = vst.msk [vmem:[%s1912_s5 + $0x2c] sm:$0xf] %vm986_vm0, %v981_v3 }
 0x218   :  { %v860_v49 = vadd.f32 1.0, %v844_v4  ;;  %v841_v35 = vpack.c.bf16 %v1096_v33, %v1096_v33 }
 0x219   :  { %v904_v62 = vunpack.c.l.bf16 %v888_v19  ;;  %v848_v48 = vunpack.c.l.bf16 %v832_v6 }
 0x21a   :  { %v1098_v9 = vpop.eup %1097  ;;  %v876_v14 = vpack.c.bf16 %v860_v49, %v860_v49  ;;  %v857_v34 = vunpack.c.l.bf16 %v841_v35 }
 0x21b   :  { %v920_v28 = vmul.f32 0.5, %v904_v62  ;;  %v864_v39 = vadd.f32 1.0, %v848_v48  ;;  %v829_v27 = vpack.c.bf16 %v1098_v9, %v1098_v9 }
 0x21c   :  { %v892_v29 = vunpack.c.l.bf16 %v876_v14  ;;  %v873_v44 = vadd.f32 1.0, %v857_v34  ;;  %v1100_v23 = vpop.eup %1099 }
 0x21d   :  { %v936_v30 = vpack.c.bf16 %v920_v28, %v920_v28  ;;  %v880_v36 = vpack.c.bf16 %v864_v39, %v864_v39  ;;  %v845_v20 = vunpack.c.l.bf16 %v829_v27  ;;  %v833_v41 = vpack.c.bf16 %v1100_v23, %v1100_v23 }
 0x21e   :  { %v908_v7 = vmul.f32 0.5, %v892_v29  ;;  %v889_v63 = vpack.c.bf16 %v873_v44, %v873_v44 }
 0x21f   :  { %v952_v8 = vunpack.c.l.bf16 %v936_v30  ;;  %v896_v21 = vunpack.c.l.bf16 %v880_v36  ;;  %v861_v42 = vadd.f32 1.0, %v845_v20  ;;  %v849_v10 = vunpack.c.l.bf16 %v833_v41 }
 0x220   :  { %v924_v1 = vpack.c.bf16 %v908_v7, %v908_v7  ;;  %v905_v46 = vunpack.c.l.bf16 %v889_v63 }
 0x221   :  { %v968_v50 = vmul.f32 %v952_v8, %v1802_v17  ;;  %v912_v54 = vmul.f32 0.5, %v896_v21  ;;  %v877_v5 = vpack.c.bf16 %v861_v42, %v861_v42  ;;  %v865_v22 = vadd.f32 1.0, %v849_v10 }
 0x222   :  { %v940_v47 = vunpack.c.l.bf16 %v924_v1  ;;  %v921_v13 = vmul.f32 0.5, %v905_v46 }
 0x223   :  { %v984_v2 = vpack.c.bf16 %v968_v50, %v968_v50  ;;  %v928_v18 = vpack.c.bf16 %v912_v54, %v912_v54  ;;  %v893_v31 = vunpack.c.l.bf16 %v877_v5  ;;  %v881_v40 = vpack.c.bf16 %v865_v22, %v865_v22 }
 0x224   :  { %v956_v11 = vmul.f32 %v940_v47, %v1821_v56  ;;  %v937_v32 = vpack.c.bf16 %v921_v13, %v921_v13 }
 0x225   :  { %1001 = vst.msk [vmem:[%s1912_s5 + $0x38] sm:$0xf] %vm986_vm0, %v984_v2  ;;  %v944_v53 = vunpack.c.l.bf16 %v928_v18  ;;  %v909_v37 = vmul.f32 0.5, %v893_v31  ;;  %v897_v26 = vunpack.c.l.bf16 %v881_v40 }
 0x226   :  { %v972_v17 = vpack.c.bf16 %v956_v11, %v956_v11  ;;  %v953_v15 = vunpack.c.l.bf16 %v937_v32 }
 0x227   :  { %v960_v16 = vmul.f32 %v944_v53, %v1827_v24  ;;  %v925_v59 = vpack.c.bf16 %v909_v37, %v909_v37  ;;  %v913_v57 = vmul.f32 0.5, %v897_v26 }
 0x228   :  { %989 = vst.msk [vmem:[%s1912_s5 + $0x8] sm:$0xf] %vm986_vm0, %v972_v17  ;;  %v969_v56 = vmul.f32 %v953_v15, %v1832_v52 }
 0x229   :  { %v976_v25 = vpack.c.bf16 %v960_v16, %v960_v16  ;;  %v941_v58 = vunpack.c.l.bf16 %v925_v59  ;;  %v929_v43 = vpack.c.bf16 %v913_v57, %v913_v57 }
 0x22a   :  { %v985_v60 = vpack.c.bf16 %v969_v56, %v969_v56 }
 0x22b   :  { %993 = vst.msk [vmem:[%s1912_s5 + $0x18] sm:$0xf] %vm986_vm0, %v976_v25  ;;  %v957_v24 = vmul.f32 %v941_v58, %v1844_v45  ;;  %v945_v61 = vunpack.c.l.bf16 %v929_v43 }
 0x22c   :  { %1002 = vst.msk [vmem:[%s1912_s5 + $0x3c] sm:$0xf] %vm986_vm0, %v985_v60 }
 0x22d   :  { %v973_v55 = vpack.c.bf16 %v957_v24, %v957_v24  ;;  %v961_v52 = vmul.f32 %v945_v61, %v1853_v38 }
 0x22f   :  { %990 = vst.msk [vmem:[%s1912_s5 + $0xc] sm:$0xf] %vm986_vm0, %v973_v55  ;;  %v977_v12 = vpack.c.bf16 %v961_v52, %v961_v52 }
 0x231   :  { %994 = vst.msk [vmem:[%s1912_s5 + $0x1c] sm:$0xf] %vm986_vm0, %v977_v12 }

// kernel: transformer_forward_pallas.14
= control target key start
LH: loop header
LB: loop body
LE: loop exit
PB: predicated region body
PF: predicated region fallthrough
CT: control target
= control target key end

     0   :  { %vm110_vm0 = vcmask 523264   ;;  %vm216_vm1 = vcmask 261120   ;;  %s520_s1 = inlined_call_operand.vmem [shape: bf16[64,32], index: 1, kind: input, shape index: {}]   ;;  %s521_s2 = inlined_call_operand.vmem [shape: f32[1,32], index: 2, kind: input, shape index: {}]   ;;  %s522_s0 = inlined_call_operand.vmem [shape: bf16[128,64], index: 0, kind: input, shape index: {}]   ;;  %s523_s3 = inlined_call_operand.vmem [shape: f32[128,32], index: 3, kind: input, shape index: {}]   ;;  %s524_s4 = inlined_call_operand.vmem [shape: f32[128,32], index: 4, kind: output, shape index: {}]  }
   0x1   :  { %v304_v0 = vld [vmem:[%s520_s1 + $0x18] sm:$0xff]  ;;  %v303_v1 = vld [vmem:[%s520_s1 + $0x10] sm:$0xff]  ;;  %v302_v2 = vld [vmem:[%s520_s1 + $0x8] sm:$0xff] }
   0x2   :  { %139 = vmatpush.bf16.msra.mxu0 %v304_v0  ;;  %305 = vmatpush.bf16.msra.mxu1 %v304_v0  ;;  %v301_v3 = vld [vmem:[%s520_s1] sm:$0xff]  ;;  %v295_v5 = vld [vmem:[%s522_s0 + $0x10] sm:$0xff]  ;;  %v294_v8 = vld [vmem:[%s522_s0 + $0x8] sm:$0xff] }
   0x3   :  { %306 = vmatpush.bf16.msra.mxu2 %v304_v0  ;;  %307 = vmatpush.bf16.msra.mxu3 %v304_v0  ;;  %v293_v4 = vld [vmem:[%s522_s0] sm:$0xff]  ;;  %v299_v7 = vld [vmem:[%s522_s0 + $0x30] sm:$0xff]  ;;  %v296_v9 = vld [vmem:[%s522_s0 + $0x18] sm:$0xff] }
   0x4   :  { %v297_v6 = vld [vmem:[%s522_s0 + $0x20] sm:$0xff]  ;;  %v298_v10 = vld [vmem:[%s522_s0 + $0x28] sm:$0xff]  ;;  %v300_v11 = vld [vmem:[%s522_s0 + $0x38] sm:$0xff] }
   0x5   :  { %v390_v12 = vld [vmem:[%s521_s2] ss:$0 sm:$0xff]  ;;  %v185_v28 = vld [vmem:[%s523_s3 + $0x8] sm:$0xff]  ;;  %v186_v44 = vld [vmem:[%s523_s3 + $0x10] sm:$0xff] }
   0x6   :  { %140 = vmatpush.bf16.msra.mxu0 %v303_v1  ;;  %308 = vmatpush.bf16.msra.mxu1 %v303_v1  ;;  %v184_v14 = vld [vmem:[%s523_s3] sm:$0xff]  ;;  %v189_v30 = vld [vmem:[%s523_s3 + $0x28] sm:$0xff]  ;;  %v190_v46 = vld [vmem:[%s523_s3 + $0x30] sm:$0xff] }
   0x7   :  { %309 = vmatpush.bf16.msra.mxu2 %v303_v1  ;;  %310 = vmatpush.bf16.msra.mxu3 %v303_v1  ;;  %v188_v16 = vld [vmem:[%s523_s3 + $0x20] sm:$0xff]  ;;  %v193_v38 = vld [vmem:[%s523_s3 + $0x48] sm:$0xff]  ;;  %v194_v54 = vld [vmem:[%s523_s3 + $0x50] sm:$0xff] }
   0x8   :  { %v192_v22 = vld [vmem:[%s523_s3 + $0x40] sm:$0xff]  ;;  %v197_v40 = vld [vmem:[%s523_s3 + $0x68] sm:$0xff]  ;;  %v198_v56 = vld [vmem:[%s523_s3 + $0x70] sm:$0xff] }
   0x9   :  { %v196_v24 = vld [vmem:[%s523_s3 + $0x60] sm:$0xff]  ;;  %v187_v60 = vld [vmem:[%s523_s3 + $0x18] sm:$0xff] }
   0xa   :  { %141 = vmatpush.bf16.msra.mxu0 %v302_v2  ;;  %311 = vmatpush.bf16.msra.mxu1 %v302_v2  ;;  %v191_v62 = vld [vmem:[%s523_s3 + $0x38] sm:$0xff] }
   0xb   :  { %312 = vmatpush.bf16.msra.mxu2 %v302_v2  ;;  %313 = vmatpush.bf16.msra.mxu3 %v302_v2 }
   0xe   :  { %142 = vmatpush.bf16.msra.mxu0 %v301_v3  ;;  %314 = vmatpush.bf16.msra.mxu1 %v301_v3 }
   0xf   :  { %315 = vmatpush.bf16.msra.mxu2 %v301_v3  ;;  %316 = vmatpush.bf16.msra.mxu3 %v301_v3 }
  0x11   :  { %285 = vmatmul.msk.bf16.vlgmr.msra.gmra.mxu0 %vm110_vm0, %v293_v4  ;;  %287 = vmatmul.msk.bf16.vlgmr.msra.gmra.mxu1 %vm110_vm0, %v295_v5 }
  0x12   :  { %289 = vmatmul.msk.bf16.vlgmr.msra.gmra.mxu2 %vm110_vm0, %v297_v6  ;;  %291 = vmatmul.msk.bf16.vlgmr.msra.gmra.mxu3 %vm110_vm0, %v299_v7  ;;  %v195_v6 = vld [vmem:[%s523_s3 + $0x58] sm:$0xff] }
  0x21   :  { %286 = vmatmul.msk.bf16.gmra.mxu0 %vm110_vm0, %v294_v8  ;;  %288 = vmatmul.msk.bf16.gmra.mxu1 %vm110_vm0, %v296_v9  ;;  %v199_v8 = vld [vmem:[%s523_s3 + $0x78] sm:$0xff] }
  0x22   :  { %290 = vmatmul.msk.bf16.gmra.mxu2 %vm110_vm0, %v298_v10  ;;  %292 = vmatmul.msk.bf16.gmra.mxu3 %vm110_vm0, %v300_v11 }
  0x8e   :  { %v144_v13 = vpop.f32.mrf.mxu0  ;;  %v154_v15 = vpop.f32.mrf.mxu1 }
  0x8f   :  { %v145_v17 = vadd.f32 %v390_v12, %v144_v13  ;;  %v155_v18 = vadd.f32 %v390_v12, %v154_v15 }
  0x91   :  { %v200_v19 = vadd.f32 %v184_v14, %v145_v17  ;;  %v204_v20 = vadd.f32 %v188_v16, %v155_v18 }
  0x93   :  { %217 = vst.msk [vmem:[%s524_s4] sm:$0xff] %vm216_vm1, %v200_v19 }
  0x94   :  { %221 = vst.msk [vmem:[%s524_s4 + $0x20] sm:$0xff] %vm216_vm1, %v204_v20 }
  0x95   :  { %v164_v21 = vpop.f32.mrf.mxu2  ;;  %v174_v23 = vpop.f32.mrf.mxu3 }
  0x96   :  { %v165_v25 = vadd.f32 %v390_v12, %v164_v21  ;;  %v175_v26 = vadd.f32 %v390_v12, %v174_v23  ;;  %v146_v27 = vpop.f32.mrf.mxu0  ;;  %v156_v29 = vpop.f32.mrf.mxu1 }
  0x97   :  { %v147_v31 = vadd.f32 %v390_v12, %v146_v27  ;;  %v157_v32 = vadd.f32 %v390_v12, %v156_v29 }
  0x98   :  { %v208_v33 = vadd.f32 %v192_v22, %v165_v25  ;;  %v212_v34 = vadd.f32 %v196_v24, %v175_v26 }
  0x99   :  { %v201_v35 = vadd.f32 %v185_v28, %v147_v31  ;;  %v205_v36 = vadd.f32 %v189_v30, %v157_v32 }
  0x9a   :  { %225 = vst.msk [vmem:[%s524_s4 + $0x40] sm:$0xff] %vm216_vm1, %v208_v33 }
  0x9b   :  { %229 = vst.msk [vmem:[%s524_s4 + $0x60] sm:$0xff] %vm216_vm1, %v212_v34 }
  0x9c   :  { %218 = vst.msk [vmem:[%s524_s4 + $0x8] sm:$0xff] %vm216_vm1, %v201_v35 }
  0x9d   :  { %222 = vst.msk [vmem:[%s524_s4 + $0x28] sm:$0xff] %vm216_vm1, %v205_v36  ;;  %v166_v37 = vpop.f32.mrf.mxu2  ;;  %v176_v39 = vpop.f32.mrf.mxu3 }
  0x9e   :  { %v167_v41 = vadd.f32 %v390_v12, %v166_v37  ;;  %v177_v42 = vadd.f32 %v390_v12, %v176_v39  ;;  %v149_v43 = vpop.f32.mrf.mxu0  ;;  %v159_v45 = vpop.f32.mrf.mxu1 }
  0x9f   :  { %v150_v47 = vadd.f32 %v390_v12, %v149_v43  ;;  %v160_v48 = vadd.f32 %v390_v12, %v159_v45 }
  0xa0   :  { %v209_v49 = vadd.f32 %v193_v38, %v167_v41  ;;  %v213_v50 = vadd.f32 %v197_v40, %v177_v42 }
  0xa1   :  { %v202_v51 = vadd.f32 %v186_v44, %v150_v47  ;;  %v206_v52 = vadd.f32 %v190_v46, %v160_v48 }
  0xa2   :  { %226 = vst.msk [vmem:[%s524_s4 + $0x48] sm:$0xff] %vm216_vm1, %v209_v49 }
  0xa3   :  { %230 = vst.msk [vmem:[%s524_s4 + $0x68] sm:$0xff] %vm216_vm1, %v213_v50 }
  0xa4   :  { %219 = vst.msk [vmem:[%s524_s4 + $0x10] sm:$0xff] %vm216_vm1, %v202_v51 }
  0xa5   :  { %223 = vst.msk [vmem:[%s524_s4 + $0x30] sm:$0xff] %vm216_vm1, %v206_v52  ;;  %v169_v53 = vpop.f32.mrf.mxu2  ;;  %v179_v55 = vpop.f32.mrf.mxu3 }
  0xa6   :  { %v170_v57 = vadd.f32 %v390_v12, %v169_v53  ;;  %v180_v58 = vadd.f32 %v390_v12, %v179_v55  ;;  %v151_v59 = vpop.f32.mrf.mxu0  ;;  %v161_v61 = vpop.f32.mrf.mxu1 }
  0xa7   :  { %v152_v63 = vadd.f32 %v390_v12, %v151_v59  ;;  %v162_v0 = vadd.f32 %v390_v12, %v161_v61 }
  0xa8   :  { %v210_v1 = vadd.f32 %v194_v54, %v170_v57  ;;  %v214_v2 = vadd.f32 %v198_v56, %v180_v58 }
  0xa9   :  { %v203_v3 = vadd.f32 %v187_v60, %v152_v63  ;;  %v207_v4 = vadd.f32 %v191_v62, %v162_v0 }
  0xaa   :  { %227 = vst.msk [vmem:[%s524_s4 + $0x50] sm:$0xff] %vm216_vm1, %v210_v1 }
  0xab   :  { %231 = vst.msk [vmem:[%s524_s4 + $0x70] sm:$0xff] %vm216_vm1, %v214_v2 }
  0xac   :  { %220 = vst.msk [vmem:[%s524_s4 + $0x18] sm:$0xff] %vm216_vm1, %v203_v3 }
  0xad   :  { %224 = vst.msk [vmem:[%s524_s4 + $0x38] sm:$0xff] %vm216_vm1, %v207_v4  ;;  %v171_v5 = vpop.f32.mrf.mxu2  ;;  %v181_v7 = vpop.f32.mrf.mxu3 }
  0xae   :  { %v172_v9 = vadd.f32 %v390_v12, %v171_v5  ;;  %v182_v10 = vadd.f32 %v390_v12, %v181_v7 }
  0xb0   :  { %v211_v11 = vadd.f32 %v195_v6, %v172_v9  ;;  %v215_v13 = vadd.f32 %v199_v8, %v182_v10 }
  0xb2   :  { %228 = vst.msk [vmem:[%s524_s4 + $0x58] sm:$0xff] %vm216_vm1, %v211_v11 }
  0xb3   :  { %232 = vst.msk [vmem:[%s524_s4 + $0x78] sm:$0xff] %vm216_vm1, %v215_v13 }

</bundles_post_ra>
